<compile_context>
chip_gen: v7x
topology: tpu7x:2x2x1
jax: 0.10.0
libtpu: 0.0.40
codegen_flags: <defaults>
</compile_context>

<pallas_src>
import jax
import jax.numpy as jnp
from jax.experimental import pallas as pl
from jax.experimental.pallas import tpu as pltpu


_INV_SQRT2 = 0.7071067811865476
_NEG_INF = -1e30


# ------------------------------------------------------------ in-kernel ops --
def _gelu(h):
    # exact (erf-based) GELU, matching torch.nn.GELU(approximate='none')
    return 0.5 * h * (1.0 + jax.lax.erf(h * jnp.float32(_INV_SQRT2)))


def _gat_layer(h, adj, neg_mask, w_ref, asrc_ref, adst_ref, bias_ref, *, vpu_proj):
    """One GATConv (heads=1): softmax_j(leaky(a_dst_i + a_src_j) | adj) @ (h W) + b."""
    if vpu_proj:
        # Degenerate contraction dim (Fin=2): keep it off the MXU — two broadcast
        # multiply-adds on the VPU.
        w = w_ref[...]                                               # [Fin, Fout] f32
        xp = h[:, 0:1] * w[0:1, :]
        for k in range(1, w.shape[0]):
            xp = xp + h[:, k:k + 1] * w[k:k + 1, :]
    else:
        # bf16 MXU operands, f32 accumulation (valid on v5e/v6e/v7x MXUs).
        xp = jnp.dot(h.astype(jnp.bfloat16), w_ref[...],
                     preferred_element_type=jnp.float32)             # [N, Fout]

    # alpha_dst[i] = <x'_i, att_dst>  (VPU mul + lane reduce -> [N, 1])
    a_dst = jnp.sum(xp * adst_ref[...], axis=-1, keepdims=True)
    # alpha_src[j] = <x'_j, att_src>  laid out lane-major as [1, N]
    a_src = jax.lax.dot_general(asrc_ref[...], xp,
                                (((1,), (1,)), ((), ())),
                                preferred_element_type=jnp.float32)

    e = a_dst + a_src                                  # e[i, j] for edge j -> i
    e = jnp.maximum(e, 0.2 * e)                        # LeakyReLU(negative_slope=0.2)
    e = e + neg_mask                                   # mask non-edges (additive -inf)
    e = e - jnp.max(e, axis=-1, keepdims=True)         # row softmax over source nodes
    p = jnp.exp(e) * adj
    attn = p * pl.reciprocal(jnp.sum(p, axis=-1, keepdims=True), approx=True)

    out = jnp.dot(attn.astype(jnp.bfloat16), xp.astype(jnp.bfloat16),
                  preferred_element_type=jnp.float32)                # [N, Fout]
    return out + bias_ref[...]


# ------------------------------------------------------------ fused kernel ---
def _fused_gat_kernel(*refs):
    # layout of refs:
    #   [0] x            [N, 2]      f32
    #   [1] adj          [N, N]      f32   adj[dst, src] with self loops
    #   [2] maskT        [N, B]      f32   node -> graph membership (node-major)
    #   [3:23]  5 x (w, att_src, att_dst, bias)
    #   [23:29] bn1 scale/shift, bn2 scale/shift, bn3 scale/shift
    #   [29:33] lin1 w, lin1 b, lin w, lin b
    #   [-1] out         [B, 2]      f32
    o_ref = refs[-1]
    x_ref, adj_ref, maskT_ref = refs[0], refs[1], refs[2]
    rest = refs[3:-1]
    conv = [rest[4 * i: 4 * i + 4] for i in range(5)]
    bn = rest[20:26]
    l1w, l1b, l2w, l2b = rest[26:30]

    adj = adj_ref[...]
    # Additive softmax mask, computed once and reused by all 5 layers.
    neg_mask = jnp.where(adj > 0, 0.0, jnp.float32(_NEG_INF))

    # conv1 -> bn1 -> gelu
    h = _gat_layer(x_ref[...], adj, neg_mask, *conv[0], vpu_proj=True)
    h = _gelu(h * bn[0][...] + bn[1][...])

    # conv2 -> gelu -> dropout(eval: identity)
    h = _gat_layer(h, adj, neg_mask, *conv[1], vpu_proj=False)
    h = _gelu(h)

    # conv3 -> bn2 -> gelu
    h = _gat_layer(h, adj, neg_mask, *conv[2], vpu_proj=False)
    h = _gelu(h * bn[2][...] + bn[3][...])

    # conv4 -> gelu
    h = _gat_layer(h, adj, neg_mask, *conv[3], vpu_proj=False)
    h = _gelu(h)

    # conv5 -> bn3 -> gelu
    h = _gat_layer(h, adj, neg_mask, *conv[4], vpu_proj=False)
    h = _gelu(h * bn[4][...] + bn[5][...])

    # global max pool over nodes of each graph (no per-row partial stores;
    # the pooled value feeds the MLP directly inside the same kernel).
    mt = maskT_ref[...]                                   # [N, B]
    num_graphs = mt.shape[1]                              # static
    rows = []
    for b in range(num_graphs):
        mb = mt[:, b:b + 1]                               # [N, 1]
        rows.append(jnp.max(jnp.where(mb > 0, h, jnp.float32(_NEG_INF)),
                            axis=0, keepdims=True))       # [1, F]
    pooled = jnp.concatenate(rows, axis=0)                # [B, F]

    # dropout(eval: identity) -> lin1 -> lin
    hid = jnp.dot(pooled, l1w[...], preferred_element_type=jnp.float32) + l1b[...]
    o_ref[...] = jnp.dot(hid, l2w[...], preferred_element_type=jnp.float32) + l2b[...]


# ---------------------------------------------------------- parameter setup --
def init_params(key):
    def glorot(k, fi, fo):
        return (jax.random.normal(k, (fi, fo), jnp.float32)
                * jnp.sqrt(2.0 / (fi + fo)))

    dims = [(2, 64), (64, 64), (64, 128), (128, 256), (256, 256)]
    keys = jax.random.split(key, 32)
    ki = iter(keys)
    params = {}
    for idx, (fi, fo) in enumerate(dims, start=1):
        params[f"conv{idx}"] = dict(
            w=glorot(next(ki), fi, fo),
            att_src=jax.random.normal(next(ki), (1, fo), jnp.float32) * 0.1,
            att_dst=jax.random.normal(next(ki), (1, fo), jnp.float32) * 0.1,
            bias=jnp.zeros((1, fo), jnp.float32),
        )
    eps = 1e-5
    for name, f in (("bn1", 64), ("bn2", 128), ("bn3", 256)):
        gamma = 1.0 + 0.1 * jax.random.normal(next(ki), (1, f), jnp.float32)
        beta = 0.1 * jax.random.normal(next(ki), (1, f), jnp.float32)
        run_mean = jnp.zeros((1, f), jnp.float32)
        run_var = jnp.ones((1, f), jnp.float32)
        scale = gamma / jnp.sqrt(run_var + eps)
        shift = beta - run_mean * scale
        params[name] = dict(scale=scale, shift=shift)
    params["lin1"] = dict(w=glorot(next(ki), 256, 10),
                          b=0.1 * jax.random.normal(next(ki), (1, 10), jnp.float32))
    params["lin"] = dict(w=glorot(next(ki), 10, 2),
                         b=0.1 * jax.random.normal(next(ki), (1, 2), jnp.float32))
    return params


# --------------------------------------------------------------- full model --
def gat_forward(params, x, ei, batch, num_graphs):
    n = x.shape[0]
    # dense adjacency adj[dst, src] with self loops (GATConv add_self_loops=True)
    adj = jnp.zeros((n, n), jnp.float32)
    adj = adj.at[ei[1], ei[0]].set(1.0)
    adj = adj.at[jnp.arange(n), jnp.arange(n)].set(1.0)
    # node-major graph membership mask [N, B] for max pooling
    maskT = (batch[:, None] == jnp.arange(num_graphs)[None, :]).astype(jnp.float32)

    args = [x.astype(jnp.float32), adj, maskT]
    for idx in range(1, 6):
        c = params[f"conv{idx}"]
        w = c["w"]
        if idx > 1:
            # bf16 MXU operands (f32 accumulation in-kernel); conv1 stays f32
            # because its K=2 projection runs on the VPU.
            w = w.astype(jnp.bfloat16)
        args += [w, c["att_src"], c["att_dst"], c["bias"]]
    for name in ("bn1", "bn2", "bn3"):
        args += [params[name]["scale"], params[name]["shift"]]
    args += [params["lin1"]["w"], params["lin1"]["b"],
             params["lin"]["w"], params["lin"]["b"]]

    def full_spec(shape):
        nd = len(shape)
        return pl.BlockSpec(shape, lambda i, nd=nd: (0,) * nd)

    out_shape = (num_graphs, 2)
    return pl.pallas_call(
        _fused_gat_kernel,
        out_shape=jax.ShapeDtypeStruct(out_shape, jnp.float32),
        grid=(1,),
        in_specs=[full_spec(a.shape) for a in args],
        out_specs=full_spec(out_shape),
        compiler_params=pltpu.CompilerParams(
            dimension_semantics=("arbitrary",)),
    )(*args)


# -------------------------------------------------------------------- main ---
if __name__ == "__main__":
    key = jax.random.PRNGKey(0)
    k_param, k_x, k_e = jax.random.split(key, 3)

    N_NODES = 32          # 16 nodes per graph
    NUM_GRAPHS = 2
    E_PER_GRAPH = 24

    params = init_params(k_param)

    x = jax.random.normal(k_x, (N_NODES, 2), jnp.float32)

    ks, kd, ks2, kd2 = jax.random.split(k_e, 4)
    src0 = jax.random.randint(ks, (E_PER_GRAPH,), 0, 16)
    dst0 = jax.random.randint(kd, (E_PER_GRAPH,), 0, 16)
    src1 = 16 + jax.random.randint(ks2, (E_PER_GRAPH,), 0, 16)
    dst1 = 16 + jax.random.randint(kd2, (E_PER_GRAPH,), 0, 16)
    ei = jnp.stack([jnp.concatenate([src0, src1]),
                    jnp.concatenate([dst0, dst1])]).astype(jnp.int32)   # [2, 48]

    batch = jnp.concatenate([jnp.zeros((16,), jnp.int32),
                             jnp.ones((16,), jnp.int32)])               # [32]

    out = gat_forward(params, x, ei, batch, NUM_GRAPHS)
    out = jax.block_until_ready(out)
    assert out.shape == (NUM_GRAPHS, 2) and out.dtype == jnp.float32
    print("KERNEL_OK")
</pallas_src>

<mosaic_0001>
module attributes {stable_mosaic.version = 11 : i64} {
  func.func @_fused_gat_kernel(%arg0: i32, %arg1: memref<32x2xf32, #tpu.memory_space<vmem>>, %arg2: memref<32x32xf32, #tpu.memory_space<vmem>>, %arg3: memref<32x2xf32, #tpu.memory_space<vmem>>, %arg4: memref<2x64xf32, #tpu.memory_space<vmem>>, %arg5: memref<1x64xf32, #tpu.memory_space<vmem>>, %arg6: memref<1x64xf32, #tpu.memory_space<vmem>>, %arg7: memref<1x64xf32, #tpu.memory_space<vmem>>, %arg8: memref<64x64xbf16, #tpu.memory_space<vmem>>, %arg9: memref<1x64xf32, #tpu.memory_space<vmem>>, %arg10: memref<1x64xf32, #tpu.memory_space<vmem>>, %arg11: memref<1x64xf32, #tpu.memory_space<vmem>>, %arg12: memref<64x128xbf16, #tpu.memory_space<vmem>>, %arg13: memref<1x128xf32, #tpu.memory_space<vmem>>, %arg14: memref<1x128xf32, #tpu.memory_space<vmem>>, %arg15: memref<1x128xf32, #tpu.memory_space<vmem>>, %arg16: memref<128x256xbf16, #tpu.memory_space<vmem>>, %arg17: memref<1x256xf32, #tpu.memory_space<vmem>>, %arg18: memref<1x256xf32, #tpu.memory_space<vmem>>, %arg19: memref<1x256xf32, #tpu.memory_space<vmem>>, %arg20: memref<256x256xbf16, #tpu.memory_space<vmem>>, %arg21: memref<1x256xf32, #tpu.memory_space<vmem>>, %arg22: memref<1x256xf32, #tpu.memory_space<vmem>>, %arg23: memref<1x256xf32, #tpu.memory_space<vmem>>, %arg24: memref<1x64xf32, #tpu.memory_space<vmem>>, %arg25: memref<1x64xf32, #tpu.memory_space<vmem>>, %arg26: memref<1x128xf32, #tpu.memory_space<vmem>>, %arg27: memref<1x128xf32, #tpu.memory_space<vmem>>, %arg28: memref<1x256xf32, #tpu.memory_space<vmem>>, %arg29: memref<1x256xf32, #tpu.memory_space<vmem>>, %arg30: memref<256x10xf32, #tpu.memory_space<vmem>>, %arg31: memref<1x10xf32, #tpu.memory_space<vmem>>, %arg32: memref<10x2xf32, #tpu.memory_space<vmem>>, %arg33: memref<1x2xf32, #tpu.memory_space<vmem>>, %arg34: memref<2x2xf32, #tpu.memory_space<vmem>>) attributes {dimension_semantics = [#tpu.dimension_semantics<arbitrary>], iteration_bounds = array<i64: 1>, scalar_prefetch = 0 : i64, scratch_operands = 0 : i64, tpu.core_type = #tpu.core_type<tc>, window_params = [{pipeline_mode = #tpu.pipeline_mode<synchronous>, transform_indices = @transform_0, window_bounds = array<i64: 32, 2>}, {pipeline_mode = #tpu.pipeline_mode<synchronous>, transform_indices = @transform_1, window_bounds = array<i64: 32, 32>}, {pipeline_mode = #tpu.pipeline_mode<synchronous>, transform_indices = @transform_2, window_bounds = array<i64: 32, 2>}, {pipeline_mode = #tpu.pipeline_mode<synchronous>, transform_indices = @transform_3, window_bounds = array<i64: 2, 64>}, {pipeline_mode = #tpu.pipeline_mode<synchronous>, transform_indices = @transform_4, window_bounds = array<i64: 1, 64>}, {pipeline_mode = #tpu.pipeline_mode<synchronous>, transform_indices = @transform_5, window_bounds = array<i64: 1, 64>}, {pipeline_mode = #tpu.pipeline_mode<synchronous>, transform_indices = @transform_6, window_bounds = array<i64: 1, 64>}, {pipeline_mode = #tpu.pipeline_mode<synchronous>, transform_indices = @transform_7, window_bounds = array<i64: 64, 64>}, {pipeline_mode = #tpu.pipeline_mode<synchronous>, transform_indices = @transform_8, window_bounds = array<i64: 1, 64>}, {pipeline_mode = #tpu.pipeline_mode<synchronous>, transform_indices = @transform_9, window_bounds = array<i64: 1, 64>}, {pipeline_mode = #tpu.pipeline_mode<synchronous>, transform_indices = @transform_10, window_bounds = array<i64: 1, 64>}, {pipeline_mode = #tpu.pipeline_mode<synchronous>, transform_indices = @transform_11, window_bounds = array<i64: 64, 128>}, {pipeline_mode = #tpu.pipeline_mode<synchronous>, transform_indices = @transform_12, window_bounds = array<i64: 1, 128>}, {pipeline_mode = #tpu.pipeline_mode<synchronous>, transform_indices = @transform_13, window_bounds = array<i64: 1, 128>}, {pipeline_mode = #tpu.pipeline_mode<synchronous>, transform_indices = @transform_14, window_bounds = array<i64: 1, 128>}, {pipeline_mode = #tpu.pipeline_mode<synchronous>, transform_indices = @transform_15, window_bounds = array<i64: 128, 256>}, {pipeline_mode = #tpu.pipeline_mode<synchronous>, transform_indices = @transform_16, window_bounds = array<i64: 1, 256>}, {pipeline_mode = #tpu.pipeline_mode<synchronous>, transform_indices = @transform_17, window_bounds = array<i64: 1, 256>}, {pipeline_mode = #tpu.pipeline_mode<synchronous>, transform_indices = @transform_18, window_bounds = array<i64: 1, 256>}, {pipeline_mode = #tpu.pipeline_mode<synchronous>, transform_indices = @transform_19, window_bounds = array<i64: 256, 256>}, {pipeline_mode = #tpu.pipeline_mode<synchronous>, transform_indices = @transform_20, window_bounds = array<i64: 1, 256>}, {pipeline_mode = #tpu.pipeline_mode<synchronous>, transform_indices = @transform_21, window_bounds = array<i64: 1, 256>}, {pipeline_mode = #tpu.pipeline_mode<synchronous>, transform_indices = @transform_22, window_bounds = array<i64: 1, 256>}, {pipeline_mode = #tpu.pipeline_mode<synchronous>, transform_indices = @transform_23, window_bounds = array<i64: 1, 64>}, {pipeline_mode = #tpu.pipeline_mode<synchronous>, transform_indices = @transform_24, window_bounds = array<i64: 1, 64>}, {pipeline_mode = #tpu.pipeline_mode<synchronous>, transform_indices = @transform_25, window_bounds = array<i64: 1, 128>}, {pipeline_mode = #tpu.pipeline_mode<synchronous>, transform_indices = @transform_26, window_bounds = array<i64: 1, 128>}, {pipeline_mode = #tpu.pipeline_mode<synchronous>, transform_indices = @transform_27, window_bounds = array<i64: 1, 256>}, {pipeline_mode = #tpu.pipeline_mode<synchronous>, transform_indices = @transform_28, window_bounds = array<i64: 1, 256>}, {pipeline_mode = #tpu.pipeline_mode<synchronous>, transform_indices = @transform_29, window_bounds = array<i64: 256, 10>}, {pipeline_mode = #tpu.pipeline_mode<synchronous>, transform_indices = @transform_30, window_bounds = array<i64: 1, 10>}, {pipeline_mode = #tpu.pipeline_mode<synchronous>, transform_indices = @transform_31, window_bounds = array<i64: 10, 2>}, {pipeline_mode = #tpu.pipeline_mode<synchronous>, transform_indices = @transform_32, window_bounds = array<i64: 1, 2>}, {pipeline_mode = #tpu.pipeline_mode<synchronous>, transform_indices = @transform_33, window_bounds = array<i64: 2, 2>}]} {
    %c0 = arith.constant 0 : index
    %c0_0 = arith.constant 0 : index
    %0 = vector.load %arg2[%c0, %c0_0] : memref<32x32xf32, #tpu.memory_space<vmem>>, vector<32x32xf32>
    %cst = arith.constant 0.000000e+00 : f32
    %1 = vector.broadcast %cst : f32 to vector<32x32xf32>
    %2 = arith.cmpf ogt, %0, %1 : vector<32x32xf32>
    %cst_1 = arith.constant 0.000000e+00 : f32
    %cst_2 = arith.constant -1.000000e+30 : f32
    %3 = vector.broadcast %cst_1 : f32 to vector<32x32xf32>
    %4 = vector.broadcast %cst_2 : f32 to vector<32x32xf32>
    %5 = arith.select %2, %3, %4 : vector<32x32xi1>, vector<32x32xf32>
    %c0_3 = arith.constant 0 : index
    %c0_4 = arith.constant 0 : index
    %6 = vector.load %arg1[%c0_3, %c0_4] : memref<32x2xf32, #tpu.memory_space<vmem>>, vector<32x2xf32>
    %c0_5 = arith.constant 0 : index
    %c0_6 = arith.constant 0 : index
    %7 = vector.load %arg4[%c0_5, %c0_6] : memref<2x64xf32, #tpu.memory_space<vmem>>, vector<2x64xf32>
    %8 = vector.extract_strided_slice %6 {offsets = [0, 0], sizes = [32, 1], strides = [1, 1]} : vector<32x2xf32> to vector<32x1xf32>
    %9 = vector.extract_strided_slice %7 {offsets = [0, 0], sizes = [1, 64], strides = [1, 1]} : vector<2x64xf32> to vector<1x64xf32>
    %10 = vector.broadcast %8 : vector<32x1xf32> to vector<32x64xf32>
    %11 = vector.broadcast %9 : vector<1x64xf32> to vector<32x64xf32>
    %12 = arith.mulf %10, %11 : vector<32x64xf32>
    %13 = vector.extract_strided_slice %6 {offsets = [0, 1], sizes = [32, 1], strides = [1, 1]} : vector<32x2xf32> to vector<32x1xf32>
    %14 = vector.extract_strided_slice %7 {offsets = [1, 0], sizes = [1, 64], strides = [1, 1]} : vector<2x64xf32> to vector<1x64xf32>
    %15 = vector.broadcast %13 : vector<32x1xf32> to vector<32x64xf32>
    %16 = vector.broadcast %14 : vector<1x64xf32> to vector<32x64xf32>
    %17 = arith.mulf %15, %16 : vector<32x64xf32>
    %18 = arith.addf %12, %17 : vector<32x64xf32>
    %c0_7 = arith.constant 0 : index
    %c0_8 = arith.constant 0 : index
    %19 = vector.load %arg6[%c0_7, %c0_8] : memref<1x64xf32, #tpu.memory_space<vmem>>, vector<1x64xf32>
    %20 = vector.broadcast %19 : vector<1x64xf32> to vector<32x64xf32>
    %21 = arith.mulf %18, %20 : vector<32x64xf32>
    %cst_9 = arith.constant dense<0.000000e+00> : vector<32xf32>
    %22 = vector.multi_reduction <add>, %21, %cst_9 [1] : vector<32x64xf32> to vector<32xf32>
    %23 = vector.shape_cast %22 : vector<32xf32> to vector<32x1xf32>
    %c0_10 = arith.constant 0 : index
    %c0_11 = arith.constant 0 : index
    %24 = vector.load %arg5[%c0_10, %c0_11] : memref<1x64xf32, #tpu.memory_space<vmem>>, vector<1x64xf32>
    %cst_12 = arith.constant dense<0.000000e+00> : vector<1x32xf32>
    %25 = tpu.matmul %24, %18, %cst_12 {dimension_numbers = #tpu.dot_dimension_numbers<[1], [1], [0], [0], [0, 0, 1, 0], [], []>} : vector<1x64xf32>, vector<32x64xf32>, vector<1x32xf32> -> vector<1x32xf32>
    %26 = vector.broadcast %23 : vector<32x1xf32> to vector<32x32xf32>
    %27 = vector.broadcast %25 : vector<1x32xf32> to vector<32x32xf32>
    %28 = arith.addf %26, %27 : vector<32x32xf32>
    %cst_13 = arith.constant 2.000000e-01 : f32
    %29 = vector.broadcast %cst_13 : f32 to vector<32x32xf32>
    %30 = arith.mulf %29, %28 : vector<32x32xf32>
    %31 = arith.maximumf %28, %30 : vector<32x32xf32>
    %32 = arith.addf %31, %5 : vector<32x32xf32>
    %cst_14 = arith.constant dense<0xFF800000> : vector<32xf32>
    %33 = vector.multi_reduction <maximumf>, %32, %cst_14 [1] : vector<32x32xf32> to vector<32xf32>
    %34 = vector.shape_cast %33 : vector<32xf32> to vector<32x1xf32>
    %35 = vector.broadcast %34 : vector<32x1xf32> to vector<32x32xf32>
    %36 = arith.subf %32, %35 : vector<32x32xf32>
    %37 = math.exp %36 : vector<32x32xf32>
    %38 = arith.mulf %37, %0 : vector<32x32xf32>
    %cst_15 = arith.constant dense<0.000000e+00> : vector<32xf32>
    %39 = vector.multi_reduction <add>, %38, %cst_15 [1] : vector<32x32xf32> to vector<32xf32>
    %40 = vector.shape_cast %39 : vector<32xf32> to vector<32x1xf32>
    %41 = tpu.reciprocal %40 {approx = true} : vector<32x1xf32> -> vector<32x1xf32>
    %42 = vector.broadcast %41 : vector<32x1xf32> to vector<32x32xf32>
    %43 = arith.mulf %38, %42 : vector<32x32xf32>
    %44 = arith.truncf %43 : vector<32x32xf32> to vector<32x32xbf16>
    %45 = arith.truncf %18 : vector<32x64xf32> to vector<32x64xbf16>
    %cst_16 = arith.constant dense<0.000000e+00> : vector<32x64xf32>
    %46 = tpu.matmul %44, %45, %cst_16 {dimension_numbers = #tpu.dot_dimension_numbers<[1], [0], [0], [1], [0, 0, 1, 1], [], []>} : vector<32x32xbf16>, vector<32x64xbf16>, vector<32x64xf32> -> vector<32x64xf32>
    %c0_17 = arith.constant 0 : index
    %c0_18 = arith.constant 0 : index
    %47 = vector.load %arg7[%c0_17, %c0_18] : memref<1x64xf32, #tpu.memory_space<vmem>>, vector<1x64xf32>
    %48 = vector.broadcast %47 : vector<1x64xf32> to vector<32x64xf32>
    %49 = arith.addf %46, %48 : vector<32x64xf32>
    %c0_19 = arith.constant 0 : index
    %c0_20 = arith.constant 0 : index
    %50 = vector.load %arg24[%c0_19, %c0_20] : memref<1x64xf32, #tpu.memory_space<vmem>>, vector<1x64xf32>
    %51 = vector.broadcast %50 : vector<1x64xf32> to vector<32x64xf32>
    %52 = arith.mulf %49, %51 : vector<32x64xf32>
    %c0_21 = arith.constant 0 : index
    %c0_22 = arith.constant 0 : index
    %53 = vector.load %arg25[%c0_21, %c0_22] : memref<1x64xf32, #tpu.memory_space<vmem>>, vector<1x64xf32>
    %54 = vector.broadcast %53 : vector<1x64xf32> to vector<32x64xf32>
    %55 = arith.addf %52, %54 : vector<32x64xf32>
    %cst_23 = arith.constant 5.000000e-01 : f32
    %56 = vector.broadcast %cst_23 : f32 to vector<32x64xf32>
    %57 = arith.mulf %56, %55 : vector<32x64xf32>
    %cst_24 = arith.constant 0.707106769 : f32
    %58 = vector.broadcast %cst_24 : f32 to vector<32x64xf32>
    %59 = arith.mulf %55, %58 : vector<32x64xf32>
    %60 = math.erf %59 : vector<32x64xf32>
    %cst_25 = arith.constant 1.000000e+00 : f32
    %61 = vector.broadcast %cst_25 : f32 to vector<32x64xf32>
    %62 = arith.addf %61, %60 : vector<32x64xf32>
    %63 = arith.mulf %57, %62 : vector<32x64xf32>
    %64 = arith.truncf %63 : vector<32x64xf32> to vector<32x64xbf16>
    %c0_26 = arith.constant 0 : index
    %c0_27 = arith.constant 0 : index
    %65 = vector.load %arg8[%c0_26, %c0_27] : memref<64x64xbf16, #tpu.memory_space<vmem>>, vector<64x64xbf16>
    %cst_28 = arith.constant dense<0.000000e+00> : vector<32x64xf32>
    %66 = tpu.matmul %64, %65, %cst_28 {dimension_numbers = #tpu.dot_dimension_numbers<[1], [0], [0], [1], [0, 0, 1, 1], [], []>} : vector<32x64xbf16>, vector<64x64xbf16>, vector<32x64xf32> -> vector<32x64xf32>
    %c0_29 = arith.constant 0 : index
    %c0_30 = arith.constant 0 : index
    %67 = vector.load %arg10[%c0_29, %c0_30] : memref<1x64xf32, #tpu.memory_space<vmem>>, vector<1x64xf32>
    %68 = vector.broadcast %67 : vector<1x64xf32> to vector<32x64xf32>
    %69 = arith.mulf %66, %68 : vector<32x64xf32>
    %cst_31 = arith.constant dense<0.000000e+00> : vector<32xf32>
    %70 = vector.multi_reduction <add>, %69, %cst_31 [1] : vector<32x64xf32> to vector<32xf32>
    %71 = vector.shape_cast %70 : vector<32xf32> to vector<32x1xf32>
    %c0_32 = arith.constant 0 : index
    %c0_33 = arith.constant 0 : index
    %72 = vector.load %arg9[%c0_32, %c0_33] : memref<1x64xf32, #tpu.memory_space<vmem>>, vector<1x64xf32>
    %cst_34 = arith.constant dense<0.000000e+00> : vector<1x32xf32>
    %73 = tpu.matmul %72, %66, %cst_34 {dimension_numbers = #tpu.dot_dimension_numbers<[1], [1], [0], [0], [0, 0, 1, 0], [], []>} : vector<1x64xf32>, vector<32x64xf32>, vector<1x32xf32> -> vector<1x32xf32>
    %74 = vector.broadcast %71 : vector<32x1xf32> to vector<32x32xf32>
    %75 = vector.broadcast %73 : vector<1x32xf32> to vector<32x32xf32>
    %76 = arith.addf %74, %75 : vector<32x32xf32>
    %cst_35 = arith.constant 2.000000e-01 : f32
    %77 = vector.broadcast %cst_35 : f32 to vector<32x32xf32>
    %78 = arith.mulf %77, %76 : vector<32x32xf32>
    %79 = arith.maximumf %76, %78 : vector<32x32xf32>
    %80 = arith.addf %79, %5 : vector<32x32xf32>
    %cst_36 = arith.constant dense<0xFF800000> : vector<32xf32>
    %81 = vector.multi_reduction <maximumf>, %80, %cst_36 [1] : vector<32x32xf32> to vector<32xf32>
    %82 = vector.shape_cast %81 : vector<32xf32> to vector<32x1xf32>
    %83 = vector.broadcast %82 : vector<32x1xf32> to vector<32x32xf32>
    %84 = arith.subf %80, %83 : vector<32x32xf32>
    %85 = math.exp %84 : vector<32x32xf32>
    %86 = arith.mulf %85, %0 : vector<32x32xf32>
    %cst_37 = arith.constant dense<0.000000e+00> : vector<32xf32>
    %87 = vector.multi_reduction <add>, %86, %cst_37 [1] : vector<32x32xf32> to vector<32xf32>
    %88 = vector.shape_cast %87 : vector<32xf32> to vector<32x1xf32>
    %89 = tpu.reciprocal %88 {approx = true} : vector<32x1xf32> -> vector<32x1xf32>
    %90 = vector.broadcast %89 : vector<32x1xf32> to vector<32x32xf32>
    %91 = arith.mulf %86, %90 : vector<32x32xf32>
    %92 = arith.truncf %91 : vector<32x32xf32> to vector<32x32xbf16>
    %93 = arith.truncf %66 : vector<32x64xf32> to vector<32x64xbf16>
    %cst_38 = arith.constant dense<0.000000e+00> : vector<32x64xf32>
    %94 = tpu.matmul %92, %93, %cst_38 {dimension_numbers = #tpu.dot_dimension_numbers<[1], [0], [0], [1], [0, 0, 1, 1], [], []>} : vector<32x32xbf16>, vector<32x64xbf16>, vector<32x64xf32> -> vector<32x64xf32>
    %c0_39 = arith.constant 0 : index
    %c0_40 = arith.constant 0 : index
    %95 = vector.load %arg11[%c0_39, %c0_40] : memref<1x64xf32, #tpu.memory_space<vmem>>, vector<1x64xf32>
    %96 = vector.broadcast %95 : vector<1x64xf32> to vector<32x64xf32>
    %97 = arith.addf %94, %96 : vector<32x64xf32>
    %cst_41 = arith.constant 5.000000e-01 : f32
    %98 = vector.broadcast %cst_41 : f32 to vector<32x64xf32>
    %99 = arith.mulf %98, %97 : vector<32x64xf32>
    %cst_42 = arith.constant 0.707106769 : f32
    %100 = vector.broadcast %cst_42 : f32 to vector<32x64xf32>
    %101 = arith.mulf %97, %100 : vector<32x64xf32>
    %102 = math.erf %101 : vector<32x64xf32>
    %cst_43 = arith.constant 1.000000e+00 : f32
    %103 = vector.broadcast %cst_43 : f32 to vector<32x64xf32>
    %104 = arith.addf %103, %102 : vector<32x64xf32>
    %105 = arith.mulf %99, %104 : vector<32x64xf32>
    %106 = arith.truncf %105 : vector<32x64xf32> to vector<32x64xbf16>
    %c0_44 = arith.constant 0 : index
    %c0_45 = arith.constant 0 : index
    %107 = vector.load %arg12[%c0_44, %c0_45] : memref<64x128xbf16, #tpu.memory_space<vmem>>, vector<64x128xbf16>
    %cst_46 = arith.constant dense<0.000000e+00> : vector<32x128xf32>
    %108 = tpu.matmul %106, %107, %cst_46 {dimension_numbers = #tpu.dot_dimension_numbers<[1], [0], [0], [1], [0, 0, 1, 1], [], []>} : vector<32x64xbf16>, vector<64x128xbf16>, vector<32x128xf32> -> vector<32x128xf32>
    %c0_47 = arith.constant 0 : index
    %c0_48 = arith.constant 0 : index
    %109 = vector.load %arg14[%c0_47, %c0_48] : memref<1x128xf32, #tpu.memory_space<vmem>>, vector<1x128xf32>
    %110 = vector.broadcast %109 : vector<1x128xf32> to vector<32x128xf32>
    %111 = arith.mulf %108, %110 : vector<32x128xf32>
    %cst_49 = arith.constant dense<0.000000e+00> : vector<32xf32>
    %112 = vector.multi_reduction <add>, %111, %cst_49 [1] : vector<32x128xf32> to vector<32xf32>
    %113 = vector.shape_cast %112 : vector<32xf32> to vector<32x1xf32>
    %c0_50 = arith.constant 0 : index
    %c0_51 = arith.constant 0 : index
    %114 = vector.load %arg13[%c0_50, %c0_51] : memref<1x128xf32, #tpu.memory_space<vmem>>, vector<1x128xf32>
    %cst_52 = arith.constant dense<0.000000e+00> : vector<1x32xf32>
    %115 = tpu.matmul %114, %108, %cst_52 {dimension_numbers = #tpu.dot_dimension_numbers<[1], [1], [0], [0], [0, 0, 1, 0], [], []>} : vector<1x128xf32>, vector<32x128xf32>, vector<1x32xf32> -> vector<1x32xf32>
    %116 = vector.broadcast %113 : vector<32x1xf32> to vector<32x32xf32>
    %117 = vector.broadcast %115 : vector<1x32xf32> to vector<32x32xf32>
    %118 = arith.addf %116, %117 : vector<32x32xf32>
    %cst_53 = arith.constant 2.000000e-01 : f32
    %119 = vector.broadcast %cst_53 : f32 to vector<32x32xf32>
    %120 = arith.mulf %119, %118 : vector<32x32xf32>
    %121 = arith.maximumf %118, %120 : vector<32x32xf32>
    %122 = arith.addf %121, %5 : vector<32x32xf32>
    %cst_54 = arith.constant dense<0xFF800000> : vector<32xf32>
    %123 = vector.multi_reduction <maximumf>, %122, %cst_54 [1] : vector<32x32xf32> to vector<32xf32>
    %124 = vector.shape_cast %123 : vector<32xf32> to vector<32x1xf32>
    %125 = vector.broadcast %124 : vector<32x1xf32> to vector<32x32xf32>
    %126 = arith.subf %122, %125 : vector<32x32xf32>
    %127 = math.exp %126 : vector<32x32xf32>
    %128 = arith.mulf %127, %0 : vector<32x32xf32>
    %cst_55 = arith.constant dense<0.000000e+00> : vector<32xf32>
    %129 = vector.multi_reduction <add>, %128, %cst_55 [1] : vector<32x32xf32> to vector<32xf32>
    %130 = vector.shape_cast %129 : vector<32xf32> to vector<32x1xf32>
    %131 = tpu.reciprocal %130 {approx = true} : vector<32x1xf32> -> vector<32x1xf32>
    %132 = vector.broadcast %131 : vector<32x1xf32> to vector<32x32xf32>
    %133 = arith.mulf %128, %132 : vector<32x32xf32>
    %134 = arith.truncf %133 : vector<32x32xf32> to vector<32x32xbf16>
    %135 = arith.truncf %108 : vector<32x128xf32> to vector<32x128xbf16>
    %cst_56 = arith.constant dense<0.000000e+00> : vector<32x128xf32>
    %136 = tpu.matmul %134, %135, %cst_56 {dimension_numbers = #tpu.dot_dimension_numbers<[1], [0], [0], [1], [0, 0, 1, 1], [], []>} : vector<32x32xbf16>, vector<32x128xbf16>, vector<32x128xf32> -> vector<32x128xf32>
    %c0_57 = arith.constant 0 : index
    %c0_58 = arith.constant 0 : index
    %137 = vector.load %arg15[%c0_57, %c0_58] : memref<1x128xf32, #tpu.memory_space<vmem>>, vector<1x128xf32>
    %138 = vector.broadcast %137 : vector<1x128xf32> to vector<32x128xf32>
    %139 = arith.addf %136, %138 : vector<32x128xf32>
    %c0_59 = arith.constant 0 : index
    %c0_60 = arith.constant 0 : index
    %140 = vector.load %arg26[%c0_59, %c0_60] : memref<1x128xf32, #tpu.memory_space<vmem>>, vector<1x128xf32>
    %141 = vector.broadcast %140 : vector<1x128xf32> to vector<32x128xf32>
    %142 = arith.mulf %139, %141 : vector<32x128xf32>
    %c0_61 = arith.constant 0 : index
    %c0_62 = arith.constant 0 : index
    %143 = vector.load %arg27[%c0_61, %c0_62] : memref<1x128xf32, #tpu.memory_space<vmem>>, vector<1x128xf32>
    %144 = vector.broadcast %143 : vector<1x128xf32> to vector<32x128xf32>
    %145 = arith.addf %142, %144 : vector<32x128xf32>
    %cst_63 = arith.constant 5.000000e-01 : f32
    %146 = vector.broadcast %cst_63 : f32 to vector<32x128xf32>
    %147 = arith.mulf %146, %145 : vector<32x128xf32>
    %cst_64 = arith.constant 0.707106769 : f32
    %148 = vector.broadcast %cst_64 : f32 to vector<32x128xf32>
    %149 = arith.mulf %145, %148 : vector<32x128xf32>
    %150 = math.erf %149 : vector<32x128xf32>
    %cst_65 = arith.constant 1.000000e+00 : f32
    %151 = vector.broadcast %cst_65 : f32 to vector<32x128xf32>
    %152 = arith.addf %151, %150 : vector<32x128xf32>
    %153 = arith.mulf %147, %152 : vector<32x128xf32>
    %154 = arith.truncf %153 : vector<32x128xf32> to vector<32x128xbf16>
    %c0_66 = arith.constant 0 : index
    %c0_67 = arith.constant 0 : index
    %155 = vector.load %arg16[%c0_66, %c0_67] : memref<128x256xbf16, #tpu.memory_space<vmem>>, vector<128x256xbf16>
    %cst_68 = arith.constant dense<0.000000e+00> : vector<32x256xf32>
    %156 = tpu.matmul %154, %155, %cst_68 {dimension_numbers = #tpu.dot_dimension_numbers<[1], [0], [0], [1], [0, 0, 1, 1], [], []>} : vector<32x128xbf16>, vector<128x256xbf16>, vector<32x256xf32> -> vector<32x256xf32>
    %c0_69 = arith.constant 0 : index
    %c0_70 = arith.constant 0 : index
    %157 = vector.load %arg18[%c0_69, %c0_70] : memref<1x256xf32, #tpu.memory_space<vmem>>, vector<1x256xf32>
    %158 = vector.broadcast %157 : vector<1x256xf32> to vector<32x256xf32>
    %159 = arith.mulf %156, %158 : vector<32x256xf32>
    %cst_71 = arith.constant dense<0.000000e+00> : vector<32xf32>
    %160 = vector.multi_reduction <add>, %159, %cst_71 [1] : vector<32x256xf32> to vector<32xf32>
    %161 = vector.shape_cast %160 : vector<32xf32> to vector<32x1xf32>
    %c0_72 = arith.constant 0 : index
    %c0_73 = arith.constant 0 : index
    %162 = vector.load %arg17[%c0_72, %c0_73] : memref<1x256xf32, #tpu.memory_space<vmem>>, vector<1x256xf32>
    %cst_74 = arith.constant dense<0.000000e+00> : vector<1x32xf32>
    %163 = tpu.matmul %162, %156, %cst_74 {dimension_numbers = #tpu.dot_dimension_numbers<[1], [1], [0], [0], [0, 0, 1, 0], [], []>} : vector<1x256xf32>, vector<32x256xf32>, vector<1x32xf32> -> vector<1x32xf32>
    %164 = vector.broadcast %161 : vector<32x1xf32> to vector<32x32xf32>
    %165 = vector.broadcast %163 : vector<1x32xf32> to vector<32x32xf32>
    %166 = arith.addf %164, %165 : vector<32x32xf32>
    %cst_75 = arith.constant 2.000000e-01 : f32
    %167 = vector.broadcast %cst_75 : f32 to vector<32x32xf32>
    %168 = arith.mulf %167, %166 : vector<32x32xf32>
    %169 = arith.maximumf %166, %168 : vector<32x32xf32>
    %170 = arith.addf %169, %5 : vector<32x32xf32>
    %cst_76 = arith.constant dense<0xFF800000> : vector<32xf32>
    %171 = vector.multi_reduction <maximumf>, %170, %cst_76 [1] : vector<32x32xf32> to vector<32xf32>
    %172 = vector.shape_cast %171 : vector<32xf32> to vector<32x1xf32>
    %173 = vector.broadcast %172 : vector<32x1xf32> to vector<32x32xf32>
    %174 = arith.subf %170, %173 : vector<32x32xf32>
    %175 = math.exp %174 : vector<32x32xf32>
    %176 = arith.mulf %175, %0 : vector<32x32xf32>
    %cst_77 = arith.constant dense<0.000000e+00> : vector<32xf32>
    %177 = vector.multi_reduction <add>, %176, %cst_77 [1] : vector<32x32xf32> to vector<32xf32>
    %178 = vector.shape_cast %177 : vector<32xf32> to vector<32x1xf32>
    %179 = tpu.reciprocal %178 {approx = true} : vector<32x1xf32> -> vector<32x1xf32>
    %180 = vector.broadcast %179 : vector<32x1xf32> to vector<32x32xf32>
    %181 = arith.mulf %176, %180 : vector<32x32xf32>
    %182 = arith.truncf %181 : vector<32x32xf32> to vector<32x32xbf16>
    %183 = arith.truncf %156 : vector<32x256xf32> to vector<32x256xbf16>
    %cst_78 = arith.constant dense<0.000000e+00> : vector<32x256xf32>
    %184 = tpu.matmul %182, %183, %cst_78 {dimension_numbers = #tpu.dot_dimension_numbers<[1], [0], [0], [1], [0, 0, 1, 1], [], []>} : vector<32x32xbf16>, vector<32x256xbf16>, vector<32x256xf32> -> vector<32x256xf32>
    %c0_79 = arith.constant 0 : index
    %c0_80 = arith.constant 0 : index
    %185 = vector.load %arg19[%c0_79, %c0_80] : memref<1x256xf32, #tpu.memory_space<vmem>>, vector<1x256xf32>
    %186 = vector.broadcast %185 : vector<1x256xf32> to vector<32x256xf32>
    %187 = arith.addf %184, %186 : vector<32x256xf32>
    %cst_81 = arith.constant 5.000000e-01 : f32
    %188 = vector.broadcast %cst_81 : f32 to vector<32x256xf32>
    %189 = arith.mulf %188, %187 : vector<32x256xf32>
    %cst_82 = arith.constant 0.707106769 : f32
    %190 = vector.broadcast %cst_82 : f32 to vector<32x256xf32>
    %191 = arith.mulf %187, %190 : vector<32x256xf32>
    %192 = math.erf %191 : vector<32x256xf32>
    %cst_83 = arith.constant 1.000000e+00 : f32
    %193 = vector.broadcast %cst_83 : f32 to vector<32x256xf32>
    %194 = arith.addf %193, %192 : vector<32x256xf32>
    %195 = arith.mulf %189, %194 : vector<32x256xf32>
    %196 = arith.truncf %195 : vector<32x256xf32> to vector<32x256xbf16>
    %c0_84 = arith.constant 0 : index
    %c0_85 = arith.constant 0 : index
    %197 = vector.load %arg20[%c0_84, %c0_85] : memref<256x256xbf16, #tpu.memory_space<vmem>>, vector<256x256xbf16>
    %cst_86 = arith.constant dense<0.000000e+00> : vector<32x256xf32>
    %198 = tpu.matmul %196, %197, %cst_86 {dimension_numbers = #tpu.dot_dimension_numbers<[1], [0], [0], [1], [0, 0, 1, 1], [], []>} : vector<32x256xbf16>, vector<256x256xbf16>, vector<32x256xf32> -> vector<32x256xf32>
    %c0_87 = arith.constant 0 : index
    %c0_88 = arith.constant 0 : index
    %199 = vector.load %arg22[%c0_87, %c0_88] : memref<1x256xf32, #tpu.memory_space<vmem>>, vector<1x256xf32>
    %200 = vector.broadcast %199 : vector<1x256xf32> to vector<32x256xf32>
    %201 = arith.mulf %198, %200 : vector<32x256xf32>
    %cst_89 = arith.constant dense<0.000000e+00> : vector<32xf32>
    %202 = vector.multi_reduction <add>, %201, %cst_89 [1] : vector<32x256xf32> to vector<32xf32>
    %203 = vector.shape_cast %202 : vector<32xf32> to vector<32x1xf32>
    %c0_90 = arith.constant 0 : index
    %c0_91 = arith.constant 0 : index
    %204 = vector.load %arg21[%c0_90, %c0_91] : memref<1x256xf32, #tpu.memory_space<vmem>>, vector<1x256xf32>
    %cst_92 = arith.constant dense<0.000000e+00> : vector<1x32xf32>
    %205 = tpu.matmul %204, %198, %cst_92 {dimension_numbers = #tpu.dot_dimension_numbers<[1], [1], [0], [0], [0, 0, 1, 0], [], []>} : vector<1x256xf32>, vector<32x256xf32>, vector<1x32xf32> -> vector<1x32xf32>
    %206 = vector.broadcast %203 : vector<32x1xf32> to vector<32x32xf32>
    %207 = vector.broadcast %205 : vector<1x32xf32> to vector<32x32xf32>
    %208 = arith.addf %206, %207 : vector<32x32xf32>
    %cst_93 = arith.constant 2.000000e-01 : f32
    %209 = vector.broadcast %cst_93 : f32 to vector<32x32xf32>
    %210 = arith.mulf %209, %208 : vector<32x32xf32>
    %211 = arith.maximumf %208, %210 : vector<32x32xf32>
    %212 = arith.addf %211, %5 : vector<32x32xf32>
    %cst_94 = arith.constant dense<0xFF800000> : vector<32xf32>
    %213 = vector.multi_reduction <maximumf>, %212, %cst_94 [1] : vector<32x32xf32> to vector<32xf32>
    %214 = vector.shape_cast %213 : vector<32xf32> to vector<32x1xf32>
    %215 = vector.broadcast %214 : vector<32x1xf32> to vector<32x32xf32>
    %216 = arith.subf %212, %215 : vector<32x32xf32>
    %217 = math.exp %216 : vector<32x32xf32>
    %218 = arith.mulf %217, %0 : vector<32x32xf32>
    %cst_95 = arith.constant dense<0.000000e+00> : vector<32xf32>
    %219 = vector.multi_reduction <add>, %218, %cst_95 [1] : vector<32x32xf32> to vector<32xf32>
    %220 = vector.shape_cast %219 : vector<32xf32> to vector<32x1xf32>
    %221 = tpu.reciprocal %220 {approx = true} : vector<32x1xf32> -> vector<32x1xf32>
    %222 = vector.broadcast %221 : vector<32x1xf32> to vector<32x32xf32>
    %223 = arith.mulf %218, %222 : vector<32x32xf32>
    %224 = arith.truncf %223 : vector<32x32xf32> to vector<32x32xbf16>
    %225 = arith.truncf %198 : vector<32x256xf32> to vector<32x256xbf16>
    %cst_96 = arith.constant dense<0.000000e+00> : vector<32x256xf32>
    %226 = tpu.matmul %224, %225, %cst_96 {dimension_numbers = #tpu.dot_dimension_numbers<[1], [0], [0], [1], [0, 0, 1, 1], [], []>} : vector<32x32xbf16>, vector<32x256xbf16>, vector<32x256xf32> -> vector<32x256xf32>
    %c0_97 = arith.constant 0 : index
    %c0_98 = arith.constant 0 : index
    %227 = vector.load %arg23[%c0_97, %c0_98] : memref<1x256xf32, #tpu.memory_space<vmem>>, vector<1x256xf32>
    %228 = vector.broadcast %227 : vector<1x256xf32> to vector<32x256xf32>
    %229 = arith.addf %226, %228 : vector<32x256xf32>
    %c0_99 = arith.constant 0 : index
    %c0_100 = arith.constant 0 : index
    %230 = vector.load %arg28[%c0_99, %c0_100] : memref<1x256xf32, #tpu.memory_space<vmem>>, vector<1x256xf32>
    %231 = vector.broadcast %230 : vector<1x256xf32> to vector<32x256xf32>
    %232 = arith.mulf %229, %231 : vector<32x256xf32>
    %c0_101 = arith.constant 0 : index
    %c0_102 = arith.constant 0 : index
    %233 = vector.load %arg29[%c0_101, %c0_102] : memref<1x256xf32, #tpu.memory_space<vmem>>, vector<1x256xf32>
    %234 = vector.broadcast %233 : vector<1x256xf32> to vector<32x256xf32>
    %235 = arith.addf %232, %234 : vector<32x256xf32>
    %cst_103 = arith.constant 5.000000e-01 : f32
    %236 = vector.broadcast %cst_103 : f32 to vector<32x256xf32>
    %237 = arith.mulf %236, %235 : vector<32x256xf32>
    %cst_104 = arith.constant 0.707106769 : f32
    %238 = vector.broadcast %cst_104 : f32 to vector<32x256xf32>
    %239 = arith.mulf %235, %238 : vector<32x256xf32>
    %240 = math.erf %239 : vector<32x256xf32>
    %cst_105 = arith.constant 1.000000e+00 : f32
    %241 = vector.broadcast %cst_105 : f32 to vector<32x256xf32>
    %242 = arith.addf %241, %240 : vector<32x256xf32>
    %243 = arith.mulf %237, %242 : vector<32x256xf32>
    %c0_106 = arith.constant 0 : index
    %c0_107 = arith.constant 0 : index
    %244 = vector.load %arg3[%c0_106, %c0_107] : memref<32x2xf32, #tpu.memory_space<vmem>>, vector<32x2xf32>
    %245 = vector.extract_strided_slice %244 {offsets = [0, 0], sizes = [32, 1], strides = [1, 1]} : vector<32x2xf32> to vector<32x1xf32>
    %cst_108 = arith.constant 0.000000e+00 : f32
    %246 = vector.broadcast %cst_108 : f32 to vector<32x1xf32>
    %247 = arith.cmpf ogt, %245, %246 : vector<32x1xf32>
    %cst_109 = arith.constant -1.000000e+30 : f32
    %248 = vector.shape_cast %247 : vector<32x1xi1> to vector<32x1xi1>
    %249 = vector.broadcast %248 : vector<32x1xi1> to vector<32x256xi1>
    %250 = vector.broadcast %cst_109 : f32 to vector<32x256xf32>
    %251 = arith.select %249, %243, %250 : vector<32x256xi1>, vector<32x256xf32>
    %cst_110 = arith.constant dense<0xFF800000> : vector<256xf32>
    %252 = vector.multi_reduction <maximumf>, %251, %cst_110 [0] : vector<32x256xf32> to vector<256xf32>
    %253 = vector.shape_cast %252 : vector<256xf32> to vector<1x256xf32>
    %254 = vector.extract_strided_slice %244 {offsets = [0, 1], sizes = [32, 1], strides = [1, 1]} : vector<32x2xf32> to vector<32x1xf32>
    %cst_111 = arith.constant 0.000000e+00 : f32
    %255 = vector.broadcast %cst_111 : f32 to vector<32x1xf32>
    %256 = arith.cmpf ogt, %254, %255 : vector<32x1xf32>
    %cst_112 = arith.constant -1.000000e+30 : f32
    %257 = vector.shape_cast %256 : vector<32x1xi1> to vector<32x1xi1>
    %258 = vector.broadcast %257 : vector<32x1xi1> to vector<32x256xi1>
    %259 = vector.broadcast %cst_112 : f32 to vector<32x256xf32>
    %260 = arith.select %258, %243, %259 : vector<32x256xi1>, vector<32x256xf32>
    %cst_113 = arith.constant dense<0xFF800000> : vector<256xf32>
    %261 = vector.multi_reduction <maximumf>, %260, %cst_113 [0] : vector<32x256xf32> to vector<256xf32>
    %262 = vector.shape_cast %261 : vector<256xf32> to vector<1x256xf32>
    %263 = tpu.concatenate %253, %262 in 0 : vector<1x256xf32>, vector<1x256xf32> -> vector<2x256xf32>
    %c0_114 = arith.constant 0 : index
    %c0_115 = arith.constant 0 : index
    %264 = vector.load %arg30[%c0_114, %c0_115] : memref<256x10xf32, #tpu.memory_space<vmem>>, vector<256x10xf32>
    %cst_116 = arith.constant dense<0.000000e+00> : vector<2x10xf32>
    %265 = tpu.matmul %263, %264, %cst_116 {dimension_numbers = #tpu.dot_dimension_numbers<[1], [0], [0], [1], [0, 0, 1, 1], [], []>} : vector<2x256xf32>, vector<256x10xf32>, vector<2x10xf32> -> vector<2x10xf32>
    %c0_117 = arith.constant 0 : index
    %c0_118 = arith.constant 0 : index
    %266 = vector.load %arg31[%c0_117, %c0_118] : memref<1x10xf32, #tpu.memory_space<vmem>>, vector<1x10xf32>
    %267 = vector.broadcast %266 : vector<1x10xf32> to vector<2x10xf32>
    %268 = arith.addf %265, %267 : vector<2x10xf32>
    %c0_119 = arith.constant 0 : index
    %c0_120 = arith.constant 0 : index
    %269 = vector.load %arg32[%c0_119, %c0_120] : memref<10x2xf32, #tpu.memory_space<vmem>>, vector<10x2xf32>
    %cst_121 = arith.constant dense<0.000000e+00> : vector<2x2xf32>
    %270 = tpu.matmul %268, %269, %cst_121 {dimension_numbers = #tpu.dot_dimension_numbers<[1], [0], [0], [1], [0, 0, 1, 1], [], []>} : vector<2x10xf32>, vector<10x2xf32>, vector<2x2xf32> -> vector<2x2xf32>
    %c0_122 = arith.constant 0 : index
    %c0_123 = arith.constant 0 : index
    %271 = vector.load %arg33[%c0_122, %c0_123] : memref<1x2xf32, #tpu.memory_space<vmem>>, vector<1x2xf32>
    %272 = vector.broadcast %271 : vector<1x2xf32> to vector<2x2xf32>
    %273 = arith.addf %270, %272 : vector<2x2xf32>
    %c0_124 = arith.constant 0 : index
    %c0_125 = arith.constant 0 : index
    %274 = vector.load %arg34[%c0_124, %c0_125] : memref<2x2xf32, #tpu.memory_space<vmem>>, vector<2x2xf32>
    tpu.vector_store %arg34[%c0_124, %c0_125], %273 {strides = array<i32>} : memref<2x2xf32, #tpu.memory_space<vmem>>, vector<2x2xf32>,
    return
  }
  func.func @transform_0(%arg0: i32) -> (i32, i32) {
    %c0_i32 = arith.constant 0 : i32
    %c0_i32_0 = arith.constant 0 : i32
    %c0_i32_1 = arith.constant 0 : i32
    return %c0_i32, %c0_i32_0 : i32, i32
  }
  func.func @transform_1(%arg0: i32) -> (i32, i32) {
    %c0_i32 = arith.constant 0 : i32
    %c0_i32_0 = arith.constant 0 : i32
    %c0_i32_1 = arith.constant 0 : i32
    return %c0_i32, %c0_i32_0 : i32, i32
  }
  func.func @transform_2(%arg0: i32) -> (i32, i32) {
    %c0_i32 = arith.constant 0 : i32
    %c0_i32_0 = arith.constant 0 : i32
    %c0_i32_1 = arith.constant 0 : i32
    return %c0_i32, %c0_i32_0 : i32, i32
  }
  func.func @transform_3(%arg0: i32) -> (i32, i32) {
    %c0_i32 = arith.constant 0 : i32
    %c0_i32_0 = arith.constant 0 : i32
    %c0_i32_1 = arith.constant 0 : i32
    return %c0_i32, %c0_i32_0 : i32, i32
  }
  func.func @transform_4(%arg0: i32) -> (i32, i32) {
    %c0_i32 = arith.constant 0 : i32
    %c0_i32_0 = arith.constant 0 : i32
    %c0_i32_1 = arith.constant 0 : i32
    return %c0_i32, %c0_i32_0 : i32, i32
  }
  func.func @transform_5(%arg0: i32) -> (i32, i32) {
    %c0_i32 = arith.constant 0 : i32
    %c0_i32_0 = arith.constant 0 : i32
    %c0_i32_1 = arith.constant 0 : i32
    return %c0_i32, %c0_i32_0 : i32, i32
  }
  func.func @transform_6(%arg0: i32) -> (i32, i32) {
    %c0_i32 = arith.constant 0 : i32
    %c0_i32_0 = arith.constant 0 : i32
    %c0_i32_1 = arith.constant 0 : i32
    return %c0_i32, %c0_i32_0 : i32, i32
  }
  func.func @transform_7(%arg0: i32) -> (i32, i32) {
    %c0_i32 = arith.constant 0 : i32
    %c0_i32_0 = arith.constant 0 : i32
    %c0_i32_1 = arith.constant 0 : i32
    return %c0_i32, %c0_i32_0 : i32, i32
  }
  func.func @transform_8(%arg0: i32) -> (i32, i32) {
    %c0_i32 = arith.constant 0 : i32
    %c0_i32_0 = arith.constant 0 : i32
    %c0_i32_1 = arith.constant 0 : i32
    return %c0_i32, %c0_i32_0 : i32, i32
  }
  func.func @transform_9(%arg0: i32) -> (i32, i32) {
    %c0_i32 = arith.constant 0 : i32
    %c0_i32_0 = arith.constant 0 : i32
    %c0_i32_1 = arith.constant 0 : i32
    return %c0_i32, %c0_i32_0 : i32, i32
  }
  func.func @transform_10(%arg0: i32) -> (i32, i32) {
    %c0_i32 = arith.constant 0 : i32
    %c0_i32_0 = arith.constant 0 : i32
    %c0_i32_1 = arith.constant 0 : i32
    return %c0_i32, %c0_i32_0 : i32, i32
  }
  func.func @transform_11(%arg0: i32) -> (i32, i32) {
    %c0_i32 = arith.constant 0 : i32
    %c0_i32_0 = arith.constant 0 : i32
    %c0_i32_1 = arith.constant 0 : i32
    return %c0_i32, %c0_i32_0 : i32, i32
  }
  func.func @transform_12(%arg0: i32) -> (i32, i32) {
    %c0_i32 = arith.constant 0 : i32
    %c0_i32_0 = arith.constant 0 : i32
    %c0_i32_1 = arith.constant 0 : i32
    return %c0_i32, %c0_i32_0 : i32, i32
  }
  func.func @transform_13(%arg0: i32) -> (i32, i32) {
    %c0_i32 = arith.constant 0 : i32
    %c0_i32_0 = arith.constant 0 : i32
    %c0_i32_1 = arith.constant 0 : i32
    return %c0_i32, %c0_i32_0 : i32, i32
  }
  func.func @transform_14(%arg0: i32) -> (i32, i32) {
    %c0_i32 = arith.constant 0 : i32
    %c0_i32_0 = arith.constant 0 : i32
    %c0_i32_1 = arith.constant 0 : i32
    return %c0_i32, %c0_i32_0 : i32, i32
  }
  func.func @transform_15(%arg0: i32) -> (i32, i32) {
    %c0_i32 = arith.constant 0 : i32
    %c0_i32_0 = arith.constant 0 : i32
    %c0_i32_1 = arith.constant 0 : i32
    return %c0_i32, %c0_i32_0 : i32, i32
  }
  func.func @transform_16(%arg0: i32) -> (i32, i32) {
    %c0_i32 = arith.constant 0 : i32
    %c0_i32_0 = arith.constant 0 : i32
    %c0_i32_1 = arith.constant 0 : i32
    return %c0_i32, %c0_i32_0 : i32, i32
  }
  func.func @transform_17(%arg0: i32) -> (i32, i32) {
    %c0_i32 = arith.constant 0 : i32
    %c0_i32_0 = arith.constant 0 : i32
    %c0_i32_1 = arith.constant 0 : i32
    return %c0_i32, %c0_i32_0 : i32, i32
  }
  func.func @transform_18(%arg0: i32) -> (i32, i32) {
    %c0_i32 = arith.constant 0 : i32
    %c0_i32_0 = arith.constant 0 : i32
    %c0_i32_1 = arith.constant 0 : i32
    return %c0_i32, %c0_i32_0 : i32, i32
  }
  func.func @transform_19(%arg0: i32) -> (i32, i32) {
    %c0_i32 = arith.constant 0 : i32
    %c0_i32_0 = arith.constant 0 : i32
    %c0_i32_1 = arith.constant 0 : i32
    return %c0_i32, %c0_i32_0 : i32, i32
  }
  func.func @transform_20(%arg0: i32) -> (i32, i32) {
    %c0_i32 = arith.constant 0 : i32
    %c0_i32_0 = arith.constant 0 : i32
    %c0_i32_1 = arith.constant 0 : i32
    return %c0_i32, %c0_i32_0 : i32, i32
  }
  func.func @transform_21(%arg0: i32) -> (i32, i32) {
    %c0_i32 = arith.constant 0 : i32
    %c0_i32_0 = arith.constant 0 : i32
    %c0_i32_1 = arith.constant 0 : i32
    return %c0_i32, %c0_i32_0 : i32, i32
  }
  func.func @transform_22(%arg0: i32) -> (i32, i32) {
    %c0_i32 = arith.constant 0 : i32
    %c0_i32_0 = arith.constant 0 : i32
    %c0_i32_1 = arith.constant 0 : i32
    return %c0_i32, %c0_i32_0 : i32, i32
  }
  func.func @transform_23(%arg0: i32) -> (i32, i32) {
    %c0_i32 = arith.constant 0 : i32
    %c0_i32_0 = arith.constant 0 : i32
    %c0_i32_1 = arith.constant 0 : i32
    return %c0_i32, %c0_i32_0 : i32, i32
  }
  func.func @transform_24(%arg0: i32) -> (i32, i32) {
    %c0_i32 = arith.constant 0 : i32
    %c0_i32_0 = arith.constant 0 : i32
    %c0_i32_1 = arith.constant 0 : i32
    return %c0_i32, %c0_i32_0 : i32, i32
  }
  func.func @transform_25(%arg0: i32) -> (i32, i32) {
    %c0_i32 = arith.constant 0 : i32
    %c0_i32_0 = arith.constant 0 : i32
    %c0_i32_1 = arith.constant 0 : i32
    return %c0_i32, %c0_i32_0 : i32, i32
  }
  func.func @transform_26(%arg0: i32) -> (i32, i32) {
    %c0_i32 = arith.constant 0 : i32
    %c0_i32_0 = arith.constant 0 : i32
    %c0_i32_1 = arith.constant 0 : i32
    return %c0_i32, %c0_i32_0 : i32, i32
  }
  func.func @transform_27(%arg0: i32) -> (i32, i32) {
    %c0_i32 = arith.constant 0 : i32
    %c0_i32_0 = arith.constant 0 : i32
    %c0_i32_1 = arith.constant 0 : i32
    return %c0_i32, %c0_i32_0 : i32, i32
  }
  func.func @transform_28(%arg0: i32) -> (i32, i32) {
    %c0_i32 = arith.constant 0 : i32
    %c0_i32_0 = arith.constant 0 : i32
    %c0_i32_1 = arith.constant 0 : i32
    return %c0_i32, %c0_i32_0 : i32, i32
  }
  func.func @transform_29(%arg0: i32) -> (i32, i32) {
    %c0_i32 = arith.constant 0 : i32
    %c0_i32_0 = arith.constant 0 : i32
    %c0_i32_1 = arith.constant 0 : i32
    return %c0_i32, %c0_i32_0 : i32, i32
  }
  func.func @transform_30(%arg0: i32) -> (i32, i32) {
    %c0_i32 = arith.constant 0 : i32
    %c0_i32_0 = arith.constant 0 : i32
    %c0_i32_1 = arith.constant 0 : i32
    return %c0_i32, %c0_i32_0 : i32, i32
  }
  func.func @transform_31(%arg0: i32) -> (i32, i32) {
    %c0_i32 = arith.constant 0 : i32
    %c0_i32_0 = arith.constant 0 : i32
    %c0_i32_1 = arith.constant 0 : i32
    return %c0_i32, %c0_i32_0 : i32, i32
  }
  func.func @transform_32(%arg0: i32) -> (i32, i32) {
    %c0_i32 = arith.constant 0 : i32
    %c0_i32_0 = arith.constant 0 : i32
    %c0_i32_1 = arith.constant 0 : i32
    return %c0_i32, %c0_i32_0 : i32, i32
  }
  func.func @transform_33(%arg0: i32) -> (i32, i32) {
    %c0_i32 = arith.constant 0 : i32
    %c0_i32_0 = arith.constant 0 : i32
    %c0_i32_1 = arith.constant 0 : i32
    return %c0_i32, %c0_i32_0 : i32, i32
  }
}

</mosaic_0001>

<bundles_post_ra>
// kernel: tpu_custom_call.1
= control target key start
LH: loop header
LB: loop body
LE: loop exit
PB: predicated region body
PF: predicated region fallthrough
CT: control target
= control target key end

     0   :  { %s3836_s6 = smov 1   ;;  %s3837_s10 = smov 2   ;;  %s4518_s0 = inlined_call_operand.smem [shape: u32[34], index: -1, kind: input, shape index: {}] }
   0x1   :  { %s3904_s5 = sld [smem:[%s4518_s0]]   ;;  %s3838_s14 = smov 3  }
   0x2   :  { %s3909_s9 = sld [smem:[%s4518_s0 + %s3836_s6]]   ;;  %s3839_s18 = smov 4  }
   0x3   :  { %s3914_s13 = sld [smem:[%s4518_s0 + %s3837_s10]]   ;;  %s3840_s22 = smov 5  }
   0x4   :  { %s3919_s17 = sld [smem:[%s4518_s0 + %s3838_s14]]   ;;  %s3841_s26 = smov 6  }
   0x5   :  { %s3924_s21 = sld [smem:[%s4518_s0 + %s3839_s18]]   ;;  %s3842_s30 = smov 7  }
   0x6   :  { %s3929_s25 = sld [smem:[%s4518_s0 + %s3840_s22]]   ;;  %s3843_s4 = smov 8  }
   0x7   :  { %4528 = sst [smem:[#allocation40_spill]] %s3904_s5  ;;  %s3844_s10 = smov 9  }
   0x8   :  { %4529 = sst [smem:[#allocation41_spill]] %s3909_s9  ;;  %s3845_s15 = smov 10  }
   0x9   :  { %4530 = sst [smem:[#allocation42_spill]] %s3914_s13  ;;  %s3846_s20 = smov 11  }
   0xa   :  { %s3934_s29 = sld [smem:[%s4518_s0 + %s3841_s26]]   ;;  %s3847_s26 = smov 12  }
   0xb   :  { %4531 = sst [smem:[#allocation43_spill]] %s3924_s21  ;;  %s3848_s1 = smov 13  }
   0xc   :  { %s3939_s3 = sld [smem:[%s4518_s0 + %s3842_s30]]   ;;  %s3849_s7 = smov 14  }
   0xd   :  { %s3944_s8 = sld [smem:[%s4518_s0 + %s3843_s4]]   ;;  %s3851_s22 = smov 16  }
   0xe   :  { %s3949_s14 = sld [smem:[%s4518_s0 + %s3844_s10]]   ;;  %s3852_s28 = smov 17  }
   0xf   :  { %s3954_s19 = sld [smem:[%s4518_s0 + %s3845_s15]]   ;;  %s3850_s15 = smov 15  }
  0x10   :  { %s3959_s24 = sld [smem:[%s4518_s0 + %s3846_s20]]  }
  0x11   :  { %s3964_s30 = sld [smem:[%s4518_s0 + %s3847_s26]]  }
  0x12   :  { %s3969_s6 = sld [smem:[%s4518_s0 + %s3848_s1]]  }
  0x13   :  { %s3974_s12 = sld [smem:[%s4518_s0 + %s3849_s7]]   ;;  %s3853_s7 = smov 18  }
  0x14   :  { %s3979_s20 = sld [smem:[%s4518_s0 + %s3850_s15]]   ;;  %s3854_s15 = smov 19  }
  0x15   :  { %s3984_s27 = sld [smem:[%s4518_s0 + %s3851_s22]]   ;;  %s3855_s22 = smov 20  }
  0x16   :  { %s3989_s4 = sld [smem:[%s4518_s0 + %s3852_s28]]   ;;  %s3856_s28 = smov 21  }
  0x17   :  { %s3994_s13 = sld [smem:[%s4518_s0 + %s3853_s7]]   ;;  %s3857_s7 = smov 22  }
  0x18   :  { %s4004_s9 = sld [smem:[%s4518_s0 + %s3855_s22]]   ;;  %s3859_s22 = smov 24  }
  0x19   :  { %s4009_s21 = sld [smem:[%s4518_s0 + %s3856_s28]]   ;;  %s3860_s28 = smov 25  }
  0x1a   :  { %4532 = sst [smem:[#allocation44_spill]] %s3979_s20 }
  0x1b   :  { %s3999_s20 = sld [smem:[%s4518_s0 + %s3854_s15]]   ;;  %s3858_s15 = smov 23  }
  0x1c   :  { %4533 = sst [smem:[#allocation45_spill]] %s3989_s4 }
  0x1d   :  { %s4014_s5 = sld [smem:[%s4518_s0 + %s3857_s7]]   ;;  %s3861_s7 = smov 26  }
  0x1e   :  { %4535 = sst [smem:[#allocation47_spill]] %s4004_s9 }
  0x1f   :  { %s4024_s9 = sld [smem:[%s4518_s0 + %s3859_s22]]   ;;  %s3863_s22 = smov 28  }
  0x20   :  { %s4029_s4 = sld [smem:[%s4518_s0 + %s3860_s28]]   ;;  %s3864_s28 = smov 29  }
  0x21   :  { %4534 = sst [smem:[#allocation46_spill]] %s3999_s20 }
  0x22   :  { %s4019_s20 = sld [smem:[%s4518_s0 + %s3858_s15]]   ;;  %s3862_s15 = smov 27  }
  0x23   :  { %4536 = sst [smem:[#allocation48_spill]] %s4014_s5 }
  0x24   :  { %s4034_s5 = sld [smem:[%s4518_s0 + %s3861_s7]]   ;;  %s3865_s7 = smov 30  }
  0x25   :  { %4538 = sst [smem:[#allocation50_spill]] %s4024_s9 }
  0x26   :  { %4539 = sst [smem:[#allocation51_spill]] %s4029_s4 }
  0x27   :  { %s4044_s9 = sld [smem:[%s4518_s0 + %s3863_s22]]   ;;  %s3867_s22 = smov 32  }
  0x28   :  { %4537 = sst [smem:[#allocation49_spill]] %s4019_s20 }
  0x29   :  { %s4039_s20 = sld [smem:[%s4518_s0 + %s3862_s15]]   ;;  %s3866_s15 = smov 31  }
  0x2a   :  { %4540 = sst [smem:[#allocation52_spill]] %s4034_s5 }
  0x2b   :  { %s4049_s4 = sld [smem:[%s4518_s0 + %s3864_s28]]   ;;  %s3868_s28 = smov 33  }
  0x2c   :  { %s4054_s5 = sld [smem:[%s4518_s0 + %s3865_s7]]  }
  0x2d   :  { %4542 = sst [smem:[#allocation54_spill]] %s4044_s9 }
  0x2e   :  { %s4064_s9 = sld [smem:[%s4518_s0 + %s3867_s22]]  }
  0x2f   :  { %4541 = sst [smem:[#allocation53_spill]] %s4039_s20 }
  0x30   :  { %s4059_s20 = sld [smem:[%s4518_s0 + %s3866_s15]]  }
  0x31   :  { %4543 = sst [smem:[#allocation55_spill]] %s4049_s4 }
  0x32   :  { %s4069_s4 = sld [smem:[%s4518_s0 + %s3868_s28]]  }
  0x33   :  { %72 = vsyncpa [#allocation3], 0 }
  0x34   :  { %73 = vsyncpa [#allocation6], 0 }
  0x35   :  { %74 = vsyncpa [#allocation9], 0 }
  0x36   :  { %75 = vsyncpa [#allocation12], 0 }
  0x37   :  { %76 = vsyncpa [#allocation15], 0 }
  0x38   :  { %77 = vsyncpa [#allocation18], 0 }
  0x39   :  { %78 = vsyncpa [#allocation21], 0 }
  0x3a   :  { %79 = vsyncpa [#allocation24], 0 }
  0x3b   :  { %80 = vsyncpa [#allocation27], 0 }
  0x3c   :  { %81 = vsyncpa [#allocation4], 0  ;;  %s3869_s7 = smov [#allocation5]   ;;  %s3870_s11 = smov [#allocation8]  }
  0x3d   :  { %s106_s10 = sshll.u32 %s3869_s7, 4  ;;  %s125_s15 = sshll.u32 %s3870_s11, 4  ;;  %s107_s10 = int_to_ptr.vmem [resolvable:$true] %s106_s10  ;;  %s4071_s15 = int_to_ptr.vmem [resolvable:$true] %s125_s15 }
  0x3e   :  { %s3420_s0 = scalar_lea.hbm %s3929_s25, 16 }
  0x3f   :  { %p3421_p0 = scmp.ne.s32.totalorder %s3929_s25, %s3420_s0  ;;  %p3424_p1 = scmp.lt.u32.totalorder %s3420_s0, %s3929_s25 }
  0x41   :  { %p3426_p2 = pnand %p3424_p1, %p3421_p0 }
  0x43   :  { %3429 = shalt.err (!%p3426_p2)
}
  0x44   :  { %s3430_s16 = scalar_lea.vmem %s107_s10, 16  ;;  %s3434_s18 = scalar_lea.vmem %s107_s10, 32 }
  0x45   :  { %p3431_p3 = scmp.ne.s32.totalorder %s107_s10, %s3430_s16  ;;  %p3435_p4 = scmp.lt.s32.totalorder %s107_s10, %s107_s10 }
  0x46   :  { %p3436_p5 = scmp.lt.s32.totalorder %s3434_s18, %s3430_s16 }
  0x48   :  { %p3437_p6 = por %p3436_p5, %p3435_p4 }
  0x4a   :  { %p3438_p7 = pnand %p3437_p6, %p3431_p3 }
  0x4c   :  { %3441 = shalt.err (!%p3438_p7)
}
  0x4d   :  { %109 = dma.hbm_to_vmem [thread:$0]  %s3929_s25, 16, %s107_s10, [#allocation6]  }
  0x4e   :  { %s3442_s22 = scalar_lea.hbm %s3939_s3, 512 }
  0x4f   :  { %p3443_p8 = scmp.ne.s32.totalorder %s3939_s3, %s3442_s22  ;;  %p3446_p9 = scmp.lt.u32.totalorder %s3442_s22, %s3939_s3 }
  0x51   :  { %p3448_p10 = pnand %p3446_p9, %p3443_p8 }
  0x53   :  { %3451 = shalt.err (!%p3448_p10)
}
  0x54   :  { %s3452_s23 = scalar_lea.vmem %s4071_s15, 512  ;;  %p3457_p12 = scmp.lt.s32.totalorder %s4071_s15, %s4071_s15 }
  0x55   :  { %p3453_p11 = scmp.ne.s32.totalorder %s4071_s15, %s3452_s23  ;;  %p3458_p13 = scmp.lt.s32.totalorder %s3452_s23, %s3452_s23 }
  0x57   :  { %p3459_p0 = por %p3458_p13, %p3457_p12 }
  0x59   :  { %p3460_p1 = pnand %p3459_p0, %p3453_p11 }
  0x5b   :  { %3463 = shalt.err (!%p3460_p1)
}
  0x5c   :  { %s3871_s26 = smov 64   ;;  %s3872_s25 = smov 4  }
  0x5d   :  { %131 = dma.hbm_to_vmem [thread:$0]  %s3939_s3, 512, %s4071_s15, [#allocation9], %s3871_s26, %s3871_s26, %s3872_s25  }
  0x5e   :  { %s3873_s28 = smov [#allocation11]   ;;  %s3874_s2 = smov [#allocation14]  }
  0x5f   :  { %s148_s1 = sshll.u32 %s3873_s28, 4  ;;  %s167_s7 = sshll.u32 %s3874_s2, 4  ;;  %s149_s1 = int_to_ptr.vmem [resolvable:$true] %s148_s1  ;;  %s4089_s7 = int_to_ptr.vmem [resolvable:$true] %s167_s7 }
  0x60   :  { %s3464_s10 = scalar_lea.hbm %s3949_s14, 16 }
  0x61   :  { %p3465_p2 = scmp.ne.s32.totalorder %s3949_s14, %s3464_s10  ;;  %p3468_p3 = scmp.lt.u32.totalorder %s3464_s10, %s3949_s14 }
  0x63   :  { %p3470_p4 = pnand %p3468_p3, %p3465_p2 }
  0x65   :  { %3473 = shalt.err (!%p3470_p4)
}
  0x66   :  { %s3474_s11 = scalar_lea.vmem %s149_s1, 16  ;;  %s3478_s0 = scalar_lea.vmem %s149_s1, 32 }
  0x67   :  { %p3475_p5 = scmp.ne.s32.totalorder %s149_s1, %s3474_s11  ;;  %p3479_p6 = scmp.lt.s32.totalorder %s149_s1, %s149_s1 }
  0x68   :  { %p3480_p7 = scmp.lt.s32.totalorder %s3478_s0, %s3474_s11 }
  0x6a   :  { %p3481_p8 = por %p3480_p7, %p3479_p6 }
  0x6c   :  { %p3482_p9 = pnand %p3481_p8, %p3475_p5 }
  0x6e   :  { %3485 = shalt.err (!%p3482_p9)
}
  0x6f   :  { %151 = dma.hbm_to_vmem [thread:$0]  %s3949_s14, 16, %s149_s1, [#allocation12]  }
  0x70   :  { %s3486_s3 = scalar_lea.hbm %s3959_s24, 512 }
  0x71   :  { %p3487_p10 = scmp.ne.s32.totalorder %s3959_s24, %s3486_s3  ;;  %p3490_p11 = scmp.lt.u32.totalorder %s3486_s3, %s3959_s24 }
  0x73   :  { %p3492_p12 = pnand %p3490_p11, %p3487_p10 }
  0x75   :  { %3495 = shalt.err (!%p3492_p12)
}
  0x76   :  { %s3496_s15 = scalar_lea.vmem %s4089_s7, 512  ;;  %p3501_p0 = scmp.lt.s32.totalorder %s4089_s7, %s4089_s7 }
  0x77   :  { %p3497_p13 = scmp.ne.s32.totalorder %s4089_s7, %s3496_s15  ;;  %p3502_p1 = scmp.lt.s32.totalorder %s3496_s15, %s3496_s15 }
  0x79   :  { %p3503_p2 = por %p3502_p1, %p3501_p0 }
  0x7b   :  { %p3504_p3 = pnand %p3503_p2, %p3497_p13 }
  0x7d   :  { %3507 = shalt.err (!%p3504_p3)
}
  0x7e   :  { %173 = dma.hbm_to_vmem [thread:$0]  %s3959_s24, 512, %s4089_s7, [#allocation15], %s3871_s26, %s3871_s26, %s3872_s25  }
  0x7f   :  { %s3875_s14 = smov [#allocation17]   ;;  %s3876_s18 = smov [#allocation20]  }
  0x80   :  { %s190_s16 = sshll.u32 %s3875_s14, 4  ;;  %s212_s22 = sshll.u32 %s3876_s18, 4  ;;  %s191_s16 = int_to_ptr.vmem [resolvable:$true] %s190_s16  ;;  %s213_s22 = int_to_ptr.vmem [resolvable:$true] %s212_s22 }
  0x81   :  { %s3508_s23 = scalar_lea.hbm %s3969_s6, 16 }
  0x82   :  { %p3509_p4 = scmp.ne.s32.totalorder %s3969_s6, %s3508_s23  ;;  %p3512_p5 = scmp.lt.u32.totalorder %s3508_s23, %s3969_s6 }
  0x84   :  { %p3514_p6 = pnand %p3512_p5, %p3509_p4 }
  0x86   :  { %3517 = shalt.err (!%p3514_p6)
}
  0x87   :  { %s3518_s28 = scalar_lea.vmem %s191_s16, 16  ;;  %s3522_s1 = scalar_lea.vmem %s191_s16, 32 }
  0x88   :  { %p3519_p7 = scmp.ne.s32.totalorder %s191_s16, %s3518_s28  ;;  %p3523_p8 = scmp.lt.s32.totalorder %s191_s16, %s191_s16 }
  0x89   :  { %p3524_p9 = scmp.lt.s32.totalorder %s3522_s1, %s3518_s28 }
  0x8b   :  { %p3525_p10 = por %p3524_p9, %p3523_p8 }
  0x8d   :  { %p3526_p11 = pnand %p3525_p10, %p3519_p7 }
  0x8f   :  { %3529 = shalt.err (!%p3526_p11)
}
  0x90   :  { %193 = dma.hbm_to_vmem [thread:$0]  %s3969_s6, 16, %s191_s16, [#allocation18]  }
  0x91   :  { %s3530_s24 = scalar_lea.hbm %s3984_s27, 32 }
  0x92   :  { %p3531_p12 = scmp.ne.s32.totalorder %s3984_s27, %s3530_s24  ;;  %p3534_p13 = scmp.lt.u32.totalorder %s3530_s24, %s3984_s27 }
  0x94   :  { %p3536_p0 = pnand %p3534_p13, %p3531_p12 }
  0x96   :  { %3539 = shalt.err (!%p3536_p0)
}
  0x97   :  { %s3540_s26 = scalar_lea.vmem %s213_s22, 32  ;;  %p3545_p2 = scmp.lt.s32.totalorder %s213_s22, %s213_s22 }
  0x98   :  { %p3541_p1 = scmp.ne.s32.totalorder %s213_s22, %s3540_s26  ;;  %p3546_p3 = scmp.lt.s32.totalorder %s3540_s26, %s3540_s26 }
  0x9a   :  { %p3547_p4 = por %p3546_p3, %p3545_p2 }
  0x9c   :  { %p3548_p5 = pnand %p3547_p4, %p3541_p1 }
  0x9e   :  { %3551 = shalt.err (!%p3548_p5)
}
  0x9f   :  { %215 = dma.hbm_to_vmem [thread:$0]  %s3984_s27, 32, %s213_s22, [#allocation21]  }
  0xa0   :  { %s3877_s25 = smov [#allocation23]   ;;  %s3878_s6 = smov [#allocation26]  }
  0xa1   :  { %s232_s2 = sshll.u32 %s3877_s25, 4  ;;  %s254_s7 = sshll.u32 %s3878_s6, 4  ;;  %s233_s2 = int_to_ptr.vmem [resolvable:$true] %s232_s2  ;;  %s255_s7 = int_to_ptr.vmem [resolvable:$true] %s254_s7 }
  0xa2   :  { %s3552_s10 = scalar_lea.hbm %s3994_s13, 32 }
  0xa3   :  { %p3553_p6 = scmp.ne.s32.totalorder %s3994_s13, %s3552_s10  ;;  %p3556_p7 = scmp.lt.u32.totalorder %s3552_s10, %s3994_s13 }
  0xa5   :  { %p3558_p8 = pnand %p3556_p7, %p3553_p6 }
  0xa7   :  { %3561 = shalt.err (!%p3558_p8)
}
  0xa8   :  { %s3562_s11 = scalar_lea.vmem %s233_s2, 32  ;;  %p3567_p10 = scmp.lt.s32.totalorder %s233_s2, %s233_s2 }
  0xa9   :  { %p3563_p9 = scmp.ne.s32.totalorder %s233_s2, %s3562_s11  ;;  %p3568_p11 = scmp.lt.s32.totalorder %s3562_s11, %s3562_s11 }
  0xab   :  { %p3569_p12 = por %p3568_p11, %p3567_p10 }
  0xad   :  { %p3570_p13 = pnand %p3569_p12, %p3563_p9 }
  0xaf   :  { %3573 = shalt.err (!%p3570_p13)
}
  0xb0   :  { %235 = dma.hbm_to_vmem [thread:$0]  %s3994_s13, 32, %s233_s2, [#allocation24]  }
  0xb1   :  { %s3574_s27 = scalar_lea.hbm %s4009_s21, 32 }
  0xb2   :  { %p3575_p0 = scmp.ne.s32.totalorder %s4009_s21, %s3574_s27  ;;  %p3578_p1 = scmp.lt.u32.totalorder %s3574_s27, %s4009_s21 }
  0xb4   :  { %p3580_p2 = pnand %p3578_p1, %p3575_p0 }
  0xb6   :  { %3583 = shalt.err (!%p3580_p2)
}
  0xb7   :  { %s3584_s0 = scalar_lea.vmem %s255_s7, 32  ;;  %p3589_p4 = scmp.lt.s32.totalorder %s255_s7, %s255_s7 }
  0xb8   :  { %p3585_p3 = scmp.ne.s32.totalorder %s255_s7, %s3584_s0  ;;  %p3590_p5 = scmp.lt.s32.totalorder %s3584_s0, %s3584_s0 }
  0xba   :  { %p3591_p6 = por %p3590_p5, %p3589_p4 }
  0xbc   :  { %p3592_p7 = pnand %p3591_p6, %p3585_p3 }
  0xbe   :  { %3595 = shalt.err (!%p3592_p7)
}
  0xbf   :  { %257 = dma.hbm_to_vmem [thread:$0]  %s4009_s21, 32, %s255_s7, [#allocation27]  }
  0xc0   :  { %s3879_s3 = smov [#allocation2]   ;;  %s3880_s13 = smov [#allocation7]  }
  0xc1   :  { %s94_s15 = sshll.u32 %s3879_s3, 4  ;;  %s116_s14 = sshll.u32 %s3880_s13, 4  ;;  %s95_s15 = int_to_ptr.vmem [resolvable:$true] %s94_s15  ;;  %s117_s14 = int_to_ptr.vmem [resolvable:$true] %s116_s14 }
  0xc2   :  { %s3596_s16 = scalar_lea.hbm %s3919_s17, 32 }
  0xc3   :  { %p3597_p8 = scmp.ne.s32.totalorder %s3919_s17, %s3596_s16  ;;  %p3600_p9 = scmp.lt.u32.totalorder %s3596_s16, %s3919_s17 }
  0xc5   :  { %p3602_p10 = pnand %p3600_p9, %p3597_p8 }
  0xc7   :  { %3605 = shalt.err (!%p3602_p10)
}
  0xc8   :  { %s3606_s18 = scalar_lea.vmem %s95_s15, 32  ;;  %p3611_p12 = scmp.lt.s32.totalorder %s95_s15, %s95_s15 }
  0xc9   :  { %p3607_p11 = scmp.ne.s32.totalorder %s95_s15, %s3606_s18  ;;  %p3612_p13 = scmp.lt.s32.totalorder %s3606_s18, %s3606_s18 }
  0xcb   :  { %p3613_p0 = por %p3612_p13, %p3611_p12 }
  0xcd   :  { %p3614_p1 = pnand %p3613_p0, %p3607_p11 }
  0xcf   :  { %3617 = shalt.err (!%p3614_p1)
}
  0xd0   :  { %97 = dma.hbm_to_vmem [thread:$0]  %s3919_s17, 32, %s95_s15, [#allocation3]  }
  0xd1   :  { %s3618_s21 = scalar_lea.hbm %s3934_s29, 16 }
  0xd2   :  { %p3619_p2 = scmp.ne.s32.totalorder %s3934_s29, %s3618_s21  ;;  %p3622_p3 = scmp.lt.u32.totalorder %s3618_s21, %s3934_s29 }
  0xd4   :  { %p3624_p4 = pnand %p3622_p3, %p3619_p2 }
  0xd6   :  { %3627 = shalt.err (!%p3624_p4)
}
  0xd7   :  { %s3628_s22 = scalar_lea.vmem %s117_s14, 16  ;;  %s3632_s23 = scalar_lea.vmem %s117_s14, 32 }
  0xd8   :  { %p3629_p5 = scmp.ne.s32.totalorder %s117_s14, %s3628_s22  ;;  %p3633_p6 = scmp.lt.s32.totalorder %s117_s14, %s117_s14 }
  0xd9   :  { %p3634_p7 = scmp.lt.s32.totalorder %s3632_s23, %s3628_s22 }
  0xdb   :  { %p3635_p8 = por %p3634_p7, %p3633_p6 }
  0xdd   :  { %p3636_p9 = pnand %p3635_p8, %p3629_p5 }
  0xdf   :  { %3639 = shalt.err (!%p3636_p9)
}
  0xe0   :  { %119 = dma.hbm_to_vmem [thread:$0]  %s3934_s29, 16, %s117_s14, [#allocation6]  }
  0xe1   :  { %s3881_s28 = smov [#allocation10]   ;;  %s3882_s1 = smov [#allocation13]  }
  0xe2   :  { %s138_s17 = sshll.u32 %s3881_s28, 4  ;;  %s158_s24 = sshll.u32 %s3882_s1, 4  ;;  %s139_s17 = int_to_ptr.vmem [resolvable:$true] %s138_s17  ;;  %s159_s24 = int_to_ptr.vmem [resolvable:$true] %s158_s24 }
  0xe3   :  { %s3640_s26 = scalar_lea.hbm %s3944_s8, 16 }
  0xe4   :  { %p3641_p10 = scmp.ne.s32.totalorder %s3944_s8, %s3640_s26  ;;  %p3644_p11 = scmp.lt.u32.totalorder %s3640_s26, %s3944_s8 }
  0xe6   :  { %p3646_p12 = pnand %p3644_p11, %p3641_p10 }
  0xe8   :  { %3649 = shalt.err (!%p3646_p12)
}
  0xe9   :  { %s3650_s25 = scalar_lea.vmem %s139_s17, 16  ;;  %s3654_s2 = scalar_lea.vmem %s139_s17, 32 }
  0xea   :  { %p3651_p13 = scmp.ne.s32.totalorder %s139_s17, %s3650_s25  ;;  %p3655_p0 = scmp.lt.s32.totalorder %s139_s17, %s139_s17 }
  0xeb   :  { %p3656_p1 = scmp.lt.s32.totalorder %s3654_s2, %s3650_s25 }
  0xed   :  { %p3657_p2 = por %p3656_p1, %p3655_p0 }
  0xef   :  { %p3658_p3 = pnand %p3657_p2, %p3651_p13 }
  0xf1   :  { %3661 = shalt.err (!%p3658_p3)
}
  0xf2   :  { %141 = dma.hbm_to_vmem [thread:$0]  %s3944_s8, 16, %s139_s17, [#allocation9]  }
  0xf3   :  { %s3662_s29 = scalar_lea.hbm %s3954_s19, 16 }
  0xf4   :  { %p3663_p4 = scmp.ne.s32.totalorder %s3954_s19, %s3662_s29  ;;  %p3666_p5 = scmp.lt.u32.totalorder %s3662_s29, %s3954_s19 }
  0xf6   :  { %p3668_p6 = pnand %p3666_p5, %p3663_p4 }
  0xf8   :  { %3671 = shalt.err (!%p3668_p6)
}
  0xf9   :  { %s3672_s6 = scalar_lea.vmem %s159_s24, 16  ;;  %s3676_s7 = scalar_lea.vmem %s159_s24, 32 }
  0xfa   :  { %p3673_p7 = scmp.ne.s32.totalorder %s159_s24, %s3672_s6  ;;  %p3677_p8 = scmp.lt.s32.totalorder %s159_s24, %s159_s24 }
  0xfb   :  { %p3678_p9 = scmp.lt.s32.totalorder %s3676_s7, %s3672_s6 }
  0xfd   :  { %p3679_p10 = por %p3678_p9, %p3677_p8 }
  0xff   :  { %p3680_p11 = pnand %p3679_p10, %p3673_p7 }
 0x101   :  { %3683 = shalt.err (!%p3680_p11)
}
 0x102   :  { %161 = dma.hbm_to_vmem [thread:$0]  %s3954_s19, 16, %s159_s24, [#allocation12]  }
 0x103   :  { %s3883_s10 = smov [#allocation16]   ;;  %s3884_s11 = smov [#allocation19]  }
 0x104   :  { %s180_s8 = sshll.u32 %s3883_s10, 4  ;;  %s200_s27 = sshll.u32 %s3884_s11, 4  ;;  %s181_s8 = int_to_ptr.vmem [resolvable:$true] %s180_s8  ;;  %s201_s27 = int_to_ptr.vmem [resolvable:$true] %s200_s27 }
 0x105   :  { %s3684_s0 = scalar_lea.hbm %s3964_s30, 16 }
 0x106   :  { %p3685_p12 = scmp.ne.s32.totalorder %s3964_s30, %s3684_s0  ;;  %p3688_p13 = scmp.lt.u32.totalorder %s3684_s0, %s3964_s30 }
 0x108   :  { %p3690_p0 = pnand %p3688_p13, %p3685_p12 }
 0x10a   :  { %3693 = shalt.err (!%p3690_p0)
}
 0x10b   :  { %s3694_s3 = scalar_lea.vmem %s181_s8, 16  ;;  %s3698_s15 = scalar_lea.vmem %s181_s8, 32 }
 0x10c   :  { %p3695_p1 = scmp.ne.s32.totalorder %s181_s8, %s3694_s3  ;;  %p3699_p2 = scmp.lt.s32.totalorder %s181_s8, %s181_s8 }
 0x10d   :  { %p3700_p3 = scmp.lt.s32.totalorder %s3698_s15, %s3694_s3 }
 0x10f   :  { %p3701_p4 = por %p3700_p3, %p3699_p2 }
 0x111   :  { %p3702_p5 = pnand %p3701_p4, %p3695_p1 }
 0x113   :  { %3705 = shalt.err (!%p3702_p5)
}
 0x114   :  { %183 = dma.hbm_to_vmem [thread:$0]  %s3964_s30, 16, %s181_s8, [#allocation15]  }
 0x115   :  { %s3706_s19 = scalar_lea.hbm %s3974_s12, 16 }
 0x116   :  { %p3707_p6 = scmp.ne.s32.totalorder %s3974_s12, %s3706_s19  ;;  %p3710_p7 = scmp.lt.u32.totalorder %s3706_s19, %s3974_s12 }
 0x118   :  { %p3712_p8 = pnand %p3710_p7, %p3707_p6 }
 0x11a   :  { %3715 = shalt.err (!%p3712_p8)
}
 0x11b   :  { %s3716_s13 = scalar_lea.vmem %s201_s27, 16  ;;  %s3720_s14 = scalar_lea.vmem %s201_s27, 32 }
 0x11c   :  { %p3717_p9 = scmp.ne.s32.totalorder %s201_s27, %s3716_s13  ;;  %p3721_p10 = scmp.lt.s32.totalorder %s201_s27, %s201_s27 }
 0x11d   :  { %p3722_p11 = scmp.lt.s32.totalorder %s3720_s14, %s3716_s13 }
 0x11f   :  { %p3723_p12 = por %p3722_p11, %p3721_p10 }
 0x121   :  { %p3724_p13 = pnand %p3723_p12, %p3717_p9 }
 0x123   :  { %3727 = shalt.err (!%p3724_p13)
}
 0x124   :  { %s4544_s16 = sld [smem:[#allocation45_spill]]  ;;  %s3885_s18 = smov [#allocation22]  }
 0x125   :  { %203 = dma.hbm_to_vmem [thread:$0]  %s3974_s12, 16, %s201_s27, [#allocation18]  }
 0x126   :  { %s222_s30 = sshll.u32 %s3885_s18, 4  ;;  %s3886_s21 = smov [#allocation25]   ;;  %s223_s30 = int_to_ptr.vmem [resolvable:$true] %s222_s30 }
 0x127   :  { %s244_s22 = sshll.u32 %s3886_s21, 4  ;;  %s245_s22 = int_to_ptr.vmem [resolvable:$true] %s244_s22 }
 0x12a   :  { %s3728_s23 = scalar_lea.hbm %s4544_s16, 32 }
 0x12b   :  { %p3729_p0 = scmp.ne.s32.totalorder %s4544_s16, %s3728_s23  ;;  %p3732_p1 = scmp.lt.u32.totalorder %s3728_s23, %s4544_s16 }
 0x12d   :  { %p3734_p2 = pnand %p3732_p1, %p3729_p0 }
 0x12f   :  { %3737 = shalt.err (!%p3734_p2)
}
 0x130   :  { %s3738_s28 = scalar_lea.vmem %s223_s30, 32  ;;  %p3743_p4 = scmp.lt.s32.totalorder %s223_s30, %s223_s30 }
 0x131   :  { %p3739_p3 = scmp.ne.s32.totalorder %s223_s30, %s3738_s28  ;;  %p3744_p5 = scmp.lt.s32.totalorder %s3738_s28, %s3738_s28 }
 0x133   :  { %p3745_p6 = por %p3744_p5, %p3743_p4 }
 0x135   :  { %p3746_p7 = pnand %p3745_p6, %p3739_p3 }
 0x137   :  { %3749 = shalt.err (!%p3746_p7)
}
 0x138   :  { %s4545_s12 = sld [smem:[#allocation47_spill]] }
 0x139   :  { %225 = dma.hbm_to_vmem [thread:$0]  %s4544_s16, 32, %s223_s30, [#allocation21]  }
 0x13e   :  { %s3750_s17 = scalar_lea.hbm %s4545_s12, 32 }
 0x13f   :  { %p3751_p8 = scmp.ne.s32.totalorder %s4545_s12, %s3750_s17  ;;  %p3754_p9 = scmp.lt.u32.totalorder %s3750_s17, %s4545_s12 }
 0x141   :  { %p3756_p10 = pnand %p3754_p9, %p3751_p8 }
 0x143   :  { %3759 = shalt.err (!%p3756_p10)
}
 0x144   :  { %s3760_s1 = scalar_lea.vmem %s245_s22, 32  ;;  %p3765_p12 = scmp.lt.s32.totalorder %s245_s22, %s245_s22 }
 0x145   :  { %p3761_p11 = scmp.ne.s32.totalorder %s245_s22, %s3760_s1  ;;  %p3766_p13 = scmp.lt.s32.totalorder %s3760_s1, %s3760_s1 }
 0x147   :  { %p3767_p0 = por %p3766_p13, %p3765_p12 }
 0x149   :  { %p3768_p1 = pnand %p3767_p0, %p3761_p11 }
 0x14b   :  { %3771 = shalt.err (!%p3768_p1)
}
 0x14c   :  { %s4546_s24 = sld [smem:[#allocation49_spill]]  ;;  %s3887_s26 = smov [#allocation28]  }
 0x14d   :  { %247 = dma.hbm_to_vmem [thread:$0]  %s4545_s12, 32, %s245_s22, [#allocation24]  }
 0x14e   :  { %s266_s25 = sshll.u32 %s3887_s26, 4  ;;  %s267_s25 = int_to_ptr.vmem [resolvable:$true] %s266_s25 }
 0x152   :  { %s3772_s2 = scalar_lea.hbm %s4546_s24, 16 }
 0x153   :  { %p3773_p2 = scmp.ne.s32.totalorder %s4546_s24, %s3772_s2  ;;  %p3776_p3 = scmp.lt.u32.totalorder %s3772_s2, %s4546_s24 }
 0x155   :  { %p3778_p4 = pnand %p3776_p3, %p3773_p2 }
 0x157   :  { %3781 = shalt.err (!%p3778_p4)
}
 0x158   :  { %s3782_s29 = scalar_lea.vmem %s267_s25, 16  ;;  %s3786_s6 = scalar_lea.vmem %s267_s25, 32 }
 0x159   :  { %p3783_p5 = scmp.ne.s32.totalorder %s267_s25, %s3782_s29  ;;  %p3787_p6 = scmp.lt.s32.totalorder %s267_s25, %s267_s25 }
 0x15a   :  { %p3788_p7 = scmp.lt.s32.totalorder %s3786_s6, %s3782_s29 }
 0x15c   :  { %p3789_p8 = por %p3788_p7, %p3787_p6 }
 0x15e   :  { %p3790_p9 = pnand %p3789_p8, %p3783_p5 }
 0x160   :  { %3793 = shalt.err (!%p3790_p9)
}
 0x161   :  { %269 = dma.hbm_to_vmem [thread:$0]  %s4546_s24, 16, %s267_s25, [#allocation27]  }
 0x162   :  { %3816 = dma.done.wait [#allocation3], 32  }
 0x163   :  { %3817 = vsyncadd [#allocation3], 4294967264 }
 0x164   :  { %3818 = dma.done.wait [#allocation6], 32  }
 0x165   :  { %3819 = vsyncadd [#allocation6], 4294967264 }
 0x166   :  { %3820 = dma.done.wait [#allocation9], 528  }
 0x167   :  { %3821 = vsyncadd [#allocation9], 4294966768 }
 0x168   :  { %3822 = dma.done.wait [#allocation12], 32  }
 0x169   :  { %3823 = vsyncadd [#allocation12], 4294967264 }
 0x16a   :  { %3824 = dma.done.wait [#allocation15], 528  }
 0x16b   :  { %3825 = vsyncadd [#allocation15], 4294966768 }
 0x16c   :  { %3826 = dma.done.wait [#allocation18], 32  }
 0x16d   :  { %3827 = vsyncadd [#allocation18], 4294967264 }
 0x16e   :  { %3828 = dma.done.wait [#allocation21], 64  }
 0x16f   :  { %3829 = vsyncadd [#allocation21], 4294967232 }
 0x170   :  { %3830 = dma.done.wait [#allocation24], 64  }
 0x171   :  { %3831 = vsyncadd [#allocation24], 4294967232 }
 0x172   :  { %3832 = dma.done.wait [#allocation27], 48  }
 0x173   :  { %3833 = vsyncadd [#allocation27], 4294967248  ;;  %s4547_s7 = sld [smem:[#allocation40_spill]]  ;;  %v3888_v0 = vmov 1   ;;  %v3889_v1 = vmov 0   ;;  %v3890_v6 = vmov 0.0|0.0   ;;  %v377_v8 = vlaneseq }
 0x174   :  { %3192 = vset.pattern.permute.xlu1 %v3888_v0  ;;  %3191 = vset.pattern.permute.xlu0 %v3889_v1  ;;  %vm3891_vm0 = vmmov 0   ;;  %v3892_v7 = vmov 0.0   ;;  %v356_v12 = vld [vmem:[#allocation2] sm:$0x3]  ;;  %v2798_v19 = vld [vmem:[#allocation5] ss:$0 sm:$0xff] }
 0x175   :  { %3057 = vmatprep.subr.bf16.mxu0 %v3890_v6  ;;  %2977 = vmatprep.mubr.msk.f32.mxu0 %vm3891_vm0, %v3892_v7  ;;  %v378_v9 = vshrl.u32 %v377_v8, 7  ;;  %vm424_vm1 = vcmask 523264   ;;  %s4550_s10 = sld [smem:[#allocation43_spill]]  ;;  %s4551_s8 = sld [smem:[#allocation41_spill]]  ;;  %vm543_vm7 = vcmask 261120  }
 0x176   :  { %vm4182_vm2 = vmpackc.low %vm424_vm1, %vm424_vm1  ;;  %s4552_s11 = sld [smem:[#allocation50_spill]]  ;;  %s4553_s27 = sld [smem:[#allocation44_spill]] }
 0x177   :  { %v4173_v10 = vsub.s32 0, %v378_v9  ;;  %v4175_v11 = vsub.s32 1, %v378_v9  ;;  %s4554_s0 = sld [smem:[#allocation51_spill]]  ;;  %s4555_s3 = sld [smem:[#allocation52_spill]] }
 0x178   :  { %s4556_s15 = sld [smem:[#allocation46_spill]]  ;;  %s4557_s19 = sld [smem:[#allocation42_spill]] }
 0x179   :  { %v352_v2 = vld [vmem:[%s4547_s7] sm:$0xff]  ;;  %v353_v3 = vld [vmem:[%s4547_s7 + $0x8] sm:$0xff]  ;;  %v354_v4 = vld [vmem:[%s4547_s7 + $0x10] sm:$0xff]  ;;  %v404_v13 = vrot.slane %v356_v12, %v4175_v11  ;;  %v380_v14 = vrot.slane %v356_v12, %v4173_v10  ;;  %s4558_s13 = sld [smem:[#allocation55_spill]]  ;;  %s4559_s14 = sld [smem:[#allocation48_spill]] }
 0x17a   :  { %386 = vperm.xlu1 %3192, %v352_v2   ;;  %359 = vperm.xlu0 %3191, %v352_v2   ;;  %v355_v5 = vld [vmem:[%s4547_s7 + $0x18] sm:$0xff]  ;;  %s4560_s16 = sld [smem:[#allocation53_spill]]  ;;  %s4561_s18 = sld [smem:[#allocation54_spill]] }
 0x17b   :  { %v437_v47 = vld [vmem:[%s4550_s10] sm:$0x1]  ;;  %v4200_v50 = vld [vmem:[%s4551_s8 + $0x8] sm:$0xff]  ;;  %v4207_v55 = vld [vmem:[%s4551_s8 + $0x18] sm:$0xff]  ;;  %s3895_s30 = smov [#allocation29]  }
 0x17c   :  { %v4203_v51 = vld [vmem:[%s4551_s8] sm:$0xff]  ;;  %v4210_v56 = vld [vmem:[%s4551_s8 + $0x10] sm:$0xff]  ;;  %vm345_vm3 = vcmp.gt.f32.partialorder %v4200_v50, 0.0  ;;  %vm347_vm5 = vcmp.gt.f32.partialorder %v4207_v55, 0.0  ;;  %s2748_s21 = sshll.u32 %s3895_s30, 4  ;;  %s2749_s21 = int_to_ptr.vmem [resolvable:$true] %s2748_s21 }
 0x17d   :  { %vm344_vm4 = vcmp.gt.f32.partialorder %v4203_v51, 0.0  ;;  %vm346_vm6 = vcmp.gt.f32.partialorder %v4210_v56, 0.0  ;;  %p3799_p11 = scmp.lt.s32.totalorder %s2749_s21, %s2749_s21 }
 0x17e   :  { %390 = vperm.xlu1 %3192, %v353_v3   ;;  %364 = vperm.xlu0 %3191, %v353_v3  }
 0x182   :  { %3193 = vset.pattern.permute.xlu1 %v3889_v1  ;;  %369 = vperm.xlu0 %3191, %v354_v4  }
 0x183   :  { %374 = vperm.xlu1 %3193, %v355_v5  }
 0x186   :  { %3194 = vset.pattern.permute.xlu0 %v3888_v0 }
 0x187   :  { %3195 = vset.pattern.permute.xlu1 %v3888_v0  ;;  %394 = vperm.xlu0 %3194, %v354_v4   ;;  %v3893_v4 = vmov -1e+30  }
 0x188   :  { %398 = vperm.xlu1 %3195, %v355_v5   ;;  %v4216_v5 = vsel %vm345_vm3, 0.0, %v3893_v4  ;;  %v4218_v8 = vsel %vm344_vm4, 0.0, %v3893_v4 }
 0x18b   :  { %3196 = vset.pattern.permute.xlu0 %v3889_v1 }
 0x18c   :  { %3197 = vset.pattern.permute.xlu1 %v3889_v1 }
 0x1f9   :  { %v387_v15 = vpop.permute.xlu1 %386  ;;  %v360_v16 = vpop.permute.xlu0 %359 }
 0x1fa   :  { %v405_v17 = vmul.f32 %v404_v13, %v387_v15  ;;  %v381_v18 = vmul.f32 %v380_v14, %v360_v16  ;;  %v4220_v15 = vsel %vm347_vm5, 0.0, %v3893_v4  ;;  %v4222_v16 = vsel %vm346_vm6, 0.0, %v3893_v4 }
 0x1fb   :  { %vm2541_vm5 = vcmask 1040384   ;;  %vm2666_vm6 = vcmask 1041408  }
 0x1fc   :  { %v409_v20 = vadd.f32 %v405_v17, %v381_v18 }
 0x1fd   :  { %v391_v21 = vpop.permute.xlu1 %390  ;;  %v365_v22 = vpop.permute.xlu0 %364 }
 0x1fe   :  { %v406_v23 = vmul.f32 %v404_v13, %v391_v21  ;;  %v382_v24 = vmul.f32 %v380_v14, %v365_v22  ;;  %v420_v25 = vmul.f32 %v2798_v19, %v409_v20 }
 0x200   :  { %v410_v26 = vadd.f32 %v406_v23, %v382_v24  ;;  %v425_v27 = vsel %vm424_vm1, %v420_v25, 0.0 }
 0x201   :  { %426 = vadd.xlane.f32.xlu1 %v425_v27  ;;  %v370_v28 = vpop.permute.xlu0 %369 }
 0x202   :  { %v375_v30 = vpop.permute.xlu1 %374  ;;  %v3058_v31 = vpack.c.bf16 %v410_v26, %v409_v20  ;;  %v421_v32 = vmul.f32 %v2798_v19, %v410_v26  ;;  %v383_v35 = vmul.f32 %v380_v14, %v370_v28 }
 0x203   :  { %v384_v38 = vmul.f32 %v380_v14, %v375_v30 }
 0x204   :  { %3060 = vmatpush3.bf16.xpose.msk.msra.mxu0 %vm4182_vm2, %v3058_v31  ;;  %2980 = vmatprep.subr.bf16.mxu1 %v3058_v31  ;;  %v428_v33 = vsel %vm424_vm1, %v421_v32, 0.0 }
 0x205   :  { %2981 = vmatpush3.bf16.msra.mxu1 %v3058_v31  ;;  %429 = vadd.xlane.f32.xlu0 %v428_v33 }
 0x206   :  { %v395_v34 = vpop.permute.xlu0 %394  ;;  %3061 = vmatprep.subr.bf16.mxu0 %v3890_v6 }
 0x207   :  { %v407_v36 = vmul.f32 %v404_v13, %v395_v34  ;;  %v399_v37 = vpop.permute.xlu1 %398 }
 0x208   :  { %v408_v39 = vmul.f32 %v404_v13, %v399_v37 }
 0x209   :  { %v411_v40 = vadd.f32 %v407_v36, %v383_v35 }
 0x20a   :  { %v412_v41 = vadd.f32 %v408_v39, %v384_v38 }
 0x20b   :  { %v422_v42 = vmul.f32 %v2798_v19, %v411_v40 }
 0x20c   :  { %v3062_v43 = vpack.c.bf16 %v412_v41, %v411_v40  ;;  %v423_v44 = vmul.f32 %v2798_v19, %v412_v41 }
 0x20d   :  { %v431_v45 = vsel %vm424_vm1, %v422_v42, 0.0 }
 0x20e   :  { %3064 = vmatpush3.bf16.xpose.msk.msra.mxu0 %vm4182_vm2, %v3062_v43  ;;  %2982 = vmatprep.subr.bf16.mxu1 %v3062_v43  ;;  %v434_v46 = vsel %vm424_vm1, %v423_v44, 0.0 }
 0x20f   :  { %432 = vadd.xlane.f32.xlu0 %v431_v45  ;;  %435 = vadd.xlane.f32.xlu1 %v434_v46 }
 0x210   :  { %2983 = vmatpush3.bf16.msra.mxu1 %v3062_v43  ;;  %3065 = vmatprep.subr.bf16.mxu0 %v3890_v6 }
 0x215   :  { %2978 = vmatmul.mubr.msk.f32.vlgmr.msra.gmra.mrb[0].mxu0 %vm424_vm1, %v437_v47 }
 0x216   :  { %3008 = vmatprep.mubr.msk.f32.mxu0 %vm3891_vm0, %v3892_v7 }
 0x28e   :  { %v427_v48 = vpop.xlane.xlu1 %426 }
 0x292   :  { %v430_v49 = vpop.xlane.xlu0 %429 }
 0x29c   :  { %v433_v57 = vpop.xlane.xlu0 %432  ;;  %v436_v58 = vpop.xlane.xlu1 %435 }
 0x2e8   :  { %v519_v52 = vpop.f32.mrb[0].mxu0 }
 0x2e9   :  { %v526_v53 = vrot.slane %v519_v52, %v4173_v10  ;;  %v2979_v54 = vpop.f32.mrb[1].mxu0 }
 0x2eb   :  { %v528_v59 = vadd.f32 %v526_v53, %v430_v49  ;;  %v527_v60 = vadd.f32 %v526_v53, %v427_v48  ;;  %v530_v61 = vadd.f32 %v526_v53, %v436_v58  ;;  %v529_v62 = vadd.f32 %v526_v53, %v433_v57 }
 0x2ed   :  { %v532_v63 = vmul.f32 0.2, %v528_v59  ;;  %v531_v2 = vmul.f32 0.2, %v527_v60  ;;  %v534_v3 = vmul.f32 0.2, %v530_v61 }
 0x2ee   :  { %v533_v9 = vmul.f32 0.2, %v529_v62 }
 0x2ef   :  { %v536_v12 = vmax.f32 %v528_v59, %v532_v63  ;;  %v535_v13 = vmax.f32 %v527_v60, %v531_v2  ;;  %v538_v14 = vmax.f32 %v530_v61, %v534_v3 }
 0x2f0   :  { %v537_v17 = vmax.f32 %v529_v62, %v533_v9 }
 0x2f1   :  { %v540_v18 = vadd.f32 %v536_v12, %v4216_v5  ;;  %v539_v19 = vadd.f32 %v535_v13, %v4218_v8  ;;  %v542_v22 = vadd.f32 %v538_v14, %v4220_v15  ;;  %v3200_v13 = vld [vmem:[#allocation8] sm:$0xff]   ;;  %v3201_v14 = vld [vmem:[#allocation8 + $0x8] sm:$0xff]  }
 0x2f2   :  { %v541_v23 = vadd.f32 %v537_v17, %v4222_v16  ;;  %2988 = vmatprep.subr.bf16.mxu1 %v3200_v13  ;;  %v3202_v17 = vld [vmem:[#allocation8 + $0x10] sm:$0xff]  }
 0x2f3   :  { %v547_v20 = vsel %vm543_vm7, %v540_v18, -inf  ;;  %v544_v21 = vsel %vm543_vm7, %v539_v19, -inf  ;;  %v553_v24 = vsel %vm543_vm7, %v542_v22, -inf }
 0x2f4   :  { %548 = vmax.xlane.f32.xlu1 %v547_v20  ;;  %545 = vmax.xlane.f32.xlu0 %v544_v21  ;;  %v550_v25 = vsel %vm543_vm7, %v541_v23, -inf  ;;  %v2807_v21 = vld [vmem:[#allocation28] ss:$0 sm:$0xff] }
 0x2f8   :  { %554 = vmax.xlane.f32.xlu1 %v553_v24  ;;  %551 = vmax.xlane.f32.xlu0 %v550_v25  ;;  %v2808_v24 = vld [vmem:[%s4552_s11] ss:$0 sm:$0xff] }
 0x381   :  { %v549_v26 = vpop.xlane.xlu1 %548  ;;  %v546_v27 = vpop.xlane.xlu0 %545 }
 0x382   :  { %v557_v28 = vsub.f32 %v540_v18, %v549_v26  ;;  %v556_v30 = vsub.f32 %v539_v19, %v546_v27  ;;  %v3203_v18 = vld [vmem:[#allocation8 + $0x18] sm:$0xff]  }
 0x383   :  { %v2804_v19 = vld [vmem:[#allocation7] ss:$0 sm:$0xff] }
 0x384   :  { %v562_v31 = vmul.f32 1.442695, %v557_v28  ;;  %v560_v32 = vmul.f32 1.442695, %v556_v30 }
 0x385   :  { %v555_v33 = vpop.xlane.xlu1 %554  ;;  %v552_v34 = vpop.xlane.xlu0 %551 }
 0x386   :  { %3280 = vpow2.f32 %v562_v31  ;;  %v559_v35 = vsub.f32 %v542_v22, %v555_v33  ;;  %v558_v36 = vsub.f32 %v541_v23, %v552_v34 }
 0x387   :  { %3282 = vpow2.f32 %v560_v32 }
 0x388   :  { %v566_v37 = vmul.f32 1.442695, %v559_v35  ;;  %v564_v38 = vmul.f32 1.442695, %v558_v36 }
 0x38a   :  { %3284 = vpow2.f32 %v566_v37 }
 0x38b   :  { %3286 = vpow2.f32 %v564_v38 }
 0x390   :  { %v3281_v39 = vpop.eup %3280 }
 0x391   :  { %v3283_v40 = vpop.eup %3282  ;;  %v569_v41 = vmul.f32 %v3281_v39, %v4200_v50 }
 0x392   :  { %v568_v42 = vmul.f32 %v3283_v40, %v4203_v51 }
 0x393   :  { %v575_v43 = vsel %vm543_vm7, %v569_v41, 0.0 }
 0x394   :  { %v3285_v44 = vpop.eup %3284  ;;  %576 = vadd.xlane.f32.xlu1 %v575_v43  ;;  %v572_v45 = vsel %vm543_vm7, %v568_v42, 0.0 }
 0x395   :  { %v3287_v46 = vpop.eup %3286  ;;  %573 = vadd.xlane.f32.xlu0 %v572_v45  ;;  %v571_v47 = vmul.f32 %v3285_v44, %v4207_v55 }
 0x396   :  { %v570_v48 = vmul.f32 %v3287_v46, %v4210_v56 }
 0x397   :  { %v581_v49 = vsel %vm543_vm7, %v571_v47, 0.0 }
 0x398   :  { %582 = vadd.xlane.f32.xlu1 %v581_v49  ;;  %v578_v52 = vsel %vm543_vm7, %v570_v48, 0.0 }
 0x399   :  { %579 = vadd.xlane.f32.xlu0 %v578_v52 }
 0x421   :  { %v577_v53 = vpop.xlane.xlu1 %576 }
 0x422   :  { %3288 = vrcp.f32 %v577_v53  ;;  %v574_v54 = vpop.xlane.xlu0 %573 }
 0x423   :  { %3290 = vrcp.f32 %v574_v54 }
 0x425   :  { %v583_v57 = vpop.xlane.xlu1 %582 }
 0x426   :  { %3292 = vrcp.f32 %v583_v57  ;;  %v580_v58 = vpop.xlane.xlu0 %579 }
 0x427   :  { %3294 = vrcp.f32 %v580_v58 }
 0x42c   :  { %v3289_v59 = vpop.eup %3288 }
 0x42d   :  { %v3291_v60 = vpop.eup %3290  ;;  %v589_v61 = vmul.f32 %v3289_v59, %v569_v41 }
 0x42e   :  { %v588_v62 = vmul.f32 %v3291_v60, %v568_v42 }
 0x430   :  { %v3293_v63 = vpop.eup %3292  ;;  %v592_v2 = vpack.c.bf16 %v589_v61, %v588_v62 }
 0x431   :  { %v3295_v3 = vpop.eup %3294  ;;  %v591_v4 = vmul.f32 %v3293_v63, %v571_v47 }
 0x432   :  { %2984 = vmatprep.mubr.msk.bf16.mxu1 %vm543_vm7, %v592_v2  ;;  %v590_v9 = vmul.f32 %v3295_v3, %v570_v48  ;;  %v2815_v3 = vld [vmem:[#allocation11] ss:$0 sm:$0xff] }
 0x434   :  { %v593_v12 = vpack.c.bf16 %v591_v4, %v590_v9 }
 0x436   :  { %2985 = vmatmul.mubr.msk.bf16.vlgmr.msra.gmra.mrb[0].mxu1 %vm543_vm7, %v593_v12 }
 0x437   :  { %2989 = vmatpush3.bf16.msra.mxu1 %v3200_v13 }
 0x438   :  { %2990 = vmatprep.subr.bf16.mxu1 %v3201_v14 }
 0x43b   :  { %2991 = vmatpush3.bf16.msra.mxu1 %v3201_v14 }
 0x43c   :  { %2992 = vmatprep.subr.bf16.mxu1 %v3202_v17 }
 0x43f   :  { %2993 = vmatpush3.bf16.msra.mxu1 %v3202_v17 }
 0x440   :  { %2994 = vmatprep.subr.bf16.mxu1 %v3203_v18 }
 0x443   :  { %2995 = vmatpush3.bf16.msra.mxu1 %v3203_v18 }
 0x509   :  { %v2986_v20 = vpop.f32.mrb[0].mxu1 }
 0x50a   :  { %v652_v22 = vadd.f32 %v2986_v20, %v2804_v19  ;;  %v643_v23 = vpop.f32.mrb[1].mxu1 }
 0x50b   :  { %v644_v25 = vadd.f32 %v2804_v19, %v643_v23  ;;  %v2987_v26 = vpop.f32.mrb[2].mxu1 }
 0x50c   :  { %v667_v27 = vmul.f32 %v2807_v21, %v652_v22  ;;  %v655_v28 = vadd.f32 %v2987_v26, %v2804_v19  ;;  %v646_v30 = vpop.f32.mrb[3].mxu1  ;;  %v812_v26 = vld [vmem:[#allocation10] sm:$0x1] }
 0x50d   :  { %v665_v31 = vmul.f32 %v2807_v21, %v644_v25  ;;  %v647_v32 = vadd.f32 %v2804_v19, %v646_v30 }
 0x50e   :  { %v678_v33 = vadd.f32 %v2808_v24, %v667_v27  ;;  %v668_v34 = vmul.f32 %v2807_v21, %v655_v28 }
 0x50f   :  { %v676_v35 = vadd.f32 %v2808_v24, %v665_v31  ;;  %v666_v36 = vmul.f32 %v2807_v21, %v647_v32 }
 0x510   :  { %v686_v37 = vmul.f32 0.70710677, %v678_v33  ;;  %v679_v38 = vadd.f32 %v2808_v24, %v668_v34  ;;  %v682_v49 = vmul.f32 0.5, %v678_v33 }
 0x511   :  { %v684_v39 = vmul.f32 0.70710677, %v676_v35  ;;  %v677_v40 = vadd.f32 %v2808_v24, %v666_v36  ;;  %v680_v54 = vmul.f32 0.5, %v676_v35 }
 0x512   :  { %3296 = verf.f32 %v686_v37  ;;  %v687_v41 = vmul.f32 0.70710677, %v679_v38  ;;  %v683_v52 = vmul.f32 0.5, %v679_v38 }
 0x513   :  { %3298 = verf.f32 %v684_v39  ;;  %v685_v42 = vmul.f32 0.70710677, %v677_v40  ;;  %v681_v57 = vmul.f32 0.5, %v677_v40 }
 0x514   :  { %3300 = verf.f32 %v687_v41 }
 0x515   :  { %3302 = verf.f32 %v685_v42 }
 0x51c   :  { %v3297_v43 = vpop.eup %3296 }
 0x51d   :  { %v3299_v44 = vpop.eup %3298  ;;  %v694_v45 = vadd.f32 1.0, %v3297_v43 }
 0x51e   :  { %v3301_v46 = vpop.eup %3300  ;;  %v692_v47 = vadd.f32 1.0, %v3299_v44 }
 0x51f   :  { %v3303_v48 = vpop.eup %3302  ;;  %v695_v53 = vadd.f32 1.0, %v3301_v46  ;;  %v698_v59 = vmul.f32 %v694_v45, %v682_v49 }
 0x520   :  { %v693_v58 = vadd.f32 1.0, %v3303_v48  ;;  %v696_v61 = vmul.f32 %v692_v47, %v680_v54 }
 0x521   :  { %v699_v60 = vmul.f32 %v695_v53, %v683_v52 }
 0x522   :  { %v697_v62 = vmul.f32 %v693_v58, %v681_v57 }
 0x523   :  { %v701_v63 = vpack.c.bf16 %v699_v60, %v698_v59 }
 0x524   :  { %v700_v2 = vpack.c.bf16 %v697_v62, %v696_v61 }
 0x526   :  { %2996 = vmatprep.mubr.msk.bf16.mxu1 %vm424_vm1, %v700_v2 }
 0x527   :  { %2997 = vmatmul.mubr.msk.bf16.vlgmr.msra.gmra.mrb[4].mxu1 %vm424_vm1, %v701_v63 }
 0x5fa   :  { %v2998_v4 = vpop.f32.mrb[4].mxu1 }
 0x5fb   :  { %v774_v9 = vpop.f32.mrb[5].mxu1  ;;  %v798_v18 = vmul.f32 %v2998_v4, %v2815_v3 }
 0x5fc   :  { %v796_v12 = vmul.f32 %v2815_v3, %v774_v9  ;;  %v2999_v13 = vpop.f32.mrb[6].mxu1 }
 0x5fd   :  { %v3070_v14 = vpack.c.bf16 %v2999_v13, %v2998_v4  ;;  %v777_v17 = vpop.f32.mrb[7].mxu1  ;;  %v799_v22 = vmul.f32 %v2999_v13, %v2815_v3  ;;  %v806_v24 = vsel %vm424_vm1, %v798_v18, 0.0 }
 0x5fe   :  { %v797_v19 = vmul.f32 %v2815_v3, %v777_v17  ;;  %v3066_v20 = vpack.c.bf16 %v777_v17, %v774_v9  ;;  %v800_v21 = vsel %vm424_vm1, %v796_v12, 0.0 }
 0x5ff   :  { %801 = vadd.xlane.f32.xlu0 %v800_v21  ;;  %v809_v25 = vsel %vm424_vm1, %v799_v22, 0.0 }
 0x600   :  { %3068 = vmatpush3.bf16.xpose.msk.msra.mxu0 %vm4182_vm2, %v3066_v20  ;;  %3011 = vmatprep.subr.bf16.mxu1 %v3066_v20  ;;  %v803_v23 = vsel %vm424_vm1, %v797_v19, 0.0 }
 0x601   :  { %3012 = vmatpush3.bf16.msra.mxu1 %v3066_v20  ;;  %804 = vadd.xlane.f32.xlu1 %v803_v23 }
 0x602   :  { %3013 = vmatprep.subr.bf16.mxu1 %v3070_v14  ;;  %3069 = vmatprep.subr.bf16.mxu0 %v3890_v6 }
 0x603   :  { %807 = vadd.xlane.f32.xlu0 %v806_v24 }
 0x605   :  { %3014 = vmatpush3.bf16.msra.mxu1 %v3070_v14  ;;  %810 = vadd.xlane.f32.xlu1 %v809_v25 }
 0x606   :  { %3073 = vmatprep.subr.bf16.mxu1 %v3890_v6 }
 0x608   :  { %3072 = vmatpush3.bf16.xpose.msk.msra.mxu0 %vm4182_vm2, %v3070_v14 }
 0x60f   :  { %3009 = vmatmul.mubr.msk.f32.vlgmr.msra.gmra.mrb[2].mxu0 %vm424_vm1, %v812_v26 }
 0x68c   :  { %v802_v27 = vpop.xlane.xlu0 %801 }
 0x68e   :  { %v805_v28 = vpop.xlane.xlu1 %804 }
 0x690   :  { %v808_v33 = vpop.xlane.xlu0 %807 }
 0x692   :  { %v811_v34 = vpop.xlane.xlu1 %810 }
 0x6e2   :  { %v894_v30 = vpop.f32.mrb[2].mxu0 }
 0x6e3   :  { %v901_v31 = vrot.slane %v894_v30, %v4173_v10  ;;  %v3010_v32 = vpop.f32.mrb[3].mxu0 }
 0x6e5   :  { %v902_v35 = vadd.f32 %v901_v31, %v802_v27  ;;  %v903_v36 = vadd.f32 %v901_v31, %v805_v28  ;;  %v904_v37 = vadd.f32 %v901_v31, %v808_v33  ;;  %v905_v38 = vadd.f32 %v901_v31, %v811_v34 }
 0x6e7   :  { %v906_v39 = vmul.f32 0.2, %v902_v35  ;;  %v907_v40 = vmul.f32 0.2, %v903_v36  ;;  %v908_v41 = vmul.f32 0.2, %v904_v37 }
 0x6e8   :  { %v909_v29 = vmul.f32 0.2, %v905_v38 }
 0x6e9   :  { %v910_v42 = vmax.f32 %v902_v35, %v906_v39  ;;  %v911_v43 = vmax.f32 %v903_v36, %v907_v40  ;;  %v912_v44 = vmax.f32 %v904_v37, %v908_v41 }
 0x6ea   :  { %v913_v45 = vmax.f32 %v905_v38, %v909_v29 }
 0x6eb   :  { %v914_v46 = vadd.f32 %v910_v42, %v4218_v8  ;;  %v915_v47 = vadd.f32 %v911_v43, %v4216_v5  ;;  %v916_v52 = vadd.f32 %v912_v44, %v4222_v16  ;;  %v3204_v42 = vld [vmem:[#allocation14] sm:$0xff]   ;;  %v3205_v43 = vld [vmem:[#allocation14 + $0x8] sm:$0xff]   ;;  %v3206_v44 = vld [vmem:[#allocation14 + $0x10] sm:$0xff]  }
 0x6ec   :  { %v917_v53 = vadd.f32 %v913_v45, %v4220_v15  ;;  %3019 = vmatprep.subr.bf16.mxu0 %v3204_v42  ;;  %v3207_v45 = vld [vmem:[#allocation14 + $0x18] sm:$0xff]  }
 0x6ed   :  { %v918_v48 = vsel %vm543_vm7, %v914_v46, -inf  ;;  %v921_v49 = vsel %vm543_vm7, %v915_v47, -inf  ;;  %v924_v54 = vsel %vm543_vm7, %v916_v52, -inf  ;;  %3020 = vmatpush3.bf16.msra.mxu0 %v3204_v42 }
 0x6ee   :  { %919 = vmax.xlane.f32.xlu0 %v918_v48  ;;  %922 = vmax.xlane.f32.xlu1 %v921_v49  ;;  %v927_v57 = vsel %vm543_vm7, %v917_v53, -inf }
 0x6ef   :  { %3021 = vmatprep.subr.bf16.mxu0 %v3205_v43 }
 0x6f1   :  { %3022 = vmatpush3.bf16.msra.mxu0 %v3205_v43 }
 0x6f2   :  { %925 = vmax.xlane.f32.xlu0 %v924_v54  ;;  %928 = vmax.xlane.f32.xlu1 %v927_v57 }
 0x6f3   :  { %3023 = vmatprep.subr.bf16.mxu0 %v3206_v44 }
 0x6f5   :  { %3024 = vmatpush3.bf16.msra.mxu0 %v3206_v44 }
 0x6f6   :  { %3025 = vmatprep.subr.bf16.mxu0 %v3207_v45 }
 0x6f9   :  { %3026 = vmatpush3.bf16.msra.mxu0 %v3207_v45 }
 0x77b   :  { %v920_v58 = vpop.xlane.xlu0 %919  ;;  %v923_v59 = vpop.xlane.xlu1 %922 }
 0x77c   :  { %v930_v60 = vsub.f32 %v914_v46, %v920_v58  ;;  %v931_v61 = vsub.f32 %v915_v47, %v923_v59  ;;  %v2821_v46 = vld [vmem:[#allocation13] ss:$0 sm:$0xff] }
 0x77e   :  { %v934_v62 = vmul.f32 1.442695, %v930_v60  ;;  %v936_v63 = vmul.f32 1.442695, %v931_v61 }
 0x77f   :  { %v926_v2 = vpop.xlane.xlu0 %925  ;;  %v929_v3 = vpop.xlane.xlu1 %928 }
 0x780   :  { %3304 = vpow2.f32 %v934_v62  ;;  %v932_v4 = vsub.f32 %v916_v52, %v926_v2  ;;  %v933_v9 = vsub.f32 %v917_v53, %v929_v3 }
 0x781   :  { %3306 = vpow2.f32 %v936_v63 }
 0x782   :  { %v938_v12 = vmul.f32 1.442695, %v932_v4  ;;  %v940_v13 = vmul.f32 1.442695, %v933_v9 }
 0x784   :  { %3308 = vpow2.f32 %v938_v12 }
 0x785   :  { %3310 = vpow2.f32 %v940_v13 }
 0x78a   :  { %v3305_v14 = vpop.eup %3304 }
 0x78b   :  { %v3307_v17 = vpop.eup %3306  ;;  %v942_v18 = vmul.f32 %v3305_v14, %v4203_v51 }
 0x78c   :  { %v943_v19 = vmul.f32 %v3307_v17, %v4200_v50 }
 0x78d   :  { %v946_v20 = vsel %vm543_vm7, %v942_v18, 0.0 }
 0x78e   :  { %v3309_v21 = vpop.eup %3308  ;;  %947 = vadd.xlane.f32.xlu0 %v946_v20  ;;  %v949_v22 = vsel %vm543_vm7, %v943_v19, 0.0 }
 0x78f   :  { %v3311_v23 = vpop.eup %3310  ;;  %950 = vadd.xlane.f32.xlu1 %v949_v22  ;;  %v944_v24 = vmul.f32 %v3309_v21, %v4210_v56 }
 0x790   :  { %v945_v25 = vmul.f32 %v3311_v23, %v4207_v55 }
 0x791   :  { %v952_v26 = vsel %vm543_vm7, %v944_v24, 0.0 }
 0x792   :  { %953 = vadd.xlane.f32.xlu0 %v952_v26  ;;  %v955_v27 = vsel %vm543_vm7, %v945_v25, 0.0 }
 0x793   :  { %956 = vadd.xlane.f32.xlu1 %v955_v27  ;;  %v2830_v27 = vld [vmem:[#allocation17] ss:$0 sm:$0xff] }
 0x81b   :  { %v948_v28 = vpop.xlane.xlu0 %947 }
 0x81c   :  { %3312 = vrcp.f32 %v948_v28  ;;  %v951_v30 = vpop.xlane.xlu1 %950 }
 0x81d   :  { %3314 = vrcp.f32 %v951_v30 }
 0x81f   :  { %v954_v31 = vpop.xlane.xlu0 %953 }
 0x820   :  { %3316 = vrcp.f32 %v954_v31  ;;  %v957_v32 = vpop.xlane.xlu1 %956 }
 0x821   :  { %3318 = vrcp.f32 %v957_v32 }
 0x826   :  { %v3313_v33 = vpop.eup %3312 }
 0x827   :  { %v3315_v34 = vpop.eup %3314  ;;  %v962_v35 = vmul.f32 %v3313_v33, %v942_v18 }
 0x828   :  { %v963_v36 = vmul.f32 %v3315_v34, %v943_v19 }
 0x82a   :  { %v3317_v37 = vpop.eup %3316  ;;  %v966_v38 = vpack.c.bf16 %v963_v36, %v962_v35 }
 0x82b   :  { %v3319_v39 = vpop.eup %3318  ;;  %v964_v40 = vmul.f32 %v3317_v37, %v944_v24 }
 0x82c   :  { %v965_v41 = vmul.f32 %v3319_v39, %v945_v25  ;;  %3015 = vmatprep.mubr.msk.bf16.mxu1 %vm543_vm7, %v966_v38  ;;  %v1160_v39 = vld [vmem:[#allocation16] sm:$0x1] }
 0x82e   :  { %v967_v29 = vpack.c.bf16 %v965_v41, %v964_v40 }
 0x830   :  { %3016 = vmatmul.mubr.msk.bf16.vlgmr.msra.gmra.mrb[8].mxu1 %vm543_vm7, %v967_v29 }
 0x831   :  { %3039 = vmatprep.mubr.msk.f32.mxu1 %vm3891_vm0, %v3892_v7 }
 0x903   :  { %v3017_v47 = vpop.f32.mrb[8].mxu1 }
 0x904   :  { %v1026_v48 = vadd.f32 %v3017_v47, %v2821_v46  ;;  %v1017_v49 = vpop.f32.mrb[9].mxu1 }
 0x905   :  { %v1018_v52 = vadd.f32 %v2821_v46, %v1017_v49  ;;  %v3018_v53 = vpop.f32.mrb[10].mxu1 }
 0x906   :  { %v1038_v54 = vmul.f32 0.70710677, %v1026_v48  ;;  %v1029_v57 = vadd.f32 %v3018_v53, %v2821_v46  ;;  %v1020_v58 = vpop.f32.mrb[11].mxu1  ;;  %v1034_v13 = vmul.f32 0.5, %v1026_v48 }
 0x907   :  { %v1036_v59 = vmul.f32 0.70710677, %v1018_v52  ;;  %v1021_v60 = vadd.f32 %v2821_v46, %v1020_v58  ;;  %v1032_v18 = vmul.f32 0.5, %v1018_v52 }
 0x908   :  { %3320 = verf.f32 %v1038_v54  ;;  %v1039_v61 = vmul.f32 0.70710677, %v1029_v57  ;;  %v1035_v14 = vmul.f32 0.5, %v1029_v57 }
 0x909   :  { %3322 = verf.f32 %v1036_v59  ;;  %v1037_v62 = vmul.f32 0.70710677, %v1021_v60  ;;  %v1033_v19 = vmul.f32 0.5, %v1021_v60 }
 0x90a   :  { %3324 = verf.f32 %v1039_v61 }
 0x90b   :  { %3326 = verf.f32 %v1037_v62 }
 0x912   :  { %v3321_v63 = vpop.eup %3320 }
 0x913   :  { %v3323_v2 = vpop.eup %3322  ;;  %v1046_v3 = vadd.f32 1.0, %v3321_v63 }
 0x914   :  { %v3325_v4 = vpop.eup %3324  ;;  %v1044_v9 = vadd.f32 1.0, %v3323_v2 }
 0x915   :  { %v3327_v12 = vpop.eup %3326  ;;  %v1047_v17 = vadd.f32 1.0, %v3325_v4  ;;  %v1050_v21 = vmul.f32 %v1046_v3, %v1034_v13 }
 0x916   :  { %v1045_v20 = vadd.f32 1.0, %v3327_v12  ;;  %v1048_v23 = vmul.f32 %v1044_v9, %v1032_v18 }
 0x917   :  { %v1051_v22 = vmul.f32 %v1047_v17, %v1035_v14 }
 0x918   :  { %v1049_v24 = vmul.f32 %v1045_v20, %v1033_v19 }
 0x919   :  { %v1053_v25 = vpack.c.bf16 %v1051_v22, %v1050_v21 }
 0x91a   :  { %v1052_v26 = vpack.c.bf16 %v1049_v24, %v1048_v23 }
 0x91c   :  { %3027 = vmatprep.mubr.msk.bf16.mxu0 %vm424_vm1, %v1052_v26 }
 0x91d   :  { %3028 = vmatmul.mubr.msk.bf16.vlgmr.msra.gmra.mrb[4].mxu0 %vm424_vm1, %v1053_v25 }
 0x9f0   :  { %v3029_v28 = vpop.f32.mrb[4].mxu0 }
 0x9f1   :  { %v1126_v30 = vpop.f32.mrb[5].mxu0  ;;  %v1150_v37 = vmul.f32 %v3029_v28, %v2830_v27 }
 0x9f2   :  { %v3030_v31 = vpop.f32.mrb[6].mxu0  ;;  %v1148_v32 = vmul.f32 %v2830_v27, %v1126_v30 }
 0x9f3   :  { %v3077_v33 = vpack.c.bf16 %v3030_v31, %v3029_v28  ;;  %v1129_v34 = vpop.f32.mrb[7].mxu0  ;;  %v1151_v38 = vmul.f32 %v3030_v31, %v2830_v27 }
 0x9f4   :  { %v3074_v35 = vpack.c.bf16 %v1129_v34, %v1126_v30  ;;  %1152 = vadd.xlane.f32.xlu0 %v1148_v32  ;;  %v1149_v36 = vmul.f32 %v2830_v27, %v1129_v34 }
 0x9f6   :  { %3075 = vmatpush3.bf16.xpose.msra.mxu1 %v3074_v35  ;;  %1154 = vadd.xlane.f32.xlu1 %v1149_v36 }
 0x9f7   :  { %3076 = vmatprep.subr.bf16.mxu1 %v3890_v6 }
 0x9f8   :  { %1156 = vadd.xlane.f32.xlu0 %v1150_v37 }
 0x9fa   :  { %1158 = vadd.xlane.f32.xlu1 %v1151_v38 }
 0x9fe   :  { %3078 = vmatpush3.bf16.xpose.msra.mxu1 %v3077_v33 }
 0x9ff   :  { %3042 = vmatprep.subr.bf16.mxu1 %v3074_v35 }
 0xa05   :  { %3040 = vmatmul.mubr.f32.vlgmr.msra.gmra.mrb[12].mxu1 %v1160_v39 }
 0xa06   :  { %3043 = vmatpush3.bf16.msra.mxu1 %v3074_v35 }
 0xa07   :  { %3044 = vmatprep.subr.bf16.mxu1 %v3077_v33 }
 0xa0a   :  { %3045 = vmatpush3.bf16.msra.mxu1 %v3077_v33 }
 0xa81   :  { %v1153_v40 = vpop.xlane.xlu0 %1152 }
 0xa83   :  { %v1155_v41 = vpop.xlane.xlu1 %1154 }
 0xa85   :  { %v1157_v44 = vpop.xlane.xlu0 %1156 }
 0xa87   :  { %v1159_v45 = vpop.xlane.xlu1 %1158 }
 0xad8   :  { %v1227_v29 = vpop.f32.mrb[12].mxu1 }
 0xad9   :  { %v1234_v42 = vrot.slane %v1227_v29, %v4173_v10  ;;  %v3041_v43 = vpop.f32.mrb[13].mxu1 }
 0xadb   :  { %v1235_v46 = vadd.f32 %v1234_v42, %v1153_v40  ;;  %v1236_v47 = vadd.f32 %v1234_v42, %v1155_v41  ;;  %v1237_v48 = vadd.f32 %v1234_v42, %v1157_v44  ;;  %v1238_v49 = vadd.f32 %v1234_v42, %v1159_v45 }
 0xadd   :  { %v1239_v52 = vmul.f32 0.2, %v1235_v46  ;;  %v1240_v53 = vmul.f32 0.2, %v1236_v47  ;;  %v1241_v54 = vmul.f32 0.2, %v1237_v48 }
 0xade   :  { %v1242_v57 = vmul.f32 0.2, %v1238_v49 }
 0xadf   :  { %v1243_v58 = vmax.f32 %v1235_v46, %v1239_v52  ;;  %v1244_v59 = vmax.f32 %v1236_v47, %v1240_v53  ;;  %v1245_v60 = vmax.f32 %v1237_v48, %v1241_v54  ;;  %v3208_v52 = vld [vmem:[%s4553_s27] ss:$8 sps:$4 sm:$0xff]   ;;  %v3213_v54 = vld [vmem:[%s4553_s27 + $0x14] ss:$8 sps:$4 sm:$0xff]  }
 0xae0   :  { %v1246_v61 = vmax.f32 %v1238_v49, %v1242_v57  ;;  %v3211_v57 = vld [vmem:[%s4553_s27 + $0x10] ss:$8 sps:$4 sm:$0xff]  }
 0xae1   :  { %v1247_v62 = vadd.f32 %v1243_v58, %v4218_v8  ;;  %v1248_v63 = vadd.f32 %v1244_v59, %v4216_v5  ;;  %v1249_v4 = vadd.f32 %v1245_v60, %v4222_v16  ;;  %v3216_v58 = vld [vmem:[%s4553_s27 + $0x24] ss:$8 sps:$4 sm:$0xff]   ;;  %v3214_v59 = vld [vmem:[%s4553_s27 + $0x20] ss:$8 sps:$4 sm:$0xff]   ;;  %v3219_v60 = vld [vmem:[%s4553_s27 + $0x34] ss:$8 sps:$4 sm:$0xff]  }
 0xae2   :  { %v1250_v9 = vadd.f32 %v1246_v61, %v4220_v15  ;;  %v3217_v61 = vld [vmem:[%s4553_s27 + $0x30] ss:$8 sps:$4 sm:$0xff]  }
 0xae3   :  { %v1251_v2 = vsel %vm543_vm7, %v1247_v62, -inf  ;;  %v1254_v3 = vsel %vm543_vm7, %v1248_v63, -inf  ;;  %v1257_v12 = vsel %vm543_vm7, %v1249_v4, -inf }
 0xae4   :  { %1252 = vmax.xlane.f32.xlu0 %v1251_v2  ;;  %1255 = vmax.xlane.f32.xlu1 %v1254_v3  ;;  %v1260_v13 = vsel %vm543_vm7, %v1250_v9, -inf  ;;  %v3225_v2 = vld [vmem:[%s4553_s27 + $0x54] ss:$8 sps:$4 sm:$0xff]   ;;  %v3223_v3 = vld [vmem:[%s4553_s27 + $0x50] ss:$8 sps:$4 sm:$0xff]  }
 0xae8   :  { %1258 = vmax.xlane.f32.xlu0 %v1257_v12  ;;  %1261 = vmax.xlane.f32.xlu1 %v1260_v13  ;;  %v3231_v12 = vld [vmem:[%s4553_s27 + $0x74] ss:$8 sps:$4 sm:$0xff]   ;;  %v3229_v13 = vld [vmem:[%s4553_s27 + $0x70] ss:$8 sps:$4 sm:$0xff]  }
 0xb71   :  { %v1253_v14 = vpop.xlane.xlu0 %1252  ;;  %v1256_v17 = vpop.xlane.xlu1 %1255 }
 0xb72   :  { %v1263_v18 = vsub.f32 %v1247_v62, %v1253_v14  ;;  %v1264_v19 = vsub.f32 %v1248_v63, %v1256_v17  ;;  %v3222_v62 = vld [vmem:[%s4553_s27 + $0x44] ss:$8 sps:$4 sm:$0xff]   ;;  %v3220_v63 = vld [vmem:[%s4553_s27 + $0x40] ss:$8 sps:$4 sm:$0xff]   ;;  %v2831_v14 = vld [vmem:[#allocation19] ss:$0 sm:$0xff] }
 0xb74   :  { %v1267_v20 = vmul.f32 1.442695, %v1263_v18  ;;  %v1269_v21 = vmul.f32 1.442695, %v1264_v19  ;;  %v2834_v18 = vld [vmem:[%s4554_s0] ss:$0 sm:$0xff] }
 0xb75   :  { %v1259_v22 = vpop.xlane.xlu0 %1258  ;;  %v1262_v23 = vpop.xlane.xlu1 %1261 }
 0xb76   :  { %3328 = vpow2.f32 %v1267_v20  ;;  %v1265_v24 = vsub.f32 %v1249_v4, %v1259_v22  ;;  %v1266_v25 = vsub.f32 %v1250_v9, %v1262_v23  ;;  %v3228_v4 = vld [vmem:[%s4553_s27 + $0x64] ss:$8 sps:$4 sm:$0xff]   ;;  %v3226_v9 = vld [vmem:[%s4553_s27 + $0x60] ss:$8 sps:$4 sm:$0xff]  }
 0xb77   :  { %3330 = vpow2.f32 %v1269_v21  ;;  %v2835_v21 = vld [vmem:[%s4555_s3] ss:$0 sm:$0xff] }
 0xb78   :  { %v1271_v26 = vmul.f32 1.442695, %v1265_v24  ;;  %v1273_v27 = vmul.f32 1.442695, %v1266_v25 }
 0xb7a   :  { %3332 = vpow2.f32 %v1271_v26 }
 0xb7b   :  { %3334 = vpow2.f32 %v1273_v27 }
 0xb80   :  { %v3329_v28 = vpop.eup %3328 }
 0xb81   :  { %v3331_v30 = vpop.eup %3330  ;;  %v1275_v31 = vmul.f32 %v3329_v28, %v4203_v51  ;;  %v3210_v51 = vld [vmem:[%s4553_s27 + $0x4] ss:$8 sps:$4 sm:$0xff]  }
 0xb82   :  { %v1276_v32 = vmul.f32 %v3331_v30, %v4200_v50  ;;  %1505 = vmatprep.subr.bf16.mxu1 %v3210_v51 }
 0xb83   :  { %v1279_v33 = vsel %vm543_vm7, %v1275_v31, 0.0 }
 0xb84   :  { %v3333_v34 = vpop.eup %3332  ;;  %1280 = vadd.xlane.f32.xlu0 %v1279_v33  ;;  %v1282_v35 = vsel %vm543_vm7, %v1276_v32, 0.0 }
 0xb85   :  { %v3335_v36 = vpop.eup %3334  ;;  %1283 = vadd.xlane.f32.xlu1 %v1282_v35  ;;  %v1277_v37 = vmul.f32 %v3333_v34, %v4210_v56 }
 0xb86   :  { %v1278_v38 = vmul.f32 %v3335_v36, %v4207_v55 }
 0xb87   :  { %v1285_v39 = vsel %vm543_vm7, %v1277_v37, 0.0 }
 0xb88   :  { %1286 = vadd.xlane.f32.xlu0 %v1285_v39  ;;  %v1288_v40 = vsel %vm543_vm7, %v1278_v38, 0.0 }
 0xb89   :  { %1289 = vadd.xlane.f32.xlu1 %v1288_v40 }
 0xc11   :  { %v1281_v50 = vpop.xlane.xlu0 %1280 }
 0xc12   :  { %3336 = vrcp.f32 %v1281_v50  ;;  %v1284_v41 = vpop.xlane.xlu1 %1283 }
 0xc13   :  { %3338 = vrcp.f32 %v1284_v41 }
 0xc15   :  { %v1287_v29 = vpop.xlane.xlu0 %1286 }
 0xc16   :  { %3340 = vrcp.f32 %v1287_v29  ;;  %v1290_v42 = vpop.xlane.xlu1 %1289 }
 0xc17   :  { %3342 = vrcp.f32 %v1290_v42 }
 0xc1c   :  { %v3337_v56 = vpop.eup %3336 }
 0xc1d   :  { %v3339_v55 = vpop.eup %3338  ;;  %v1295_v43 = vmul.f32 %v3337_v56, %v1275_v31 }
 0xc1e   :  { %v1296_v44 = vmul.f32 %v3339_v55, %v1276_v32 }
 0xc20   :  { %v3341_v45 = vpop.eup %3340  ;;  %v1299_v46 = vpack.c.bf16 %v1296_v44, %v1295_v43 }
 0xc21   :  { %v3343_v47 = vpop.eup %3342  ;;  %v1297_v48 = vmul.f32 %v3341_v45, %v1277_v37 }
 0xc22   :  { %v1298_v49 = vmul.f32 %v3343_v47, %v1278_v38  ;;  %3046 = vmatprep.mubr.msk.bf16.mxu1 %vm543_vm7, %v1299_v46 }
 0xc24   :  { %v1300_v53 = vpack.c.bf16 %v1298_v49, %v1297_v48 }
 0xc26   :  { %3047 = vmatmul.mubr.msk.bf16.vlgmr.msra.gmra.mrb[16].mxu1 %vm543_vm7, %v1300_v53 }
 0xc27   :  { %1506 = vmatpush1.bf16.msra.mxu1 %v3208_v52  ;;  %1537 = vmatprep.mubr.bf16.mxu1 %v3889_v1 }
 0xc28   :  { %1507 = vmatprep.subr.bf16.mxu1 %v3213_v54 }
 0xc2b   :  { %1508 = vmatpush1.bf16.msra.mxu1 %v3211_v57  ;;  %v1590_v57 = vld [vmem:[#allocation20] sm:$0x3] }
 0xc2c   :  { %1509 = vmatprep.subr.bf16.mxu1 %v3216_v58  ;;  %v1599_v58 = vrot.slane %v1590_v57, %v4175_v11 }
 0xc2e   :  { %1666 = vmatprep.mubr.f32.mxu0 %v1599_v58 }
 0xc2f   :  { %1510 = vmatpush1.bf16.msra.mxu1 %v3214_v59  ;;  %v1558_v59 = vld [vmem:[#allocation22] sm:$0x3] }
 0xc30   :  { %1511 = vmatprep.subr.bf16.mxu1 %v3219_v60  ;;  %v1563_v60 = vrot.slane %v1558_v59, %v4173_v10 }
 0xc33   :  { %1512 = vmatpush1.bf16.msra.mxu1 %v3217_v61  ;;  %v1567_v61 = vrot.slane %v1558_v59, %v4175_v11 }
 0xc34   :  { %1513 = vmatprep.subr.bf16.mxu1 %v3222_v62 }
 0xc37   :  { %1514 = vmatpush1.bf16.msra.mxu1 %v3220_v63 }
 0xc38   :  { %1515 = vmatprep.subr.bf16.mxu1 %v3225_v2 }
 0xc3b   :  { %1516 = vmatpush1.bf16.msra.mxu1 %v3223_v3 }
 0xc3c   :  { %1517 = vmatprep.subr.bf16.mxu1 %v3228_v4 }
 0xc3f   :  { %1518 = vmatpush1.bf16.msra.mxu1 %v3226_v9 }
 0xc40   :  { %1519 = vmatprep.subr.bf16.mxu1 %v3231_v12 }
 0xc43   :  { %1520 = vmatpush1.bf16.msra.mxu1 %v3229_v13 }
 0xcf9   :  { %v3048_v17 = vpop.f32.mrb[16].mxu1 }
 0xcfa   :  { %v1359_v19 = vadd.f32 %v3048_v17, %v2831_v14  ;;  %v1350_v20 = vpop.f32.mrb[17].mxu1 }
 0xcfb   :  { %v1351_v22 = vadd.f32 %v2831_v14, %v1350_v20  ;;  %v3049_v23 = vpop.f32.mrb[18].mxu1 }
 0xcfc   :  { %v1374_v24 = vmul.f32 %v2834_v18, %v1359_v19  ;;  %v1362_v25 = vadd.f32 %v3049_v23, %v2831_v14  ;;  %v1353_v26 = vpop.f32.mrb[19].mxu1 }
 0xcfd   :  { %v1372_v27 = vmul.f32 %v2834_v18, %v1351_v22  ;;  %v1354_v28 = vadd.f32 %v2831_v14, %v1353_v26 }
 0xcfe   :  { %v1385_v30 = vadd.f32 %v2835_v21, %v1374_v24  ;;  %v1375_v31 = vmul.f32 %v2834_v18, %v1362_v25 }
 0xcff   :  { %v1383_v32 = vadd.f32 %v2835_v21, %v1372_v27  ;;  %v1373_v33 = vmul.f32 %v2834_v18, %v1354_v28 }
 0xd00   :  { %v1393_v34 = vmul.f32 0.70710677, %v1385_v30  ;;  %v1386_v35 = vadd.f32 %v2835_v21, %v1375_v31  ;;  %v1389_v56 = vmul.f32 0.5, %v1385_v30 }
 0xd01   :  { %v1391_v36 = vmul.f32 0.70710677, %v1383_v32  ;;  %v1384_v37 = vadd.f32 %v2835_v21, %v1373_v33  ;;  %v1387_v44 = vmul.f32 0.5, %v1383_v32  ;;  %v1595_v33 = vrot.slane %v1590_v57, %v4173_v10 }
 0xd02   :  { %3344 = verf.f32 %v1393_v34  ;;  %v1394_v38 = vmul.f32 0.70710677, %v1386_v35  ;;  %v1390_v55 = vmul.f32 0.5, %v1386_v35 }
 0xd03   :  { %3346 = verf.f32 %v1391_v36  ;;  %v1392_v39 = vmul.f32 0.70710677, %v1384_v37  ;;  %v1388_v45 = vmul.f32 0.5, %v1384_v37 }
 0xd04   :  { %3348 = verf.f32 %v1394_v38 }
 0xd05   :  { %3350 = verf.f32 %v1392_v39 }
 0xd0c   :  { %v3345_v40 = vpop.eup %3344 }
 0xd0d   :  { %v3347_v51 = vpop.eup %3346  ;;  %v1401_v50 = vadd.f32 1.0, %v3345_v40 }
 0xd0e   :  { %v3349_v41 = vpop.eup %3348  ;;  %v1399_v29 = vadd.f32 1.0, %v3347_v51 }
 0xd0f   :  { %v3351_v42 = vpop.eup %3350  ;;  %v1402_v43 = vadd.f32 1.0, %v3349_v41  ;;  %v1405_v47 = vmul.f32 %v1401_v50, %v1389_v56 }
 0xd10   :  { %v1400_v46 = vadd.f32 1.0, %v3351_v42  ;;  %v1403_v49 = vmul.f32 %v1399_v29, %v1387_v44 }
 0xd11   :  { %v1406_v48 = vmul.f32 %v1402_v43, %v1390_v55 }
 0xd12   :  { %v1404_v52 = vmul.f32 %v1400_v46, %v1388_v45 }
 0xd13   :  { %v1408_v53 = vpack.c.bf16 %v1406_v48, %v1405_v47 }
 0xd14   :  { %v1407_v54 = vpack.c.bf16 %v1404_v52, %v1403_v49 }
 0xd16   :  { %1538 = vmatmul.mubr.bf16.vlgmr.msra.gmra.mrb[20].mxu1 %v1407_v54 }
 0xd17   :  { %1547 = vmatprep.mubr.bf16.mxu1 %v3889_v1 }
 0xd1e   :  { %1548 = vmatmul.mubr.bf16.gmra.mrb[24].mxu1 %v1408_v53 }
 0xde9   :  { %v1539_v62 = vpop.f32.mrb[20].mxu1 }
 0xdea   :  { %v1570_v63 = vmul.f32 %v1563_v60, %v1539_v62  ;;  %v1541_v2 = vpop.f32.mrb[21].mxu1 }
 0xdeb   :  { %v1571_v3 = vmul.f32 %v1567_v61, %v1541_v2  ;;  %v1543_v4 = vpop.f32.mrb[22].mxu1 }
 0xdec   :  { %v1572_v9 = vmul.f32 %v1563_v60, %v1543_v4  ;;  %v3081_v12 = vpack.c.bf16 %v1543_v4, %v1539_v62  ;;  %v1545_v13 = vpop.f32.mrb[23].mxu1 }
 0xded   :  { %v1573_v14 = vmul.f32 %v1567_v61, %v1545_v13  ;;  %v3079_v17 = vpack.c.bf16 %v1545_v13, %v1541_v2  ;;  %v1578_v18 = vadd.f32 %v1571_v3, %v1570_v63 }
 0xdef   :  { %1579 = vadd.xlane.f32.xlu0 %v1578_v18  ;;  %3080 = vmatprep.subr.bf16.mxu0 %v3079_v17  ;;  %v1581_v19 = vadd.f32 %v1573_v14, %v1572_v9 }
 0xdf0   :  { %3082 = vmatpush1.bf16.xpose.msra.mxu0 %v3081_v12 }
 0xdf1   :  { %1582 = vadd.xlane.f32.xlu1 %v1581_v19  ;;  %v1549_v20 = vpop.f32.mrb[24].mxu1 }
 0xdf2   :  { %v1574_v21 = vmul.f32 %v1563_v60, %v1549_v20  ;;  %v1551_v22 = vpop.f32.mrb[25].mxu1 }
 0xdf3   :  { %v1575_v23 = vmul.f32 %v1567_v61, %v1551_v22  ;;  %v1553_v24 = vpop.f32.mrb[26].mxu1 }
 0xdf4   :  { %v1576_v25 = vmul.f32 %v1563_v60, %v1553_v24  ;;  %v3085_v26 = vpack.c.bf16 %v1553_v24, %v1549_v20  ;;  %v1555_v27 = vpop.f32.mrb[27].mxu1  ;;  %v4334_v20 = vld [vmem:[%s4551_s8] sm:$0xff] }
 0xdf5   :  { %v1577_v28 = vmul.f32 %v1567_v61, %v1555_v27  ;;  %v3083_v30 = vpack.c.bf16 %v1555_v27, %v1551_v22  ;;  %v1584_v31 = vadd.f32 %v1575_v23, %v1574_v21  ;;  %v4338_v22 = vld [vmem:[%s4551_s8 + $0x8] sm:$0xff] }
 0xdf7   :  { %1585 = vadd.xlane.f32.xlu0 %v1584_v31  ;;  %3084 = vmatprep.subr.bf16.mxu0 %v3083_v30  ;;  %v1587_v32 = vadd.f32 %v1577_v28, %v1576_v25  ;;  %v4344_v28 = vld [vmem:[%s4551_s8 + $0x10] sm:$0xff]  ;;  %v4348_v31 = vld [vmem:[%s4551_s8 + $0x18] sm:$0xff] }
 0xdf8   :  { %3086 = vmatpush1.bf16.xpose.msra.mxu0 %v3085_v26 }
 0xdf9   :  { %1764 = vmatprep.subr.bf16.mxu0 %v3079_v17  ;;  %1588 = vadd.xlane.f32.xlu1 %v1587_v32 }
 0xdff   :  { %1667 = vmatmul.mubr.f32.vlgmr.msra.gmra.mrb[8].mxu0 %v1595_v33 }
 0xe00   :  { %1765 = vmatpush1.bf16.msra.mxu0 %v3081_v12  ;;  %1796 = vmatprep.mubr.bf16.mxu0 %v3889_v1 }
 0xe01   :  { %1766 = vmatprep.subr.bf16.mxu0 %v3083_v30 }
 0xe04   :  { %1767 = vmatpush1.bf16.msra.mxu0 %v3085_v26 }
 0xe7c   :  { %v1580_v34 = vpop.xlane.xlu0 %1579 }
 0xe7e   :  { %v1583_v35 = vpop.xlane.xlu1 %1582 }
 0xe84   :  { %v1586_v39 = vpop.xlane.xlu0 %1585 }
 0xe86   :  { %v1589_v40 = vpop.xlane.xlu1 %1588 }
 0xed2   :  { %v1668_v36 = vpop.f32.mrb[8].mxu0 }
 0xed3   :  { %v1675_v37 = vrot.slane %v1668_v36, %v4173_v10  ;;  %v1670_v38 = vpop.f32.mrb[9].mxu0 }
 0xed5   :  { %v1676_v51 = vadd.f32 %v1675_v37, %v1580_v34  ;;  %v1677_v50 = vadd.f32 %v1675_v37, %v1583_v35  ;;  %v1678_v41 = vadd.f32 %v1675_v37, %v1586_v39  ;;  %v1679_v29 = vadd.f32 %v1675_v37, %v1589_v40  ;;  %v3234_v35 = vld [vmem:[%s4556_s15 + $0x4] ss:$8 sps:$4 sm:$0xff]  }
 0xed6   :  { %2053 = vmatprep.subr.bf16.mxu0 %v3234_v35 }
 0xed7   :  { %v1680_v42 = vmul.f32 0.2, %v1676_v51  ;;  %v1681_v56 = vmul.f32 0.2, %v1677_v50  ;;  %v1682_v55 = vmul.f32 0.2, %v1678_v41 }
 0xed8   :  { %v1683_v43 = vmul.f32 0.2, %v1679_v29 }
 0xed9   :  { %v1684_v44 = vmax.f32 %v1676_v51, %v1680_v42  ;;  %v1685_v45 = vmax.f32 %v1677_v50, %v1681_v56  ;;  %v1686_v46 = vmax.f32 %v1678_v41, %v1682_v55  ;;  %v3237_v55 = vld [vmem:[%s4556_s15 + $0x14] ss:$8 sps:$4 sm:$0xff]  }
 0xeda   :  { %v1687_v47 = vmax.f32 %v1679_v29, %v1683_v43  ;;  %v3232_v29 = vld [vmem:[%s4556_s15] ss:$8 sps:$4 sm:$0xff]  }
 0xedb   :  { %v1688_v48 = vadd.f32 %v1684_v44, %v4218_v8  ;;  %v1689_v49 = vadd.f32 %v1685_v45, %v4216_v5  ;;  %v1690_v54 = vadd.f32 %v1686_v46, %v4222_v16  ;;  %v3235_v44 = vld [vmem:[%s4556_s15 + $0x10] ss:$8 sps:$4 sm:$0xff]  }
 0xedc   :  { %v1691_v57 = vadd.f32 %v1687_v47, %v4220_v15  ;;  %v3240_v47 = vld [vmem:[%s4556_s15 + $0x24] ss:$8 sps:$4 sm:$0xff]  }
 0xedd   :  { %v1692_v52 = vsel %vm543_vm7, %v1688_v48, -inf  ;;  %v1695_v53 = vsel %vm543_vm7, %v1689_v49, -inf  ;;  %v1698_v58 = vsel %vm543_vm7, %v1690_v54, -inf }
 0xede   :  { %1693 = vmax.xlane.f32.xlu0 %v1692_v52  ;;  %1696 = vmax.xlane.f32.xlu1 %v1695_v53  ;;  %v1701_v59 = vsel %vm543_vm7, %v1691_v57, -inf  ;;  %v3243_v52 = vld [vmem:[%s4556_s15 + $0x34] ss:$8 sps:$4 sm:$0xff]   ;;  %v3241_v53 = vld [vmem:[%s4556_s15 + $0x30] ss:$8 sps:$4 sm:$0xff]  }
 0xee2   :  { %1699 = vmax.xlane.f32.xlu0 %v1698_v58  ;;  %1702 = vmax.xlane.f32.xlu1 %v1701_v59  ;;  %v3249_v58 = vld [vmem:[%s4556_s15 + $0x54] ss:$8 sps:$4 sm:$0xff]   ;;  %v3247_v59 = vld [vmem:[%s4556_s15 + $0x50] ss:$8 sps:$4 sm:$0xff]  }
 0xf6b   :  { %v1694_v60 = vpop.xlane.xlu0 %1693  ;;  %v1697_v61 = vpop.xlane.xlu1 %1696 }
 0xf6c   :  { %v1704_v62 = vsub.f32 %v1688_v48, %v1694_v60  ;;  %v1705_v63 = vsub.f32 %v1689_v49, %v1697_v61  ;;  %v3238_v48 = vld [vmem:[%s4556_s15 + $0x20] ss:$8 sps:$4 sm:$0xff]   ;;  %v3252_v60 = vld [vmem:[%s4556_s15 + $0x64] ss:$8 sps:$4 sm:$0xff]  }
 0xf6d   :  { %v3250_v61 = vld [vmem:[%s4556_s15 + $0x60] ss:$8 sps:$4 sm:$0xff]  }
 0xf6e   :  { %v1708_v2 = vmul.f32 1.442695, %v1704_v62  ;;  %v1710_v3 = vmul.f32 1.442695, %v1705_v63  ;;  %v3255_v62 = vld [vmem:[%s4556_s15 + $0x74] ss:$8 sps:$4 sm:$0xff]  }
 0xf6f   :  { %v1700_v4 = vpop.xlane.xlu0 %1699  ;;  %v1703_v9 = vpop.xlane.xlu1 %1702  ;;  %v3253_v63 = vld [vmem:[%s4556_s15 + $0x70] ss:$8 sps:$4 sm:$0xff]  }
 0xf70   :  { %3352 = vpow2.f32 %v1708_v2  ;;  %v1706_v12 = vsub.f32 %v1690_v54, %v1700_v4  ;;  %v1707_v13 = vsub.f32 %v1691_v57, %v1703_v9  ;;  %v3246_v54 = vld [vmem:[%s4556_s15 + $0x44] ss:$8 sps:$4 sm:$0xff]   ;;  %v3244_v57 = vld [vmem:[%s4556_s15 + $0x40] ss:$8 sps:$4 sm:$0xff]   ;;  %v3261_v4 = vld [vmem:[%s4556_s15 + $0x94] ss:$8 sps:$4 sm:$0xff]  }
 0xf71   :  { %3354 = vpow2.f32 %v1710_v3  ;;  %v3258_v2 = vld [vmem:[%s4556_s15 + $0x84] ss:$8 sps:$4 sm:$0xff]   ;;  %v3256_v3 = vld [vmem:[%s4556_s15 + $0x80] ss:$8 sps:$4 sm:$0xff]   ;;  %v3259_v9 = vld [vmem:[%s4556_s15 + $0x90] ss:$8 sps:$4 sm:$0xff]  }
 0xf72   :  { %v1712_v14 = vmul.f32 1.442695, %v1706_v12  ;;  %v1714_v17 = vmul.f32 1.442695, %v1707_v13  ;;  %v3264_v12 = vld [vmem:[%s4556_s15 + $0xa4] ss:$8 sps:$4 sm:$0xff]  }
 0xf73   :  { %v3262_v13 = vld [vmem:[%s4556_s15 + $0xa0] ss:$8 sps:$4 sm:$0xff]  }
 0xf74   :  { %3356 = vpow2.f32 %v1712_v14  ;;  %v3267_v14 = vld [vmem:[%s4556_s15 + $0xb4] ss:$8 sps:$4 sm:$0xff]  }
 0xf75   :  { %3358 = vpow2.f32 %v1714_v17  ;;  %v3265_v17 = vld [vmem:[%s4556_s15 + $0xb0] ss:$8 sps:$4 sm:$0xff]  }
 0xf7a   :  { %v3353_v18 = vpop.eup %3352 }
 0xf7b   :  { %v3355_v19 = vpop.eup %3354  ;;  %v1716_v21 = vmul.f32 %v4334_v20, %v3353_v18  ;;  %v3270_v18 = vld [vmem:[%s4556_s15 + $0xc4] ss:$8 sps:$4 sm:$0xff]  }
 0xf7c   :  { %v1717_v23 = vmul.f32 %v4338_v22, %v3355_v19  ;;  %v3268_v19 = vld [vmem:[%s4556_s15 + $0xc0] ss:$8 sps:$4 sm:$0xff]  }
 0xf7d   :  { %v1720_v24 = vsel %vm543_vm7, %v1716_v21, 0.0 }
 0xf7e   :  { %v3357_v25 = vpop.eup %3356  ;;  %1721 = vadd.xlane.f32.xlu0 %v1720_v24  ;;  %v1723_v26 = vsel %vm543_vm7, %v1717_v23, 0.0  ;;  %v3276_v24 = vld [vmem:[%s4556_s15 + $0xe4] ss:$8 sps:$4 sm:$0xff]  }
 0xf7f   :  { %v3359_v27 = vpop.eup %3358  ;;  %1724 = vadd.xlane.f32.xlu1 %v1723_v26  ;;  %v1718_v30 = vmul.f32 %v4344_v28, %v3357_v25  ;;  %v3274_v25 = vld [vmem:[%s4556_s15 + $0xe0] ss:$8 sps:$4 sm:$0xff]   ;;  %v3279_v26 = vld [vmem:[%s4556_s15 + $0xf4] ss:$8 sps:$4 sm:$0xff]  }
 0xf80   :  { %v1719_v32 = vmul.f32 %v4348_v31, %v3359_v27  ;;  %v3277_v27 = vld [vmem:[%s4556_s15 + $0xf0] ss:$8 sps:$4 sm:$0xff]  }
 0xf81   :  { %v1726_v33 = vsel %vm543_vm7, %v1718_v30, 0.0 }
 0xf82   :  { %1727 = vadd.xlane.f32.xlu0 %v1726_v33  ;;  %v1729_v34 = vsel %vm543_vm7, %v1719_v32, 0.0 }
 0xf83   :  { %1730 = vadd.xlane.f32.xlu1 %v1729_v34 }
0x100b   :  { %v1722_v36 = vpop.xlane.xlu0 %1721 }
0x100c   :  { %3360 = vrcp.f32 %v1722_v36  ;;  %v1725_v37 = vpop.xlane.xlu1 %1724 }
0x100d   :  { %3362 = vrcp.f32 %v1725_v37 }
0x100f   :  { %v1728_v38 = vpop.xlane.xlu0 %1727 }
0x1010   :  { %3364 = vrcp.f32 %v1728_v38  ;;  %v1731_v39 = vpop.xlane.xlu1 %1730 }
0x1011   :  { %3366 = vrcp.f32 %v1731_v39 }
0x1016   :  { %v3361_v40 = vpop.eup %3360 }
0x1017   :  { %v3363_v51 = vpop.eup %3362  ;;  %v1736_v50 = vmul.f32 %v3361_v40, %v1716_v21  ;;  %v3273_v21 = vld [vmem:[%s4556_s15 + $0xd4] ss:$8 sps:$4 sm:$0xff]  }
0x1018   :  { %v1737_v41 = vmul.f32 %v3363_v51, %v1717_v23  ;;  %v3271_v23 = vld [vmem:[%s4556_s15 + $0xd0] ss:$8 sps:$4 sm:$0xff]  }
0x101a   :  { %v3365_v42 = vpop.eup %3364  ;;  %v1740_v56 = vpack.c.bf16 %v1737_v41, %v1736_v50 }
0x101b   :  { %v3367_v43 = vpop.eup %3366  ;;  %v1738_v45 = vmul.f32 %v3365_v42, %v1718_v30  ;;  %v1746_v30 = vld [vmem:[#allocation23] sm:$0x3] }
0x101c   :  { %2852 = vmatmul.mubr.msk.bf16.vlgmr.msra.gmra.mrb[12].mxu0 %vm543_vm7, %v1740_v56  ;;  %v1739_v46 = vmul.f32 %v3367_v43, %v1719_v32  ;;  %v1751_v32 = vrot.slane %v1746_v30, %v4173_v10  ;;  %v1755_v33 = vrot.slane %v1746_v30, %v4175_v11 }
0x101d   :  { %1806 = vmatprep.mubr.bf16.mxu0 %v3889_v1  ;;  %2054 = vmatpush1.bf16.msra.mxu0 %v3232_v29 }
0x101e   :  { %2055 = vmatprep.subr.bf16.mxu0 %v3237_v55  ;;  %v1741_v49 = vpack.c.bf16 %v1739_v46, %v1738_v45 }
0x1021   :  { %2056 = vmatpush1.bf16.msra.mxu0 %v3235_v44 }
0x1022   :  { %2057 = vmatprep.subr.bf16.mxu0 %v3240_v47 }
0x1024   :  { %2853 = vmatmul.mubr.msk.bf16.gmra.mrb[16].mxu0 %vm543_vm7, %v1741_v49 }
0x1025   :  { %2058 = vmatpush1.bf16.msra.mxu0 %v3238_v48 }
0x1026   :  { %2059 = vmatprep.subr.bf16.mxu0 %v3243_v52 }
0x1029   :  { %2060 = vmatpush1.bf16.msra.mxu0 %v3241_v53 }
0x102a   :  { %2061 = vmatprep.subr.bf16.mxu0 %v3246_v54 }
0x102d   :  { %2062 = vmatpush1.bf16.msra.mxu0 %v3244_v57 }
0x102e   :  { %2063 = vmatprep.subr.bf16.mxu0 %v3249_v58 }
0x1031   :  { %2064 = vmatpush1.bf16.msra.mxu0 %v3247_v59 }
0x1032   :  { %2065 = vmatprep.subr.bf16.mxu0 %v3252_v60 }
0x1035   :  { %2066 = vmatpush1.bf16.msra.mxu0 %v3250_v61 }
0x1036   :  { %2067 = vmatprep.subr.bf16.mxu0 %v3255_v62 }
0x1039   :  { %2068 = vmatpush1.bf16.msra.mxu0 %v3253_v63 }
0x103a   :  { %2069 = vmatprep.subr.bf16.mxu0 %v3258_v2 }
0x103d   :  { %2070 = vmatpush1.bf16.msra.mxu0 %v3256_v3 }
0x103e   :  { %2071 = vmatprep.subr.bf16.mxu0 %v3261_v4 }
0x1041   :  { %2072 = vmatpush1.bf16.msra.mxu0 %v3259_v9 }
0x1042   :  { %2073 = vmatprep.subr.bf16.mxu0 %v3264_v12 }
0x1045   :  { %2074 = vmatpush1.bf16.msra.mxu0 %v3262_v13 }
0x1046   :  { %2075 = vmatprep.subr.bf16.mxu0 %v3267_v14 }
0x1049   :  { %2076 = vmatpush1.bf16.msra.mxu0 %v3265_v17 }
0x104a   :  { %2077 = vmatprep.subr.bf16.mxu0 %v3270_v18 }
0x104d   :  { %2078 = vmatpush1.bf16.msra.mxu0 %v3268_v19 }
0x104e   :  { %2079 = vmatprep.subr.bf16.mxu0 %v3273_v21 }
0x1051   :  { %2080 = vmatpush1.bf16.msra.mxu0 %v3271_v23 }
0x1052   :  { %2081 = vmatprep.subr.bf16.mxu0 %v3276_v24 }
0x1055   :  { %2082 = vmatpush1.bf16.msra.mxu0 %v3274_v25 }
0x1056   :  { %2083 = vmatprep.subr.bf16.mxu0 %v3279_v26 }
0x1059   :  { %2084 = vmatpush1.bf16.msra.mxu0 %v3277_v27 }
0x10ef   :  { %v1798_v34 = vpop.f32.mrb[12].mxu0 }
0x10f0   :  { %v1799_v35 = vadd.f32 %v1798_v34, %v1751_v32  ;;  %v1800_v36 = vpop.f32.mrb[13].mxu0 }
0x10f1   :  { %v1801_v37 = vadd.f32 %v1800_v36, %v1755_v33  ;;  %v1802_v38 = vpop.f32.mrb[14].mxu0 }
0x10f2   :  { %v1825_v39 = vmul.f32 0.70710677, %v1799_v35  ;;  %v1803_v40 = vadd.f32 %v1802_v38, %v1751_v32  ;;  %v1804_v51 = vpop.f32.mrb[15].mxu0  ;;  %v1817_v63 = vmul.f32 0.5, %v1799_v35 }
0x10f3   :  { %v1826_v50 = vmul.f32 0.70710677, %v1801_v37  ;;  %v1805_v41 = vadd.f32 %v1804_v51, %v1755_v33  ;;  %v1818_v4 = vmul.f32 0.5, %v1801_v37 }
0x10f4   :  { %3368 = verf.f32 %v1825_v39  ;;  %v1827_v29 = vmul.f32 0.70710677, %v1803_v40  ;;  %v1819_v2 = vmul.f32 0.5, %v1803_v40 }
0x10f5   :  { %3370 = verf.f32 %v1826_v50  ;;  %v1828_v42 = vmul.f32 0.70710677, %v1805_v41  ;;  %v1820_v9 = vmul.f32 0.5, %v1805_v41 }
0x10f6   :  { %3372 = verf.f32 %v1827_v29  ;;  %v2138_v29 = vld [vmem:[#allocation25] sm:$0x3] }
0x10f7   :  { %3374 = verf.f32 %v1828_v42  ;;  %v1808_v56 = vpop.f32.mrb[16].mxu0  ;;  %v2147_v42 = vrot.slane %v2138_v29, %v4175_v11 }
0x10f8   :  { %v1809_v55 = vadd.f32 %v1808_v56, %v1751_v32  ;;  %v1810_v43 = vpop.f32.mrb[17].mxu0  ;;  %v2106_v56 = vld [vmem:[#allocation26] sm:$0x3] }
0x10f9   :  { %v1811_v44 = vadd.f32 %v1810_v43, %v1755_v33  ;;  %v1812_v45 = vpop.f32.mrb[18].mxu0  ;;  %2214 = vmatprep.mubr.f32.mxu1 %v2147_v42  ;;  %v2115_v43 = vrot.slane %v2106_v56, %v4175_v11 }
0x10fa   :  { %v1829_v46 = vmul.f32 0.70710677, %v1809_v55  ;;  %v1813_v47 = vadd.f32 %v1812_v45, %v1751_v32  ;;  %v1814_v48 = vpop.f32.mrb[19].mxu0  ;;  %v1821_v32 = vmul.f32 0.5, %v1809_v55  ;;  %v2111_v55 = vrot.slane %v2106_v56, %v4173_v10 }
0x10fb   :  { %v1830_v49 = vmul.f32 0.70710677, %v1811_v44  ;;  %v1815_v52 = vadd.f32 %v1814_v48, %v1755_v33  ;;  %v1822_v35 = vmul.f32 0.5, %v1811_v44 }
0x10fc   :  { %3376 = verf.f32 %v1829_v46  ;;  %v1831_v53 = vmul.f32 0.70710677, %v1813_v47  ;;  %v1823_v33 = vmul.f32 0.5, %v1813_v47 }
0x10fd   :  { %3378 = verf.f32 %v1830_v49  ;;  %v1832_v54 = vmul.f32 0.70710677, %v1815_v52  ;;  %v1824_v36 = vmul.f32 0.5, %v1815_v52 }
0x10fe   :  { %v3369_v57 = vpop.eup %3368  ;;  %3380 = verf.f32 %v1831_v53 }
0x10ff   :  { %v3371_v58 = vpop.eup %3370  ;;  %v1841_v59 = vadd.f32 1.0, %v3369_v57  ;;  %3382 = verf.f32 %v1832_v54 }
0x1100   :  { %v3373_v60 = vpop.eup %3372  ;;  %v1842_v61 = vadd.f32 1.0, %v3371_v58 }
0x1101   :  { %v3375_v62 = vpop.eup %3374  ;;  %v1843_v3 = vadd.f32 1.0, %v3373_v60  ;;  %v1849_v13 = vmul.f32 %v1841_v59, %v1817_v63 }
0x1102   :  { %v1844_v12 = vadd.f32 1.0, %v3375_v62  ;;  %v1850_v17 = vmul.f32 %v1842_v61, %v1818_v4 }
0x1103   :  { %v1851_v14 = vmul.f32 %v1843_v3, %v1819_v2 }
0x1104   :  { %v1852_v18 = vmul.f32 %v1844_v12, %v1820_v9 }
0x1105   :  { %v1857_v19 = vpack.c.bf16 %v1851_v14, %v1849_v13 }
0x1106   :  { %v3377_v21 = vpop.eup %3376  ;;  %v1858_v23 = vpack.c.bf16 %v1852_v18, %v1850_v17  ;;  %v2143_v18 = vrot.slane %v2138_v29, %v4173_v10 }
0x1107   :  { %v3379_v24 = vpop.eup %3378  ;;  %v1845_v25 = vadd.f32 1.0, %v3377_v21 }
0x1108   :  { %v3381_v26 = vpop.eup %3380  ;;  %v1846_v27 = vadd.f32 1.0, %v3379_v24  ;;  %2085 = vmatprep.mubr.bf16.mxu0 %v1858_v23 }
0x1109   :  { %v3383_v30 = vpop.eup %3382  ;;  %v1847_v34 = vadd.f32 1.0, %v3381_v26  ;;  %2086 = vmatmul.mubr.bf16.vlgmr.msra.gmra.mrb[20].mxu0 %v1857_v19  ;;  %v1853_v38 = vmul.f32 %v1845_v25, %v1821_v32 }
0x110a   :  { %v1848_v37 = vadd.f32 1.0, %v3383_v30  ;;  %v1854_v40 = vmul.f32 %v1846_v27, %v1822_v35 }
0x110b   :  { %v1855_v39 = vmul.f32 %v1847_v34, %v1823_v33 }
0x110c   :  { %v1856_v51 = vmul.f32 %v1848_v37, %v1824_v36 }
0x110d   :  { %v1859_v50 = vpack.c.bf16 %v1855_v39, %v1853_v38 }
0x110e   :  { %v1860_v41 = vpack.c.bf16 %v1856_v51, %v1854_v40 }
0x1110   :  { %2095 = vmatprep.mubr.bf16.mxu0 %v1860_v41 }
0x1111   :  { %2096 = vmatmul.mubr.bf16.gmra.mrb[24].mxu0 %v1859_v50 }
0x11dc   :  { %v2087_v44 = vpop.f32.mrb[20].mxu0 }
0x11dd   :  { %v2118_v45 = vmul.f32 %v2111_v55, %v2087_v44  ;;  %v2089_v46 = vpop.f32.mrb[21].mxu0 }
0x11de   :  { %v2119_v47 = vmul.f32 %v2115_v43, %v2089_v46  ;;  %v2091_v48 = vpop.f32.mrb[22].mxu0 }
0x11df   :  { %v2120_v49 = vmul.f32 %v2111_v55, %v2091_v48  ;;  %v3089_v52 = vpack.c.bf16 %v2091_v48, %v2087_v44  ;;  %v2093_v53 = vpop.f32.mrb[23].mxu0 }
0x11e0   :  { %v2121_v54 = vmul.f32 %v2115_v43, %v2093_v53  ;;  %v3087_v57 = vpack.c.bf16 %v2093_v53, %v2089_v46  ;;  %v2126_v58 = vadd.f32 %v2119_v47, %v2118_v45 }
0x11e2   :  { %2127 = vadd.xlane.f32.xlu0 %v2126_v58  ;;  %3088 = vmatprep.subr.bf16.mxu1 %v3087_v57  ;;  %v2129_v59 = vadd.f32 %v2121_v54, %v2120_v49 }
0x11e3   :  { %3090 = vmatpush1.bf16.xpose.msra.mxu1 %v3089_v52 }
0x11e4   :  { %2130 = vadd.xlane.f32.xlu1 %v2129_v59  ;;  %v2097_v60 = vpop.f32.mrb[24].mxu0 }
0x11e5   :  { %v2122_v61 = vmul.f32 %v2111_v55, %v2097_v60  ;;  %v2099_v62 = vpop.f32.mrb[25].mxu0 }
0x11e6   :  { %v2123_v63 = vmul.f32 %v2115_v43, %v2099_v62  ;;  %v2101_v2 = vpop.f32.mrb[26].mxu0 }
0x11e7   :  { %v2124_v3 = vmul.f32 %v2111_v55, %v2101_v2  ;;  %v3093_v4 = vpack.c.bf16 %v2101_v2, %v2097_v60  ;;  %v2103_v9 = vpop.f32.mrb[27].mxu0 }
0x11e8   :  { %v2125_v12 = vmul.f32 %v2115_v43, %v2103_v9  ;;  %v3091_v13 = vpack.c.bf16 %v2103_v9, %v2099_v62  ;;  %v2132_v14 = vadd.f32 %v2123_v63, %v2122_v61 }
0x11ea   :  { %2133 = vadd.xlane.f32.xlu0 %v2132_v14  ;;  %3092 = vmatprep.subr.bf16.mxu1 %v3091_v13  ;;  %v2135_v17 = vadd.f32 %v2125_v12, %v2124_v3  ;;  %v2445_v14 = vld [vmem:[%s4557_s19] sm:$0xff] }
0x11eb   :  { %3094 = vmatpush1.bf16.xpose.msra.mxu1 %v3093_v4  ;;  %vm2449_vm10 = vcmp.gt.f32.partialorder %v2445_v14, 0.0  ;;  %v2557_v14 = vld [vmem:[%s4558_s13 + $0x68] sm:$0xff] }
0x11ec   :  { %2312 = vmatprep.subr.bf16.mxu1 %v3087_v57  ;;  %2136 = vadd.xlane.f32.xlu1 %v2135_v17 }
0x11f2   :  { %2215 = vmatmul.mubr.f32.vlgmr.msra.gmra.mrb[14].mxu1 %v2143_v18  ;;  %v2448_v18 = vld [vmem:[%s4557_s19 + $0x18] sm:$0xff] }
0x11f3   :  { %2313 = vmatpush1.bf16.msra.mxu1 %v3089_v52  ;;  %2344 = vmatprep.mubr.bf16.mxu1 %v3889_v1  ;;  %vm2452_vm11 = vcmp.gt.f32.partialorder %v2448_v18, 0.0  ;;  %v2574_v18 = vld [vmem:[%s4558_s13 + $0xf0] sm:$0xff] }
0x11f4   :  { %2314 = vmatprep.subr.bf16.mxu1 %v3091_v13  ;;  %v2447_v13 = vld [vmem:[%s4557_s19 + $0x10] sm:$0xff] }
0x11f5   :  { %vm2451_vm9 = vcmp.gt.f32.partialorder %v2447_v13, 0.0  ;;  %v2556_v13 = vld [vmem:[%s4558_s13 + $0x60] sm:$0xff] }
0x11f7   :  { %2315 = vmatpush1.bf16.msra.mxu1 %v3093_v4 }
0x126f   :  { %v2128_v19 = vpop.xlane.xlu0 %2127 }
0x1271   :  { %v2131_v21 = vpop.xlane.xlu1 %2130 }
0x1277   :  { %v2134_v26 = vpop.xlane.xlu0 %2133 }
0x1279   :  { %v2137_v27 = vpop.xlane.xlu1 %2136 }
0x12c5   :  { %v2216_v23 = vpop.f32.mrb[14].mxu1 }
0x12c6   :  { %v2223_v24 = vrot.slane %v2216_v23, %v4173_v10  ;;  %v2218_v25 = vpop.f32.mrb[15].mxu1 }
0x12c8   :  { %v2224_v30 = vadd.f32 %v2223_v24, %v2128_v19  ;;  %v2225_v32 = vadd.f32 %v2223_v24, %v2131_v21  ;;  %v2226_v33 = vadd.f32 %v2223_v24, %v2134_v26  ;;  %v2227_v34 = vadd.f32 %v2223_v24, %v2137_v27 }
0x12c9   :  { %v2456_v19 = vsel %vm2452_vm11, 1, %v3889_v1 }
0x12ca   :  { %v2228_v35 = vmul.f32 0.2, %v2224_v30  ;;  %v2229_v36 = vmul.f32 0.2, %v2225_v32  ;;  %v2230_v37 = vmul.f32 0.2, %v2226_v33 }
0x12cb   :  { %v2231_v38 = vmul.f32 0.2, %v2227_v34 }
0x12cc   :  { %v2232_v39 = vmax.f32 %v2224_v30, %v2228_v35  ;;  %v2233_v40 = vmax.f32 %v2225_v32, %v2229_v36  ;;  %v2234_v51 = vmax.f32 %v2226_v33, %v2230_v37 }
0x12cd   :  { %v2235_v50 = vmax.f32 %v2227_v34, %v2231_v38  ;;  %v2560_v38 = vld [vmem:[%s4558_s13 + $0x80] sm:$0xff] }
0x12ce   :  { %v2236_v41 = vadd.f32 %v2232_v39, %v4218_v8  ;;  %v2237_v29 = vadd.f32 %v2233_v40, %v4216_v5  ;;  %v2238_v55 = vadd.f32 %v2234_v51, %v4222_v16  ;;  %v2561_v39 = vld [vmem:[%s4558_s13 + $0x88] sm:$0xff]  ;;  %v2544_v51 = vld [vmem:[%s4558_s13] sm:$0xff] }
0x12cf   :  { %v2239_v43 = vadd.f32 %v2235_v50, %v4220_v15  ;;  %v3095_v40 = vpack.c.bf16 %v2561_v39, %v2560_v38  ;;  %v2545_v50 = vld [vmem:[%s4558_s13 + $0x8] sm:$0xff] }
0x12d0   :  { %v2240_v42 = vsel %vm543_vm7, %v2236_v41, -inf  ;;  %v2243_v56 = vsel %vm543_vm7, %v2237_v29, -inf  ;;  %v2246_v44 = vsel %vm543_vm7, %v2238_v55, -inf }
0x12d1   :  { %2241 = vmax.xlane.f32.xlu0 %v2240_v42  ;;  %2244 = vmax.xlane.f32.xlu1 %v2243_v56  ;;  %v2249_v45 = vsel %vm543_vm7, %v2239_v43, -inf  ;;  %v2546_v56 = vld [vmem:[%s4558_s13 + $0x10] sm:$0xff] }
0x12d2   :  { %3096 = vmatprep.subr.bf16.mxu1 %v3095_v40 }
0x12d5   :  { %2247 = vmax.xlane.f32.xlu0 %v2246_v44  ;;  %2250 = vmax.xlane.f32.xlu1 %v2249_v45  ;;  %v2564_v44 = vld [vmem:[%s4558_s13 + $0xa0] sm:$0xff]  ;;  %v2565_v45 = vld [vmem:[%s4558_s13 + $0xa8] sm:$0xff] }
0x135e   :  { %v2242_v46 = vpop.xlane.xlu0 %2241  ;;  %v2245_v8 = vpop.xlane.xlu1 %2244 }
0x135f   :  { %v2252_v47 = vsub.f32 %v2236_v41, %v2242_v46  ;;  %v2253_v5 = vsub.f32 %v2237_v29, %v2245_v8  ;;  %v3097_v41 = vpack.c.bf16 %v2545_v50, %v2544_v51  ;;  %v2563_v29 = vld [vmem:[%s4558_s13 + $0x98] sm:$0xff]  ;;  %v3103_v46 = vpack.c.bf16 %v2565_v45, %v2564_v44  ;;  %v2548_v8 = vld [vmem:[%s4558_s13 + $0x20] sm:$0xff] }
0x1361   :  { %v2256_v48 = vmul.f32 1.442695, %v2252_v47  ;;  %v2258_v49 = vmul.f32 1.442695, %v2253_v5  ;;  %v2549_v47 = vld [vmem:[%s4558_s13 + $0x28] sm:$0xff] }
0x1362   :  { %v2248_v52 = vpop.xlane.xlu0 %2247  ;;  %v2251_v53 = vpop.xlane.xlu1 %2250  ;;  %v3105_v5 = vpack.c.bf16 %v2549_v47, %v2548_v8 }
0x1363   :  { %3384 = vpow2.f32 %v2256_v48  ;;  %v2254_v16 = vsub.f32 %v2238_v55, %v2248_v52  ;;  %v2255_v54 = vsub.f32 %v2239_v43, %v2251_v53  ;;  %v2547_v55 = vld [vmem:[%s4558_s13 + $0x18] sm:$0xff]  ;;  %v2566_v48 = vld [vmem:[%s4558_s13 + $0xb0] sm:$0xff] }
0x1364   :  { %3386 = vpow2.f32 %v2258_v49  ;;  %v3101_v43 = vpack.c.bf16 %v2547_v55, %v2546_v56  ;;  %v2567_v49 = vld [vmem:[%s4558_s13 + $0xb8] sm:$0xff]  ;;  %v2550_v53 = vld [vmem:[%s4558_s13 + $0x30] sm:$0xff] }
0x1365   :  { %v2260_v15 = vmul.f32 1.442695, %v2254_v16  ;;  %v2262_v57 = vmul.f32 1.442695, %v2255_v54  ;;  %v3107_v52 = vpack.c.bf16 %v2567_v49, %v2566_v48  ;;  %v2551_v16 = vld [vmem:[%s4558_s13 + $0x38] sm:$0xff] }
0x1366   :  { %v3109_v54 = vpack.c.bf16 %v2551_v16, %v2550_v53 }
0x1367   :  { %3388 = vpow2.f32 %v2260_v15  ;;  %v2568_v15 = vld [vmem:[%s4558_s13 + $0xc0] sm:$0xff] }
0x1368   :  { %3390 = vpow2.f32 %v2262_v57  ;;  %v2569_v57 = vld [vmem:[%s4558_s13 + $0xc8] sm:$0xff] }
0x136d   :  { %v3385_v58 = vpop.eup %3384 }
0x136e   :  { %v3387_v59 = vpop.eup %3386  ;;  %v2264_v60 = vmul.f32 %v4334_v20, %v3385_v58  ;;  %v3111_v58 = vpack.c.bf16 %v2569_v57, %v2568_v15 }
0x136f   :  { %v2265_v61 = vmul.f32 %v4338_v22, %v3387_v59  ;;  %v2446_v22 = vld [vmem:[%s4557_s19 + $0x8] sm:$0xff]  ;;  %v2552_v59 = vld [vmem:[%s4558_s13 + $0x40] sm:$0xff] }
0x1370   :  { %v2268_v62 = vsel %vm543_vm7, %v2264_v60, 0.0  ;;  %vm2450_vm8 = vcmp.gt.f32.partialorder %v2446_v22, 0.0 }
0x1371   :  { %v3389_v63 = vpop.eup %3388  ;;  %2269 = vadd.xlane.f32.xlu0 %v2268_v62  ;;  %v2271_v2 = vsel %vm543_vm7, %v2265_v61, 0.0  ;;  %v2454_v17 = vsel %vm2450_vm8, 1, %v3889_v1  ;;  %v2570_v62 = vld [vmem:[%s4558_s13 + $0xd0] sm:$0xff] }
0x1372   :  { %v3391_v3 = vpop.eup %3390  ;;  %2272 = vadd.xlane.f32.xlu1 %v2271_v2  ;;  %v2266_v4 = vmul.f32 %v4344_v28, %v3389_v63  ;;  %v2453_v28 = vsel %vm2449_vm10, 1, %v3889_v1  ;;  %v2571_v63 = vld [vmem:[%s4558_s13 + $0xd8] sm:$0xff]  ;;  %vm2740_vm10 = vcmask 9216  }
0x1373   :  { %v2267_v9 = vmul.f32 %v4348_v31, %v3391_v3  ;;  %v2455_v31 = vsel %vm2451_vm9, 1, %v3889_v1  ;;  %v3115_v2 = vpack.c.bf16 %v2571_v63, %v2570_v62  ;;  %v2554_v3 = vld [vmem:[%s4558_s13 + $0x50] sm:$0xff]  ;;  %vm2662_vm9 = vcmask 80896  }
0x1374   :  { %v2274_v12 = vsel %vm543_vm7, %v2266_v4, 0.0 }
0x1375   :  { %2275 = vadd.xlane.f32.xlu0 %v2274_v12  ;;  %v2277_v20 = vsel %vm543_vm7, %v2267_v9, 0.0  ;;  %v2572_v12 = vld [vmem:[%s4558_s13 + $0xe0] sm:$0xff] }
0x1376   :  { %2278 = vadd.xlane.f32.xlu1 %v2277_v20  ;;  %v2573_v20 = vld [vmem:[%s4558_s13 + $0xe8] sm:$0xff] }
0x1377   :  { %v3119_v22 = vpack.c.bf16 %v2573_v20, %v2572_v12 }
0x1387   :  { %2461 = vperm.xlu1 %3197, %v2454_v17  }
0x138b   :  { %2458 = vperm.xlu0 %3196, %v2453_v28   ;;  %2464 = vperm.xlu1 %3197, %v2455_v31  }
0x138f   :  { %3199 = vset.pattern.permute.xlu0 %v3888_v0  ;;  %2467 = vperm.xlu1 %3197, %v2456_v19  }
0x1393   :  { %3198 = vset.pattern.permute.xlu1 %v3888_v0 }
0x1394   :  { %2500 = vperm.xlu1 %3198, %v2453_v28   ;;  %v2575_v28 = vld [vmem:[%s4558_s13 + $0xf8] sm:$0xff] }
0x1398   :  { %2503 = vperm.xlu1 %3198, %v2454_v17   ;;  %v3121_v17 = vpack.c.bf16 %v2557_v14, %v2556_v13 }
0x139c   :  { %2506 = vperm.xlu1 %3198, %v2455_v31   ;;  %v3123_v31 = vpack.c.bf16 %v2575_v28, %v2574_v18 }
0x13a0   :  { %2509 = vperm.xlu1 %3198, %v2456_v19   ;;  %v2558_v19 = vld [vmem:[%s4558_s13 + $0x70] sm:$0xff] }
0x13fe   :  { %v2270_v21 = vpop.xlane.xlu0 %2269 }
0x13ff   :  { %3392 = vrcp.f32 %v2270_v21  ;;  %v2273_v23 = vpop.xlane.xlu1 %2272  ;;  %v2559_v21 = vld [vmem:[%s4558_s13 + $0x78] sm:$0xff] }
0x1400   :  { %3394 = vrcp.f32 %v2273_v23  ;;  %v3125_v23 = vpack.c.bf16 %v2559_v21, %v2558_v19 }
0x1402   :  { %v2276_v24 = vpop.xlane.xlu0 %2275 }
0x1403   :  { %3396 = vrcp.f32 %v2276_v24  ;;  %v2279_v25 = vpop.xlane.xlu1 %2278 }
0x1404   :  { %3398 = vrcp.f32 %v2279_v25  ;;  %v2294_v25 = vld [vmem:[%s4559_s14] sm:$0x3] }
0x1407   :  { %v4458_v24 = vpop.permute.xlu1 %2461 }
0x1408   :  { %vm2470_vm12 = vcmp.eq.s32.totalorder %v4458_v24, 1 }
0x1409   :  { %v3393_v26 = vpop.eup %3392 }
0x140a   :  { %v3395_v27 = vpop.eup %3394  ;;  %v2284_v30 = vmul.f32 %v3393_v26, %v2264_v60  ;;  %v2553_v60 = vld [vmem:[%s4558_s13 + $0x48] sm:$0xff] }
0x140b   :  { %v2285_v0 = vmul.f32 %v3395_v27, %v2265_v61  ;;  %v3113_v61 = vpack.c.bf16 %v2553_v60, %v2552_v59  ;;  %v4461_v26 = vpop.permute.xlu1 %2464  ;;  %v2365_v27 = vld [vmem:[%s4560_s16] sm:$0x3] }
0x140c   :  { %vm2471_vm13 = vcmp.eq.s32.totalorder %v4461_v26, 1 }
0x140d   :  { %v3397_v32 = vpop.eup %3396  ;;  %v2288_v33 = vpack.c.bf16 %v2285_v0, %v2284_v30  ;;  %v2299_v30 = vrot.slane %v2294_v25, %v4173_v10  ;;  %v2385_v0 = vld [vmem:[%s4561_s18] sm:$0x3] }
0x140e   :  { %v3399_v34 = vpop.eup %3398  ;;  %v2286_v35 = vmul.f32 %v3397_v32, %v2266_v4  ;;  %v2555_v4 = vld [vmem:[%s4558_s13 + $0x58] sm:$0xff]  ;;  %v2303_v32 = vrot.slane %v2294_v25, %v4175_v11  ;;  %v2394_v40 = vrot.slane %v2385_v0, %v4175_v11 }
0x140f   :  { %2886 = vmatmul.mubr.msk.bf16.vlgmr.msra.gmra.mrb[28].mxu1 %vm543_vm7, %v2288_v33  ;;  %v2287_v36 = vmul.f32 %v3399_v34, %v2267_v9  ;;  %v3117_v9 = vpack.c.bf16 %v2555_v4, %v2554_v3  ;;  %v2370_v33 = vrot.slane %v2365_v27, %v4173_v10 }
0x1410   :  { %2354 = vmatprep.mubr.bf16.mxu1 %v3889_v1  ;;  %3098 = vmatpush3.bf16.msra.mxu1 %v3097_v41  ;;  %v2562_v1 = vld [vmem:[%s4558_s13 + $0x90] sm:$0xff] }
0x1411   :  { %v2289_v37 = vpack.c.bf16 %v2287_v36, %v2286_v35  ;;  %v3099_v42 = vpack.c.bf16 %v2563_v29, %v2562_v1  ;;  %v2374_v35 = vrot.slane %v2365_v27, %v4175_v11  ;;  %v4469_v36 = vpop.permute.xlu1 %2467  ;;  %v2459_v27 = vpop.permute.xlu0 %2458 }
0x1412   :  { %vm2472_vm14 = vcmp.eq.s32.totalorder %v4469_v36, 1  ;;  %vm2469_vm3 = vcmp.eq.s32.totalorder %v2459_v27, 1 }
0x1413   :  { %3100 = vmatprep.subr.bf16.mxu1 %v3099_v42 }
0x1414   :  { %3102 = vmatpush3.bf16.msra.mxu1 %v3101_v43 }
0x1415   :  { %3104 = vmatprep.subr.bf16.mxu1 %v3103_v46  ;;  %v4473_v45 = vpop.permute.xlu1 %2500 }
0x1416   :  { %vm2511_vm15 = vcmp.eq.s32.totalorder %v4473_v45, 1 }
0x1417   :  { %2887 = vmatmul.mubr.msk.bf16.gmra.mrb[32].mxu1 %vm543_vm7, %v2289_v37  ;;  %vm3894_vm7 = vmmov 1  }
0x1418   :  { %3106 = vmatpush3.bf16.msra.mxu1 %v3105_v5  ;;  %vm3129_vm8 = vmpackc.low %vm2666_vm6, %vm3894_vm7 }
0x1419   :  { %3108 = vmatprep.subr.bf16.mxu1 %v3107_v52  ;;  %v4475_v60 = vpop.permute.xlu1 %2503 }
0x141a   :  { %vm2512_vm1 = vcmp.eq.s32.totalorder %v4475_v60, 1 }
0x141c   :  { %3110 = vmatpush3.bf16.msra.mxu1 %v3109_v54 }
0x141d   :  { %3112 = vmatprep.subr.bf16.mxu1 %v3111_v58  ;;  %v2507_v13 = vpop.permute.xlu1 %2506 }
0x141e   :  { %vm2513_vm2 = vcmp.eq.s32.totalorder %v2507_v13, 1 }
0x1420   :  { %3114 = vmatpush3.bf16.msra.mxu1 %v3113_v61 }
0x1421   :  { %3116 = vmatprep.subr.bf16.mxu1 %v3115_v2 }
0x1424   :  { %3118 = vmatpush3.bf16.msra.mxu1 %v3117_v9 }
0x1425   :  { %3120 = vmatprep.subr.bf16.mxu1 %v3119_v22 }
0x1428   :  { %3122 = vmatpush3.bf16.msra.mxu1 %v3121_v17 }
0x1429   :  { %3124 = vmatprep.subr.bf16.mxu1 %v3123_v31 }
0x142c   :  { %3126 = vmatpush3.bf16.msra.mxu1 %v3125_v23 }
0x142d   :  { %3127 = vmatprep.subr.bf16.mxu1 %v3890_v6  ;;  %v2390_v6 = vrot.slane %v2385_v0, %v4173_v10 }
0x14e2   :  { %v2346_v34 = vpop.f32.mrb[28].mxu1 }
0x14e3   :  { %v2347_v37 = vadd.f32 %v2346_v34, %v2299_v30  ;;  %v2348_v38 = vpop.f32.mrb[29].mxu1 }
0x14e4   :  { %v2349_v39 = vadd.f32 %v2348_v38, %v2303_v32  ;;  %v2350_v51 = vpop.f32.mrb[30].mxu1 }
0x14e5   :  { %v2377_v50 = vmul.f32 %v2370_v33, %v2347_v37  ;;  %v2351_v41 = vadd.f32 %v2350_v51, %v2299_v30  ;;  %v2352_v1 = vpop.f32.mrb[31].mxu1 }
0x14e6   :  { %v2378_v29 = vmul.f32 %v2374_v35, %v2349_v39  ;;  %v2353_v42 = vadd.f32 %v2352_v1, %v2303_v32 }
0x14e7   :  { %v2397_v56 = vadd.f32 %v2390_v6, %v2377_v50  ;;  %v2379_v55 = vmul.f32 %v2370_v33, %v2351_v41 }
0x14e8   :  { %v2398_v43 = vadd.f32 %v2394_v40, %v2378_v29  ;;  %v2380_v44 = vmul.f32 %v2374_v35, %v2353_v42 }
0x14e9   :  { %v2413_v46 = vmul.f32 0.70710677, %v2397_v56  ;;  %v2399_v8 = vadd.f32 %v2390_v6, %v2379_v55  ;;  %v2405_v19 = vmul.f32 0.5, %v2397_v56 }
0x14ea   :  { %v2414_v47 = vmul.f32 0.70710677, %v2398_v43  ;;  %v2400_v10 = vadd.f32 %v2394_v40, %v2380_v44  ;;  %v2356_v5 = vpop.f32.mrb[32].mxu1  ;;  %v2406_v23 = vmul.f32 0.5, %v2398_v43 }
0x14eb   :  { %3400 = verf.f32 %v2413_v46  ;;  %v2415_v48 = vmul.f32 0.70710677, %v2399_v8  ;;  %v2357_v11 = vadd.f32 %v2356_v5, %v2299_v30  ;;  %v2358_v49 = vpop.f32.mrb[33].mxu1 }
0x14ec   :  { %3402 = verf.f32 %v2414_v47  ;;  %v2416_v52 = vmul.f32 0.70710677, %v2400_v10  ;;  %v2359_v53 = vadd.f32 %v2358_v49, %v2303_v32  ;;  %v2360_v16 = vpop.f32.mrb[34].mxu1 }
0x14ed   :  { %3404 = verf.f32 %v2415_v48  ;;  %v2381_v54 = vmul.f32 %v2370_v33, %v2357_v11  ;;  %v2361_v15 = vadd.f32 %v2360_v16, %v2299_v30  ;;  %v2362_v57 = vpop.f32.mrb[35].mxu1  ;;  %v2510_v30 = vpop.permute.xlu1 %2509 }
0x14ee   :  { %v2382_v58 = vmul.f32 %v2374_v35, %v2359_v53  ;;  %v2363_v59 = vadd.f32 %v2362_v57, %v2303_v32  ;;  %3406 = verf.f32 %v2416_v52  ;;  %vm2514_vm4 = vcmp.eq.s32.totalorder %v2510_v30, 1 }
0x14ef   :  { %v2401_v61 = vadd.f32 %v2390_v6, %v2381_v54  ;;  %v2383_v62 = vmul.f32 %v2370_v33, %v2361_v15  ;;  %v2407_v33 = vmul.f32 0.5, %v2399_v8 }
0x14f0   :  { %v2402_v63 = vadd.f32 %v2394_v40, %v2382_v58  ;;  %v2384_v2 = vmul.f32 %v2374_v35, %v2363_v59  ;;  %v2408_v35 = vmul.f32 0.5, %v2400_v10 }
0x14f1   :  { %v2417_v3 = vmul.f32 0.70710677, %v2401_v61  ;;  %v2403_v4 = vadd.f32 %v2390_v6, %v2383_v62  ;;  %v2409_v39 = vmul.f32 0.5, %v2401_v61 }
0x14f2   :  { %v2418_v9 = vmul.f32 0.70710677, %v2402_v63  ;;  %v2404_v12 = vadd.f32 %v2394_v40, %v2384_v2  ;;  %v2410_v40 = vmul.f32 0.5, %v2402_v63 }
0x14f3   :  { %3408 = verf.f32 %v2417_v3  ;;  %v2419_v20 = vmul.f32 0.70710677, %v2403_v4  ;;  %v2411_v29 = vmul.f32 0.5, %v2403_v4 }
0x14f4   :  { %3410 = verf.f32 %v2418_v9  ;;  %v2420_v22 = vmul.f32 0.70710677, %v2404_v12  ;;  %v2412_v42 = vmul.f32 0.5, %v2404_v12 }
0x14f5   :  { %v3401_v14 = vpop.eup %3400  ;;  %3412 = verf.f32 %v2419_v20 }
0x14f6   :  { %v3403_v17 = vpop.eup %3402  ;;  %3414 = verf.f32 %v2420_v22  ;;  %v2429_v28 = vadd.f32 1.0, %v3401_v14 }
0x14f7   :  { %v3405_v18 = vpop.eup %3404  ;;  %v2430_v31 = vadd.f32 1.0, %v3403_v17 }
0x14f8   :  { %v3407_v21 = vpop.eup %3406  ;;  %v2431_v25 = vadd.f32 1.0, %v3405_v18  ;;  %v2437_v0 = vmul.f32 %v2429_v28, %v2405_v19 }
0x14f9   :  { %v2438_v32 = vmul.f32 %v2430_v31, %v2406_v23  ;;  %v2432_v37 = vadd.f32 1.0, %v3407_v21 }
0x14fa   :  { %v2439_v38 = vmul.f32 %v2431_v25, %v2407_v33  ;;  %v2515_v41 = vsel %vm2511_vm15, %v2437_v0, -1e+30  ;;  %v2473_v44 = vsel %vm2469_vm3, %v2437_v0, -1e+30 }
0x14fb   :  { %v2516_v55 = vsel %vm2511_vm15, %v2438_v32, -1e+30  ;;  %v2440_v8 = vmul.f32 %v2432_v37, %v2408_v35  ;;  %v2474_v10 = vsel %vm2469_vm3, %v2438_v32, -1e+30 }
0x14fc   :  { %v2475_v48 = vsel %vm2470_vm12, %v2439_v38, -1e+30  ;;  %v2517_v62 = vsel %vm2512_vm1, %v2439_v38, -1e+30 }
0x14fd   :  { %v3409_v34 = vpop.eup %3408  ;;  %v2476_v61 = vsel %vm2470_vm12, %v2440_v8, -1e+30  ;;  %v2518_v26 = vsel %vm2512_vm1, %v2440_v8, -1e+30 }
0x14fe   :  { %v3411_v6 = vpop.eup %3410  ;;  %v2433_v51 = vadd.f32 1.0, %v3409_v34 }
0x14ff   :  { %v3413_v50 = vpop.eup %3412  ;;  %v2434_v1 = vadd.f32 1.0, %v3411_v6 }
0x1500   :  { %v3415_v56 = vpop.eup %3414  ;;  %v2441_v43 = vmul.f32 %v2433_v51, %v2409_v39  ;;  %v2435_v46 = vadd.f32 1.0, %v3413_v50 }
0x1501   :  { %v2442_v47 = vmul.f32 %v2434_v1, %v2410_v40  ;;  %v2436_v5 = vadd.f32 1.0, %v3415_v56 }
0x1502   :  { %v2519_v11 = vsel %vm2513_vm2, %v2441_v43, -1e+30  ;;  %v2477_v49 = vsel %vm2471_vm13, %v2441_v43, -1e+30  ;;  %v2443_v52 = vmul.f32 %v2435_v46, %v2411_v29  ;;  %v2653_v29 = vld [vmem:[%s4059_s20] sm:$0xff] }
0x1503   :  { %v2520_v45 = vsel %vm2513_vm2, %v2442_v47, -1e+30  ;;  %v2523_v53 = vmax.f32 %v2515_v41, %v2519_v11  ;;  %v2478_v16 = vsel %vm2471_vm13, %v2442_v47, -1e+30  ;;  %v2481_v54 = vmax.f32 %v2473_v44, %v2477_v49  ;;  %v2888_v43 = vld [vmem:[%s4054_s5] ss:$0 sm:$0xff] }
0x1504   :  { %v2532_v15 = vmax.f32 %v2516_v55, %v2520_v45  ;;  %v2490_v57 = vmax.f32 %v2474_v10, %v2478_v16  ;;  %v2444_v58 = vmul.f32 %v2436_v5, %v2412_v42  ;;  %v2479_v59 = vsel %vm2472_vm14, %v2443_v52, -1e+30  ;;  %v2654_v42 = vld [vmem:[%s4059_s20 + $0x8] sm:$0x3]  ;;  %v2889_v47 = vld [vmem:[%s4064_s9] ss:$0 sm:$0xff] }
0x1505   :  { %v2482_v63 = vmax.f32 %v2475_v48, %v2479_v59  ;;  %v2521_v2 = vsel %vm2514_vm4, %v2443_v52, -1e+30  ;;  %v3128_v56 = vpack.c.bf16 %v2654_v42, %v2653_v29  ;;  %s3794_s20 = scalar_lea.vmem %s2749_s21, 32 }
0x1506   :  { %v2480_v3 = vsel %vm2472_vm14, %v2444_v58, -1e+30  ;;  %v2522_v4 = vsel %vm2514_vm4, %v2444_v58, -1e+30  ;;  %v2524_v9 = vmax.f32 %v2517_v62, %v2521_v2  ;;  %p3795_p10 = scmp.ne.s32.totalorder %s2749_s21, %s3794_s20  ;;  %p3800_p12 = scmp.lt.s32.totalorder %s3794_s20, %s3794_s20 }
0x1507   :  { %v2483_v12 = vmax.f32 %v2481_v54, %v2482_v63  ;;  %v2491_v20 = vmax.f32 %v2476_v61, %v2480_v3  ;;  %v2533_v22 = vmax.f32 %v2518_v26, %v2522_v4 }
0x1508   :  { %v2525_v24 = vmax.f32 %v2523_v53, %v2524_v9  ;;  %p3801_p13 = por %p3800_p12, %p3799_p11 }
0x1509   :  { %v2484_v13 = vrot.slane %v2483_v12, 4  ;;  %v2492_v14 = vmax.f32 %v2490_v57, %v2491_v20  ;;  %v2534_v17 = vmax.f32 %v2532_v15, %v2533_v22 }
0x150a   :  { %v2526_v18 = vrot.slane %v2525_v24, 4  ;;  %p3802_p0 = pnand %p3801_p13, %p3795_p10 }
0x150b   :  { %v2485_v28 = vmax.f32 %v2483_v12, %v2484_v13  ;;  %v2493_v31 = vrot.slane %v2492_v14, 4  ;;  %v2535_v19 = vrot.slane %v2534_v17, 4 }
0x150c   :  { %v2527_v21 = vmax.f32 %v2525_v24, %v2526_v18 }
0x150d   :  { %v2486_v60 = vrot.slane %v2485_v28, 2  ;;  %v2494_v23 = vmax.f32 %v2492_v14, %v2493_v31  ;;  %v2536_v25 = vmax.f32 %v2534_v17, %v2535_v19 }
0x150e   :  { %v2528_v36 = vrot.slane %v2527_v21, 2 }
0x150f   :  { %v2487_v27 = vmax.f32 %v2485_v28, %v2486_v60  ;;  %v2537_v30 = vrot.slane %v2536_v25, 2  ;;  %v2495_v0 = vrot.slane %v2494_v23, 2 }
0x1510   :  { %v2529_v32 = vmax.f32 %v2527_v21, %v2528_v36 }
0x1511   :  { %v2538_v33 = vmax.f32 %v2536_v25, %v2537_v30  ;;  %v2496_v34 = vmax.f32 %v2494_v23, %v2495_v0  ;;  %v2488_v35 = vrot.slane %v2487_v27, 1 }
0x1512   :  { %v2530_v37 = vrot.slane %v2529_v32, 1 }
0x1513   :  { %v2497_v6 = vrot.slane %v2496_v34, 1  ;;  %v2539_v38 = vrot.slane %v2538_v33, 1  ;;  %v2489_v39 = vmax.f32 %v2487_v27, %v2488_v35 }
0x1514   :  { %v2531_v40 = vmax.f32 %v2529_v32, %v2530_v37 }
0x1515   :  { %v2498_v51 = vmax.f32 %v2496_v34, %v2497_v6  ;;  %v2540_v50 = vmax.f32 %v2538_v33, %v2539_v38 }
0x1516   :  { %v2542_v41 = vsel %vm2541_vm5, %v2489_v39, %v2531_v40 }
0x1517   :  { %v2543_v1 = vsel %vm2541_vm5, %v2498_v51, %v2540_v50 }
0x1518   :  { %2647 = vmatprep.mubr.f32.mxu1 %v2543_v1 }
0x1519   :  { %2648 = vmatmul.mubr.f32.vlgmr.msra.gmra.mrb[36].mxu1 %v2542_v41 }
0x151a   :  { %3054 = vmatprep.mubr.msk.f32.mxu1 %vm3891_vm0, %v3892_v7  ;;  %3130 = vmatpush3.bf16.msk.msra.mxu1 %vm3129_vm8, %v3128_v56 }
0x15ec   :  { %v2963_v55 = vpop.f32.mrb[36].mxu1 }
0x15ed   :  { %v2964_v44 = vpop.f32.mrb[37].mxu1 }
0x15ee   :  { %v2965_v46 = vadd.f32 %v2964_v44, %v2963_v55 }
0x15f0   :  { %v2650_v8 = vadd.f32 %v2965_v46, %v2888_v43 }
0x15f2   :  { %3055 = vmatmul.mubr.msk.f32.vlgmr.msra.gmra.mrb[38].mxu1 %vm2662_vm9, %v2650_v8 }
0x16c5   :  { %v2736_v10 = vpop.f32.mrb[38].mxu1 }
0x16c6   :  { %v2737_v7 = vadd.f32 %v2889_v47, %v2736_v10  ;;  %v3056_v5 = vpop.f32.mrb[39].mxu1 }
0x16c8   :  { %2741 = vst.msk [vmem:[#allocation29] sm:$0x3] %vm2740_vm10, %v2737_v7 }
0x16c9   :  { %3805 = shalt.err (!%p3802_p0)
}
0x16ca   :  { %s3806_s5 = scalar_lea.hbm %s4069_s4, 32 }
0x16cb   :  { %p3807_p1 = scmp.ne.s32.totalorder %s4069_s4, %s3806_s5  ;;  %p3810_p2 = scmp.lt.u32.totalorder %s3806_s5, %s4069_s4 }
0x16cd   :  { %p3812_p3 = pnand %p3810_p2, %p3807_p1 }
0x16cf   :  { %3815 = shalt.err (!%p3812_p3)
}
0x16d0   :  { %2751 = dma.vmem_to_hbm [thread:$0]  %s2749_s21, 32, %s4069_s4, [#allocation4]  }
0x16d1   :  { %3834 = dma.done.wait [#allocation4], 32  }
0x16d2   :  { %3835 = vsyncadd [#allocation4], 4294967264 }
0x16d3   :  { %2755 = vsyncpa [#allocation3], 1 }
0x16d4   :  { %2756 = vsyncpa [#allocation6], 1 }
0x16d5   :  { %2757 = vsyncpa [#allocation9], 1 }
0x16d6   :  { %2758 = vsyncpa [#allocation12], 1 }
0x16d7   :  { %2759 = vsyncpa [#allocation15], 1 }
0x16d8   :  { %2760 = vsyncpa [#allocation18], 1 }
0x16d9   :  { %2761 = vsyncpa [#allocation21], 1 }
0x16da   :  { %2762 = vsyncpa [#allocation24], 1 }
0x16db   :  { %2763 = vsyncpa [#allocation27], 1 }
0x16dc   :  { %2764 = vsyncpa [#allocation4], 1 }

</bundles_post_ra>
